<compile_context>
chip_gen: v6e
topology: v6e:2x2x1
jax: 0.10.0
libtpu: 0.0.40
codegen_flags: <defaults>
</compile_context>

<pallas_src>
import jax
import jax.numpy as jnp
import numpy as np
from jax.experimental import pallas as pl
from jax.experimental.pallas import tpu as pltpu


_STEM_OPS = 4    # wband(3,W*Cin,W*C0), bias_row, s_up, s_dn
_BLOCK_OPS = 10  # wcat1, b1, wcat2, b2, msc, bsc, ph, pwc, s_up, s_dn


# ---------------------------------------------------------------------------
# In-kernel helpers (pure 2-D matmuls / VPU ops on VMEM-resident values)
# ---------------------------------------------------------------------------
def _mm(a, b):
    return jnp.dot(a, b, preferred_element_type=jnp.float32)


def _bf16(x):
    return x.astype(jnp.bfloat16)


def _shifted_rows(xb, s_up_ref, s_dn_ref):
    """Row-shifted copies of xb via block-diagonal (per batch tile) 0/1 shift
    matrices.  The matmul result is exactly the original bf16 values, so the
    re-cast to bf16 is lossless."""
    up = _bf16(_mm(s_up_ref[...], xb))      # row h <- x[h-1]  (zero at image top)
    dn = _bf16(_mm(s_dn_ref[...], xb))      # row h <- x[h+1]  (zero at image bottom)
    return up, dn


def _conv3x3_relu_stacked(xb, s_up_ref, s_dn_ref, wcat_ref, brow_ref):
    """3x3 conv (stride 1, pad 1) + bias + ReLU as one K-stacked MXU matmul."""
    up, dn = _shifted_rows(xb, s_up_ref, s_dn_ref)
    stacked = jnp.concatenate([up, xb, dn], axis=-1)     # (M, 3*W*Cin), 128-lane aligned
    acc = _mm(stacked, wcat_ref[...])
    return jnp.maximum(acc + brow_ref[...], 0.0)         # f32 epilogue


def _conv3x3_relu_split(xb, s_up_ref, s_dn_ref, w3_ref, brow_ref):
    """Same conv in the 3-matmul form (stem only: W*Cin=48 lanes, lane-concat
    would be unaligned)."""
    up, dn = _shifted_rows(xb, s_up_ref, s_dn_ref)
    acc = _mm(up, w3_ref[0]) + _mm(xb, w3_ref[1]) + _mm(dn, w3_ref[2])
    return jnp.maximum(acc + brow_ref[...], 0.0)


def _shortcut(xb, ph_ref, msc_ref, bsc_ref):
    """AvgPool2d(2) + 1x1 conv + ReLU.  Pool-along-W and the 1x1 conv are fused
    into the host-prepared matrix msc; pool-along-H is the tiny ph matmul."""
    pooled_h = _bf16(_mm(ph_ref[...], xb))               # (BT*H/2, W*Cin)
    return jnp.maximum(_mm(pooled_h, msc_ref[...]) + bsc_ref[...], 0.0)


def _avgpool2(t, ph_ref, pwc_ref):
    """2x2 average pool on the main path: (BT*H, W*C) -> (BT*H/2, (W/2)*C)."""
    return _mm(_bf16(_mm(ph_ref[...], _bf16(t))), pwc_ref[...])


def _store_tile(out_ref, val, bt, hl):
    """Store a (bt*hl, N) value into a (bt, hl, N) output block."""
    v = val.astype(out_ref.dtype)
    if bt == 1 or hl % 8 == 0:
        out_ref[...] = v.reshape(out_ref.shape)          # sublane-tile aligned regroup
    else:
        for i in range(bt):                              # only the tiny deep levels
            out_ref[i] = v[i * hl:(i + 1) * hl, :]


def _make_encoder_kernel(meta):
    bt = meta["batch_tile"]
    stem = meta["stem"]
    blocks_meta = meta["blocks"]
    n_blocks = len(blocks_meta)

    def kernel(*refs):
        pos = 0
        x_ref = refs[pos]; pos += 1
        st_w, st_b, st_su, st_sd = refs[pos:pos + _STEM_OPS]; pos += _STEM_OPS
        blk_refs = []
        for _ in range(n_blocks):
            blk_refs.append(refs[pos:pos + _BLOCK_OPS]); pos += _BLOCK_OPS
        out_refs = refs[pos:pos + 1 + n_blocks]

        # ---- stem: 3x3 conv + ReLU --------------------------------------
        xb = _bf16(x_ref[...])                                    # (bt*H, W*Cin)
        h = _conv3x3_relu_split(xb, st_su, st_sd, st_w, st_b)     # f32
        _store_tile(out_refs[0], h, bt, stem["H"])

        # ---- ResSubsampleBlocks -----------------------------------------
        for k in range(n_blocks):
            hk = blocks_meta[k]["H"]
            (w1, b1, w2, b2, msc, bsc, ph, pwc, s_up, s_dn) = blk_refs[k]
            xb = _bf16(h)
            sc = _shortcut(xb, ph, msc, bsc)                        # AvgPool + 1x1 + ReLU
            t = _conv3x3_relu_stacked(xb, s_up, s_dn, w1, b1)       # conv1
            t = _conv3x3_relu_stacked(_bf16(t), s_up, s_dn, w2, b2) # conv2
            h = _avgpool2(t, ph, pwc) + sc                          # pool + residual
            _store_tile(out_refs[k + 1], h, bt, hk // 2)

    return kernel


# ---------------------------------------------------------------------------
# One-time host-side preparation of kernel operands
# ---------------------------------------------------------------------------
def _band_matrices(w_hwio, W):
    """(3,3,Cin,Cout) conv kernel -> (3, W*Cin, W*Cout) block-tridiagonal mats.
    Zero padding along W is folded into the truncated band structure."""
    w = np.asarray(w_hwio, np.float32)
    c_in, c_out = w.shape[2], w.shape[3]
    bands = []
    for di in range(3):
        m = np.zeros((W * c_in, W * c_out), np.float32)
        for dj in range(3):
            m += np.kron(np.eye(W, k=1 - dj, dtype=np.float32), w[di, dj])
        bands.append(m)
    return np.stack(bands)


def _shift_matrices(H, bt):
    """Block-diagonal (per batch-tile) row-shift matrices; zero at image edges."""
    s_up = np.kron(np.eye(bt, dtype=np.float32), np.eye(H, k=-1, dtype=np.float32))
    s_dn = np.kron(np.eye(bt, dtype=np.float32), np.eye(H, k=+1, dtype=np.float32))
    return s_up, s_dn


def _pool_h_matrix(H, bt):
    ph = 0.5 * np.repeat(np.eye(H // 2, dtype=np.float32), 2, axis=1)   # (H/2, H)
    return np.kron(np.eye(bt, dtype=np.float32), ph)                    # (bt*H/2, bt*H)


def _pool_wc_matrix(W, C):
    pw = np.repeat(np.eye(W // 2, dtype=np.float32), 2, axis=1)         # (W/2, W)
    return 0.5 * np.kron(pw.T, np.eye(C, dtype=np.float32))             # (W*C, (W/2)*C)


def prepare_encoder(params, height, width, batch_tile=1):
    """Build kernel-ready operands once on the host: K-stacked bf16 band conv
    matrices, fused pool+1x1 shortcut matrices, per-batch-tile shift/pool
    matrices and f32 bias rows.  Also guards the O(W^2) weight footprint
    against the smallest-generation (v7x) VMEM."""
    assert height % 2 == 0 and width % 2 == 0
    stem_w = np.asarray(params["conv"]["w"], np.float32)
    stem_b = np.asarray(params["conv"]["b"], np.float32)
    c_in, c0 = stem_w.shape[2], stem_w.shape[3]

    meta = {"stem": dict(H=height, W=width, Cin=c_in, Cout=c0),
            "blocks": [], "batch_tile": int(batch_tile)}

    s_up, s_dn = _shift_matrices(height, batch_tile)
    ops = [
        jnp.asarray(_band_matrices(stem_w, width), jnp.bfloat16),        # (3,W*Cin,W*C0)
        jnp.asarray(np.tile(stem_b, width)[None, :], jnp.float32),       # (1,W*C0)
        jnp.asarray(s_up, jnp.bfloat16), jnp.asarray(s_dn, jnp.bfloat16),
    ]

    sh, sw, c = height, width, c0
    for blk in params["blocks"]:
        w1 = np.asarray(blk["conv1"]["w"], np.float32)
        b1 = np.asarray(blk["conv1"]["b"], np.float32)
        w2 = np.asarray(blk["conv2"]["w"], np.float32)
        b2 = np.asarray(blk["conv2"]["b"], np.float32)
        wsc = np.asarray(blk["shortcut"]["w"], np.float32)               # (1,1,Cin,Cout)
        bsc = np.asarray(blk["shortcut"]["b"], np.float32)
        c_out = w1.shape[3]
        assert sh % 2 == 0 and sw % 2 == 0
        sh2, sw2 = sh // 2, sw // 2

        # K-stacked band weights: rows ordered [band_up; band_mid; band_dn]
        wcat1 = _band_matrices(w1, sw).reshape(3 * sw * c, sw * c_out)
        wcat2 = _band_matrices(w2, sw).reshape(3 * sw * c_out, sw * c_out)
        # fused (pool along W) @ (1x1 conv): (W*Cin, (W/2)*Cout)
        msc = _pool_wc_matrix(sw, c) @ np.kron(np.eye(sw2, dtype=np.float32), wsc[0, 0])
        s_up, s_dn = _shift_matrices(sh, batch_tile)
        ops += [
            jnp.asarray(wcat1, jnp.bfloat16),
            jnp.asarray(np.tile(b1, sw)[None, :], jnp.float32),
            jnp.asarray(wcat2, jnp.bfloat16),
            jnp.asarray(np.tile(b2, sw)[None, :], jnp.float32),
            jnp.asarray(msc, jnp.bfloat16),
            jnp.asarray(np.tile(bsc, sw2)[None, :], jnp.float32),
            jnp.asarray(_pool_h_matrix(sh, batch_tile), jnp.bfloat16),
            jnp.asarray(_pool_wc_matrix(sw, c_out), jnp.bfloat16),
            jnp.asarray(s_up, jnp.bfloat16), jnp.asarray(s_dn, jnp.bfloat16),
        ]
        meta["blocks"].append(dict(H=sh, W=sw, Cin=c, Cout=c_out))
        sh, sw, c = sh2, sw2, c_out

    # --- VMEM budget guard (v7x has only 64 MiB physical VMEM) ------------
    weight_bytes = sum(int(o.size) * o.dtype.itemsize for o in ops)
    max_c = max(c0, *(b["Cout"] for b in meta["blocks"]))
    act_bytes = 6 * batch_tile * height * width * max_c * 4   # rough live-activation bound
    est = 2 * weight_bytes + 2 * act_bytes                    # double-buffered operands
    budget = 64 * 1024 * 1024
    assert est < budget // 2, (
        f"prepared encoder operands (~{est / 2**20:.1f} MiB incl. double buffering) "
        f"leave no headroom in {budget // 2**20} MiB VMEM; reduce batch_tile or "
        "switch the conv to a tiled im2col GEMM")
    meta["vmem_estimate_bytes"] = int(est)
    return ops, meta


# ---------------------------------------------------------------------------
# Forward pass wrapper (matches Encoder.forward: returns a list of feature maps)
# ---------------------------------------------------------------------------
def _const_index_map(ndim):
    zeros = (0,) * ndim
    return lambda b: zeros


def _choose_batch_tile(batch, height, m_target=256):
    """How many images are stacked into the matmul M dim per grid step.
    m_target~256 fills a v6e/v7x MXU pass (use 128 on v5e); the grid length
    B/batch_tile is kept >= 2 when possible so v7x's two TensorCores both work."""
    divisors = [d for d in range(1, batch + 1) if batch % d == 0]
    good = [d for d in divisors if d * height <= m_target] or [1]
    bt = max(good)
    if batch > 1 and batch // bt < 2:
        smaller = [d for d in good if batch // d >= 2]
        if smaller:
            bt = max(smaller)
    return bt


def build_encoder_forward(meta, channels_first=True):
    """Returns forward(x, ops).  channels_first=True matches the PyTorch module
    (NCHW in, list of NCHW maps out).  Pass channels_first=False to feed/emit
    NHWC directly and skip the wrapper transposes (recommended at real
    resolutions: each transpose is a full HBM round trip)."""
    bt = meta["batch_tile"]
    stem = meta["stem"]
    kernel = _make_encoder_kernel(meta)
    H0, W0, Cin, C0 = stem["H"], stem["W"], stem["Cin"], stem["Cout"]
    level_dims = [(H0, W0, C0)] + [(b["H"] // 2, b["W"] // 2, b["Cout"])
                                   for b in meta["blocks"]]

    def forward(x, ops):
        if channels_first:
            x = jnp.transpose(x, (0, 2, 3, 1))            # NCHW -> NHWC
        B = x.shape[0]
        assert B % bt == 0, f"batch {B} must be a multiple of batch_tile {bt}"
        assert x.shape[1:] == (H0, W0, Cin)
        x2 = x.reshape(B * H0, W0 * Cin)                  # free, row-major identical
        grid = (B // bt,)

        in_specs = [pl.BlockSpec((bt * H0, W0 * Cin), lambda b: (b, 0))]
        # Weights: full-shape blocks with constant index maps -> fetched once.
        in_specs += [pl.BlockSpec(op.shape, _const_index_map(op.ndim)) for op in ops]

        out_shapes, out_specs = [], []
        for (hl, wl, cl) in level_dims:
            out_shapes.append(jax.ShapeDtypeStruct((B, hl, wl * cl), jnp.float32))
            out_specs.append(pl.BlockSpec((bt, hl, wl * cl), lambda b: (b, 0, 0)))

        outs = pl.pallas_call(
            kernel,
            out_shape=tuple(out_shapes),
            grid_spec=pltpu.PrefetchScalarGridSpec(
                num_scalar_prefetch=0,
                grid=grid,
                in_specs=in_specs,
                out_specs=tuple(out_specs),
            ),
            compiler_params=pltpu.CompilerParams(
                dimension_semantics=("parallel",),
                vmem_limit_bytes=64 * 1024 * 1024),
        )(x2, *ops)

        feats = []
        for (hl, wl, cl), o in zip(level_dims, outs):
            f = o.reshape(B, hl, wl, cl)
            if channels_first:
                f = jnp.transpose(f, (0, 3, 1, 2))        # NHWC -> NCHW (PyTorch layout)
            feats.append(f)
        return feats

    return forward


# ---------------------------------------------------------------------------
# Parameter init (deterministic, shapes from the module's __init__)
# ---------------------------------------------------------------------------
def _init_conv(key, kh, kw, cin, cout):
    kw_key, kb_key = jax.random.split(key)
    w = jax.random.normal(kw_key, (kh, kw, cin, cout), jnp.float32) / np.sqrt(kh * kw * cin)
    b = 0.01 * jax.random.normal(kb_key, (cout,), jnp.float32)
    return {"w": w, "b": b}


def init_encoder(key, input_dim=3, filter_size=3, min_filter_num=8,
                 max_filter_num=32, downscale_num=3):
    keys = jax.random.split(key, 1 + 3 * downscale_num)
    params = {
        "conv": _init_conv(keys[0], filter_size, filter_size, input_dim, min_filter_num),
        "blocks": [],
    }
    c = min_filter_num
    ki = 1
    for _ in range(downscale_num):
        n = min(c * 2, max_filter_num)
        params["blocks"].append({
            "shortcut": _init_conv(keys[ki], 1, 1, c, n),
            "conv1": _init_conv(keys[ki + 1], filter_size, filter_size, c, n),
            "conv2": _init_conv(keys[ki + 2], filter_size, filter_size, n, n),
        })
        ki += 3
        c = n
    return params


# ---------------------------------------------------------------------------
# Pure-JAX reference for a sanity check
# ---------------------------------------------------------------------------
def _ref_conv_relu(x, w, b, pad):
    out = jax.lax.conv_general_dilated(
        x, w, window_strides=(1, 1), padding=[(pad, pad), (pad, pad)],
        dimension_numbers=("NHWC", "HWIO", "NHWC"),
        precision=jax.lax.Precision.HIGHEST)
    return jnp.maximum(out + b, 0.0)


def _ref_pool(x):
    B, H, W, C = x.shape
    return x.reshape(B, H // 2, 2, W // 2, 2, C).mean(axis=(2, 4))


def _ref_encoder(x_nchw, params):
    x = jnp.transpose(x_nchw, (0, 2, 3, 1))
    outs = [_ref_conv_relu(x, params["conv"]["w"], params["conv"]["b"], 1)]
    for p in params["blocks"]:
        cur = outs[-1]
        shortcut = _ref_conv_relu(_ref_pool(cur), p["shortcut"]["w"], p["shortcut"]["b"], 0)
        h = _ref_conv_relu(cur, p["conv1"]["w"], p["conv1"]["b"], 1)
        h = _ref_conv_relu(h, p["conv2"]["w"], p["conv2"]["b"], 1)
        outs.append(_ref_pool(h) + shortcut)
    return [jnp.transpose(o, (0, 3, 1, 2)) for o in outs]


if __name__ == "__main__":
    key = jax.random.PRNGKey(0)
    k_param, k_x = jax.random.split(key)

    # small config: input_dim=3, min_filter_num=8, max_filter_num=32, downscale_num=3
    params = init_encoder(k_param, input_dim=3, filter_size=3,
                          min_filter_num=8, max_filter_num=32, downscale_num=3)

    B, H, W = 4, 16, 16
    x = jax.random.normal(k_x, (B, 3, H, W), jnp.float32)         # NCHW like PyTorch

    bt = _choose_batch_tile(B, H)                                  # -> 2: grid of 2 steps
    ops, meta = prepare_encoder(params, height=H, width=W, batch_tile=bt)
    fwd = jax.jit(build_encoder_forward(meta))                     # PyTorch NCHW semantics

    outs = fwd(x, ops)
    jax.block_until_ready(outs)

    expected_shapes = [(B, 8, 16, 16), (B, 16, 8, 8), (B, 32, 4, 4), (B, 32, 2, 2)]
    assert [tuple(o.shape) for o in outs] == expected_shapes, [o.shape for o in outs]

    refs = _ref_encoder(x, params)
    for o, r in zip(outs, refs):
        # bf16 matmul inputs with f32 accumulation: keep a modest tolerance.
        np.testing.assert_allclose(np.asarray(o), np.asarray(r), rtol=5e-2, atol=5e-2)

    print("KERNEL_OK")
</pallas_src>

<mosaic_0001>
module attributes {stable_mosaic.version = 11 : i64} {
  func.func @kernel(%arg0: i32, %arg1: memref<32x48xf32, #tpu.memory_space<vmem>>, %arg2: memref<3x48x128xbf16, #tpu.memory_space<vmem>>, %arg3: memref<1x128xf32, #tpu.memory_space<vmem>>, %arg4: memref<32x32xbf16, #tpu.memory_space<vmem>>, %arg5: memref<32x32xbf16, #tpu.memory_space<vmem>>, %arg6: memref<384x256xbf16, #tpu.memory_space<vmem>>, %arg7: memref<1x256xf32, #tpu.memory_space<vmem>>, %arg8: memref<768x256xbf16, #tpu.memory_space<vmem>>, %arg9: memref<1x256xf32, #tpu.memory_space<vmem>>, %arg10: memref<128x128xbf16, #tpu.memory_space<vmem>>, %arg11: memref<1x128xf32, #tpu.memory_space<vmem>>, %arg12: memref<16x32xbf16, #tpu.memory_space<vmem>>, %arg13: memref<256x128xbf16, #tpu.memory_space<vmem>>, %arg14: memref<32x32xbf16, #tpu.memory_space<vmem>>, %arg15: memref<32x32xbf16, #tpu.memory_space<vmem>>, %arg16: memref<384x256xbf16, #tpu.memory_space<vmem>>, %arg17: memref<1x256xf32, #tpu.memory_space<vmem>>, %arg18: memref<768x256xbf16, #tpu.memory_space<vmem>>, %arg19: memref<1x256xf32, #tpu.memory_space<vmem>>, %arg20: memref<128x128xbf16, #tpu.memory_space<vmem>>, %arg21: memref<1x128xf32, #tpu.memory_space<vmem>>, %arg22: memref<8x16xbf16, #tpu.memory_space<vmem>>, %arg23: memref<256x128xbf16, #tpu.memory_space<vmem>>, %arg24: memref<16x16xbf16, #tpu.memory_space<vmem>>, %arg25: memref<16x16xbf16, #tpu.memory_space<vmem>>, %arg26: memref<384x128xbf16, #tpu.memory_space<vmem>>, %arg27: memref<1x128xf32, #tpu.memory_space<vmem>>, %arg28: memref<384x128xbf16, #tpu.memory_space<vmem>>, %arg29: memref<1x128xf32, #tpu.memory_space<vmem>>, %arg30: memref<128x64xbf16, #tpu.memory_space<vmem>>, %arg31: memref<1x64xf32, #tpu.memory_space<vmem>>, %arg32: memref<4x8xbf16, #tpu.memory_space<vmem>>, %arg33: memref<128x64xbf16, #tpu.memory_space<vmem>>, %arg34: memref<8x8xbf16, #tpu.memory_space<vmem>>, %arg35: memref<8x8xbf16, #tpu.memory_space<vmem>>, %arg36: memref<2x16x128xf32, #tpu.memory_space<vmem>>, %arg37: memref<2x8x128xf32, #tpu.memory_space<vmem>>, %arg38: memref<2x4x128xf32, #tpu.memory_space<vmem>>, %arg39: memref<2x2x64xf32, #tpu.memory_space<vmem>>) attributes {dimension_semantics = [#tpu.dimension_semantics<parallel>], iteration_bounds = array<i64: 2>, scalar_prefetch = 0 : i64, scratch_operands = 0 : i64, tpu.core_type = #tpu.core_type<tc>, window_params = [{transform_indices = @transform_0, window_bounds = array<i64: 32, 48>}, {pipeline_mode = #tpu.pipeline_mode<synchronous>, transform_indices = @transform_1, window_bounds = array<i64: 3, 48, 128>}, {pipeline_mode = #tpu.pipeline_mode<synchronous>, transform_indices = @transform_2, window_bounds = array<i64: 1, 128>}, {pipeline_mode = #tpu.pipeline_mode<synchronous>, transform_indices = @transform_3, window_bounds = array<i64: 32, 32>}, {pipeline_mode = #tpu.pipeline_mode<synchronous>, transform_indices = @transform_4, window_bounds = array<i64: 32, 32>}, {pipeline_mode = #tpu.pipeline_mode<synchronous>, transform_indices = @transform_5, window_bounds = array<i64: 384, 256>}, {pipeline_mode = #tpu.pipeline_mode<synchronous>, transform_indices = @transform_6, window_bounds = array<i64: 1, 256>}, {pipeline_mode = #tpu.pipeline_mode<synchronous>, transform_indices = @transform_7, window_bounds = array<i64: 768, 256>}, {pipeline_mode = #tpu.pipeline_mode<synchronous>, transform_indices = @transform_8, window_bounds = array<i64: 1, 256>}, {pipeline_mode = #tpu.pipeline_mode<synchronous>, transform_indices = @transform_9, window_bounds = array<i64: 128, 128>}, {pipeline_mode = #tpu.pipeline_mode<synchronous>, transform_indices = @transform_10, window_bounds = array<i64: 1, 128>}, {pipeline_mode = #tpu.pipeline_mode<synchronous>, transform_indices = @transform_11, window_bounds = array<i64: 16, 32>}, {pipeline_mode = #tpu.pipeline_mode<synchronous>, transform_indices = @transform_12, window_bounds = array<i64: 256, 128>}, {pipeline_mode = #tpu.pipeline_mode<synchronous>, transform_indices = @transform_13, window_bounds = array<i64: 32, 32>}, {pipeline_mode = #tpu.pipeline_mode<synchronous>, transform_indices = @transform_14, window_bounds = array<i64: 32, 32>}, {pipeline_mode = #tpu.pipeline_mode<synchronous>, transform_indices = @transform_15, window_bounds = array<i64: 384, 256>}, {pipeline_mode = #tpu.pipeline_mode<synchronous>, transform_indices = @transform_16, window_bounds = array<i64: 1, 256>}, {pipeline_mode = #tpu.pipeline_mode<synchronous>, transform_indices = @transform_17, window_bounds = array<i64: 768, 256>}, {pipeline_mode = #tpu.pipeline_mode<synchronous>, transform_indices = @transform_18, window_bounds = array<i64: 1, 256>}, {pipeline_mode = #tpu.pipeline_mode<synchronous>, transform_indices = @transform_19, window_bounds = array<i64: 128, 128>}, {pipeline_mode = #tpu.pipeline_mode<synchronous>, transform_indices = @transform_20, window_bounds = array<i64: 1, 128>}, {pipeline_mode = #tpu.pipeline_mode<synchronous>, transform_indices = @transform_21, window_bounds = array<i64: 8, 16>}, {pipeline_mode = #tpu.pipeline_mode<synchronous>, transform_indices = @transform_22, window_bounds = array<i64: 256, 128>}, {pipeline_mode = #tpu.pipeline_mode<synchronous>, transform_indices = @transform_23, window_bounds = array<i64: 16, 16>}, {pipeline_mode = #tpu.pipeline_mode<synchronous>, transform_indices = @transform_24, window_bounds = array<i64: 16, 16>}, {pipeline_mode = #tpu.pipeline_mode<synchronous>, transform_indices = @transform_25, window_bounds = array<i64: 384, 128>}, {pipeline_mode = #tpu.pipeline_mode<synchronous>, transform_indices = @transform_26, window_bounds = array<i64: 1, 128>}, {pipeline_mode = #tpu.pipeline_mode<synchronous>, transform_indices = @transform_27, window_bounds = array<i64: 384, 128>}, {pipeline_mode = #tpu.pipeline_mode<synchronous>, transform_indices = @transform_28, window_bounds = array<i64: 1, 128>}, {pipeline_mode = #tpu.pipeline_mode<synchronous>, transform_indices = @transform_29, window_bounds = array<i64: 128, 64>}, {pipeline_mode = #tpu.pipeline_mode<synchronous>, transform_indices = @transform_30, window_bounds = array<i64: 1, 64>}, {pipeline_mode = #tpu.pipeline_mode<synchronous>, transform_indices = @transform_31, window_bounds = array<i64: 4, 8>}, {pipeline_mode = #tpu.pipeline_mode<synchronous>, transform_indices = @transform_32, window_bounds = array<i64: 128, 64>}, {pipeline_mode = #tpu.pipeline_mode<synchronous>, transform_indices = @transform_33, window_bounds = array<i64: 8, 8>}, {pipeline_mode = #tpu.pipeline_mode<synchronous>, transform_indices = @transform_34, window_bounds = array<i64: 8, 8>}, {transform_indices = @transform_35, window_bounds = array<i64: 2, 16, 128>}, {transform_indices = @transform_36, window_bounds = array<i64: 2, 8, 128>}, {transform_indices = @transform_37, window_bounds = array<i64: 2, 4, 128>}, {transform_indices = @transform_38, window_bounds = array<i64: 2, 2, 64>}]} {
    %c0 = arith.constant 0 : index
    %c0_0 = arith.constant 0 : index
    %0 = vector.load %arg1[%c0, %c0_0] : memref<32x48xf32, #tpu.memory_space<vmem>>, vector<32x48xf32>
    %1 = arith.truncf %0 : vector<32x48xf32> to vector<32x48xbf16>
    %c0_1 = arith.constant 0 : index
    %c0_2 = arith.constant 0 : index
    %2 = vector.load %arg4[%c0_1, %c0_2] : memref<32x32xbf16, #tpu.memory_space<vmem>>, vector<32x32xbf16>
    %cst = arith.constant dense<0.000000e+00> : vector<32x48xf32>
    %3 = tpu.matmul %2, %1, %cst {dimension_numbers = #tpu.dot_dimension_numbers<[1], [0], [0], [1], [0, 0, 1, 1], [], []>} : vector<32x32xbf16>, vector<32x48xbf16>, vector<32x48xf32> -> vector<32x48xf32>
    %4 = arith.truncf %3 : vector<32x48xf32> to vector<32x48xbf16>
    %c0_3 = arith.constant 0 : index
    %c0_4 = arith.constant 0 : index
    %5 = vector.load %arg5[%c0_3, %c0_4] : memref<32x32xbf16, #tpu.memory_space<vmem>>, vector<32x32xbf16>
    %cst_5 = arith.constant dense<0.000000e+00> : vector<32x48xf32>
    %6 = tpu.matmul %5, %1, %cst_5 {dimension_numbers = #tpu.dot_dimension_numbers<[1], [0], [0], [1], [0, 0, 1, 1], [], []>} : vector<32x32xbf16>, vector<32x48xbf16>, vector<32x48xf32> -> vector<32x48xf32>
    %7 = arith.truncf %6 : vector<32x48xf32> to vector<32x48xbf16>
    %c0_6 = arith.constant 0 : index
    %c0_7 = arith.constant 0 : index
    %c0_8 = arith.constant 0 : index
    %8 = vector.load %arg2[%c0_6, %c0_7, %c0_8] : memref<3x48x128xbf16, #tpu.memory_space<vmem>>, vector<1x48x128xbf16>
    %9 = vector.shape_cast %8 : vector<1x48x128xbf16> to vector<48x128xbf16>
    %cst_9 = arith.constant dense<0.000000e+00> : vector<32x128xf32>
    %10 = tpu.matmul %4, %9, %cst_9 {dimension_numbers = #tpu.dot_dimension_numbers<[1], [0], [0], [1], [0, 0, 1, 1], [], []>} : vector<32x48xbf16>, vector<48x128xbf16>, vector<32x128xf32> -> vector<32x128xf32>
    %c1 = arith.constant 1 : index
    %c0_10 = arith.constant 0 : index
    %c0_11 = arith.constant 0 : index
    %11 = vector.load %arg2[%c1, %c0_10, %c0_11] : memref<3x48x128xbf16, #tpu.memory_space<vmem>>, vector<1x48x128xbf16>
    %12 = vector.shape_cast %11 : vector<1x48x128xbf16> to vector<48x128xbf16>
    %cst_12 = arith.constant dense<0.000000e+00> : vector<32x128xf32>
    %13 = tpu.matmul %1, %12, %cst_12 {dimension_numbers = #tpu.dot_dimension_numbers<[1], [0], [0], [1], [0, 0, 1, 1], [], []>} : vector<32x48xbf16>, vector<48x128xbf16>, vector<32x128xf32> -> vector<32x128xf32>
    %14 = arith.addf %10, %13 : vector<32x128xf32>
    %c2 = arith.constant 2 : index
    %c0_13 = arith.constant 0 : index
    %c0_14 = arith.constant 0 : index
    %15 = vector.load %arg2[%c2, %c0_13, %c0_14] : memref<3x48x128xbf16, #tpu.memory_space<vmem>>, vector<1x48x128xbf16>
    %16 = vector.shape_cast %15 : vector<1x48x128xbf16> to vector<48x128xbf16>
    %cst_15 = arith.constant dense<0.000000e+00> : vector<32x128xf32>
    %17 = tpu.matmul %7, %16, %cst_15 {dimension_numbers = #tpu.dot_dimension_numbers<[1], [0], [0], [1], [0, 0, 1, 1], [], []>} : vector<32x48xbf16>, vector<48x128xbf16>, vector<32x128xf32> -> vector<32x128xf32>
    %18 = arith.addf %14, %17 : vector<32x128xf32>
    %c0_16 = arith.constant 0 : index
    %c0_17 = arith.constant 0 : index
    %19 = vector.load %arg3[%c0_16, %c0_17] : memref<1x128xf32, #tpu.memory_space<vmem>>, vector<1x128xf32>
    %20 = vector.broadcast %19 : vector<1x128xf32> to vector<32x128xf32>
    %21 = arith.addf %18, %20 : vector<32x128xf32>
    %cst_18 = arith.constant 0.000000e+00 : f32
    %22 = vector.broadcast %cst_18 : f32 to vector<32x128xf32>
    %23 = arith.maximumf %21, %22 : vector<32x128xf32>
    %24 = vector.shape_cast %23 : vector<32x128xf32> to vector<2x16x128xf32>
    %c0_19 = arith.constant 0 : index
    %c0_20 = arith.constant 0 : index
    %c0_21 = arith.constant 0 : index
    %25 = vector.load %arg36[%c0_19, %c0_20, %c0_21] : memref<2x16x128xf32, #tpu.memory_space<vmem>>, vector<2x16x128xf32>
    tpu.vector_store %arg36[%c0_19, %c0_20, %c0_21], %24 {strides = array<i32>} : memref<2x16x128xf32, #tpu.memory_space<vmem>>, vector<2x16x128xf32>,
    %26 = arith.truncf %23 : vector<32x128xf32> to vector<32x128xbf16>
    %c0_22 = arith.constant 0 : index
    %c0_23 = arith.constant 0 : index
    %27 = vector.load %arg12[%c0_22, %c0_23] : memref<16x32xbf16, #tpu.memory_space<vmem>>, vector<16x32xbf16>
    %cst_24 = arith.constant dense<0.000000e+00> : vector<16x128xf32>
    %28 = tpu.matmul %27, %26, %cst_24 {dimension_numbers = #tpu.dot_dimension_numbers<[1], [0], [0], [1], [0, 0, 1, 1], [], []>} : vector<16x32xbf16>, vector<32x128xbf16>, vector<16x128xf32> -> vector<16x128xf32>
    %29 = arith.truncf %28 : vector<16x128xf32> to vector<16x128xbf16>
    %c0_25 = arith.constant 0 : index
    %c0_26 = arith.constant 0 : index
    %30 = vector.load %arg10[%c0_25, %c0_26] : memref<128x128xbf16, #tpu.memory_space<vmem>>, vector<128x128xbf16>
    %cst_27 = arith.constant dense<0.000000e+00> : vector<16x128xf32>
    %31 = tpu.matmul %29, %30, %cst_27 {dimension_numbers = #tpu.dot_dimension_numbers<[1], [0], [0], [1], [0, 0, 1, 1], [], []>} : vector<16x128xbf16>, vector<128x128xbf16>, vector<16x128xf32> -> vector<16x128xf32>
    %c0_28 = arith.constant 0 : index
    %c0_29 = arith.constant 0 : index
    %32 = vector.load %arg11[%c0_28, %c0_29] : memref<1x128xf32, #tpu.memory_space<vmem>>, vector<1x128xf32>
    %33 = vector.broadcast %32 : vector<1x128xf32> to vector<16x128xf32>
    %34 = arith.addf %31, %33 : vector<16x128xf32>
    %cst_30 = arith.constant 0.000000e+00 : f32
    %35 = vector.broadcast %cst_30 : f32 to vector<16x128xf32>
    %36 = arith.maximumf %34, %35 : vector<16x128xf32>
    %c0_31 = arith.constant 0 : index
    %c0_32 = arith.constant 0 : index
    %37 = vector.load %arg14[%c0_31, %c0_32] : memref<32x32xbf16, #tpu.memory_space<vmem>>, vector<32x32xbf16>
    %cst_33 = arith.constant dense<0.000000e+00> : vector<32x128xf32>
    %38 = tpu.matmul %37, %26, %cst_33 {dimension_numbers = #tpu.dot_dimension_numbers<[1], [0], [0], [1], [0, 0, 1, 1], [], []>} : vector<32x32xbf16>, vector<32x128xbf16>, vector<32x128xf32> -> vector<32x128xf32>
    %39 = arith.truncf %38 : vector<32x128xf32> to vector<32x128xbf16>
    %c0_34 = arith.constant 0 : index
    %c0_35 = arith.constant 0 : index
    %40 = vector.load %arg15[%c0_34, %c0_35] : memref<32x32xbf16, #tpu.memory_space<vmem>>, vector<32x32xbf16>
    %cst_36 = arith.constant dense<0.000000e+00> : vector<32x128xf32>
    %41 = tpu.matmul %40, %26, %cst_36 {dimension_numbers = #tpu.dot_dimension_numbers<[1], [0], [0], [1], [0, 0, 1, 1], [], []>} : vector<32x32xbf16>, vector<32x128xbf16>, vector<32x128xf32> -> vector<32x128xf32>
    %42 = arith.truncf %41 : vector<32x128xf32> to vector<32x128xbf16>
    %43 = tpu.concatenate %39, %26, %42 in 1 : vector<32x128xbf16>, vector<32x128xbf16>, vector<32x128xbf16> -> vector<32x384xbf16>
    %c0_37 = arith.constant 0 : index
    %c0_38 = arith.constant 0 : index
    %44 = vector.load %arg6[%c0_37, %c0_38] : memref<384x256xbf16, #tpu.memory_space<vmem>>, vector<384x256xbf16>
    %cst_39 = arith.constant dense<0.000000e+00> : vector<32x256xf32>
    %45 = tpu.matmul %43, %44, %cst_39 {dimension_numbers = #tpu.dot_dimension_numbers<[1], [0], [0], [1], [0, 0, 1, 1], [], []>} : vector<32x384xbf16>, vector<384x256xbf16>, vector<32x256xf32> -> vector<32x256xf32>
    %c0_40 = arith.constant 0 : index
    %c0_41 = arith.constant 0 : index
    %46 = vector.load %arg7[%c0_40, %c0_41] : memref<1x256xf32, #tpu.memory_space<vmem>>, vector<1x256xf32>
    %47 = vector.broadcast %46 : vector<1x256xf32> to vector<32x256xf32>
    %48 = arith.addf %45, %47 : vector<32x256xf32>
    %cst_42 = arith.constant 0.000000e+00 : f32
    %49 = vector.broadcast %cst_42 : f32 to vector<32x256xf32>
    %50 = arith.maximumf %48, %49 : vector<32x256xf32>
    %51 = arith.truncf %50 : vector<32x256xf32> to vector<32x256xbf16>
    %c0_43 = arith.constant 0 : index
    %c0_44 = arith.constant 0 : index
    %52 = vector.load %arg14[%c0_43, %c0_44] : memref<32x32xbf16, #tpu.memory_space<vmem>>, vector<32x32xbf16>
    %cst_45 = arith.constant dense<0.000000e+00> : vector<32x256xf32>
    %53 = tpu.matmul %52, %51, %cst_45 {dimension_numbers = #tpu.dot_dimension_numbers<[1], [0], [0], [1], [0, 0, 1, 1], [], []>} : vector<32x32xbf16>, vector<32x256xbf16>, vector<32x256xf32> -> vector<32x256xf32>
    %54 = arith.truncf %53 : vector<32x256xf32> to vector<32x256xbf16>
    %c0_46 = arith.constant 0 : index
    %c0_47 = arith.constant 0 : index
    %55 = vector.load %arg15[%c0_46, %c0_47] : memref<32x32xbf16, #tpu.memory_space<vmem>>, vector<32x32xbf16>
    %cst_48 = arith.constant dense<0.000000e+00> : vector<32x256xf32>
    %56 = tpu.matmul %55, %51, %cst_48 {dimension_numbers = #tpu.dot_dimension_numbers<[1], [0], [0], [1], [0, 0, 1, 1], [], []>} : vector<32x32xbf16>, vector<32x256xbf16>, vector<32x256xf32> -> vector<32x256xf32>
    %57 = arith.truncf %56 : vector<32x256xf32> to vector<32x256xbf16>
    %58 = tpu.concatenate %54, %51, %57 in 1 : vector<32x256xbf16>, vector<32x256xbf16>, vector<32x256xbf16> -> vector<32x768xbf16>
    %c0_49 = arith.constant 0 : index
    %c0_50 = arith.constant 0 : index
    %59 = vector.load %arg8[%c0_49, %c0_50] : memref<768x256xbf16, #tpu.memory_space<vmem>>, vector<768x256xbf16>
    %cst_51 = arith.constant dense<0.000000e+00> : vector<32x256xf32>
    %60 = tpu.matmul %58, %59, %cst_51 {dimension_numbers = #tpu.dot_dimension_numbers<[1], [0], [0], [1], [0, 0, 1, 1], [], []>} : vector<32x768xbf16>, vector<768x256xbf16>, vector<32x256xf32> -> vector<32x256xf32>
    %c0_52 = arith.constant 0 : index
    %c0_53 = arith.constant 0 : index
    %61 = vector.load %arg9[%c0_52, %c0_53] : memref<1x256xf32, #tpu.memory_space<vmem>>, vector<1x256xf32>
    %62 = vector.broadcast %61 : vector<1x256xf32> to vector<32x256xf32>
    %63 = arith.addf %60, %62 : vector<32x256xf32>
    %cst_54 = arith.constant 0.000000e+00 : f32
    %64 = vector.broadcast %cst_54 : f32 to vector<32x256xf32>
    %65 = arith.maximumf %63, %64 : vector<32x256xf32>
    %c0_55 = arith.constant 0 : index
    %c0_56 = arith.constant 0 : index
    %66 = vector.load %arg12[%c0_55, %c0_56] : memref<16x32xbf16, #tpu.memory_space<vmem>>, vector<16x32xbf16>
    %67 = arith.truncf %65 : vector<32x256xf32> to vector<32x256xbf16>
    %cst_57 = arith.constant dense<0.000000e+00> : vector<16x256xf32>
    %68 = tpu.matmul %66, %67, %cst_57 {dimension_numbers = #tpu.dot_dimension_numbers<[1], [0], [0], [1], [0, 0, 1, 1], [], []>} : vector<16x32xbf16>, vector<32x256xbf16>, vector<16x256xf32> -> vector<16x256xf32>
    %69 = arith.truncf %68 : vector<16x256xf32> to vector<16x256xbf16>
    %c0_58 = arith.constant 0 : index
    %c0_59 = arith.constant 0 : index
    %70 = vector.load %arg13[%c0_58, %c0_59] : memref<256x128xbf16, #tpu.memory_space<vmem>>, vector<256x128xbf16>
    %cst_60 = arith.constant dense<0.000000e+00> : vector<16x128xf32>
    %71 = tpu.matmul %69, %70, %cst_60 {dimension_numbers = #tpu.dot_dimension_numbers<[1], [0], [0], [1], [0, 0, 1, 1], [], []>} : vector<16x256xbf16>, vector<256x128xbf16>, vector<16x128xf32> -> vector<16x128xf32>
    %72 = arith.addf %71, %36 : vector<16x128xf32>
    %73 = vector.shape_cast %72 : vector<16x128xf32> to vector<2x8x128xf32>
    %c0_61 = arith.constant 0 : index
    %c0_62 = arith.constant 0 : index
    %c0_63 = arith.constant 0 : index
    %74 = vector.load %arg37[%c0_61, %c0_62, %c0_63] : memref<2x8x128xf32, #tpu.memory_space<vmem>>, vector<2x8x128xf32>
    tpu.vector_store %arg37[%c0_61, %c0_62, %c0_63], %73 {strides = array<i32>} : memref<2x8x128xf32, #tpu.memory_space<vmem>>, vector<2x8x128xf32>,
    %75 = arith.truncf %72 : vector<16x128xf32> to vector<16x128xbf16>
    %c0_64 = arith.constant 0 : index
    %c0_65 = arith.constant 0 : index
    %76 = vector.load %arg22[%c0_64, %c0_65] : memref<8x16xbf16, #tpu.memory_space<vmem>>, vector<8x16xbf16>
    %cst_66 = arith.constant dense<0.000000e+00> : vector<8x128xf32>
    %77 = tpu.matmul %76, %75, %cst_66 {dimension_numbers = #tpu.dot_dimension_numbers<[1], [0], [0], [1], [0, 0, 1, 1], [], []>} : vector<8x16xbf16>, vector<16x128xbf16>, vector<8x128xf32> -> vector<8x128xf32>
    %78 = arith.truncf %77 : vector<8x128xf32> to vector<8x128xbf16>
    %c0_67 = arith.constant 0 : index
    %c0_68 = arith.constant 0 : index
    %79 = vector.load %arg20[%c0_67, %c0_68] : memref<128x128xbf16, #tpu.memory_space<vmem>>, vector<128x128xbf16>
    %cst_69 = arith.constant dense<0.000000e+00> : vector<8x128xf32>
    %80 = tpu.matmul %78, %79, %cst_69 {dimension_numbers = #tpu.dot_dimension_numbers<[1], [0], [0], [1], [0, 0, 1, 1], [], []>} : vector<8x128xbf16>, vector<128x128xbf16>, vector<8x128xf32> -> vector<8x128xf32>
    %c0_70 = arith.constant 0 : index
    %c0_71 = arith.constant 0 : index
    %81 = vector.load %arg21[%c0_70, %c0_71] : memref<1x128xf32, #tpu.memory_space<vmem>>, vector<1x128xf32>
    %82 = vector.broadcast %81 : vector<1x128xf32> to vector<8x128xf32>
    %83 = arith.addf %80, %82 : vector<8x128xf32>
    %cst_72 = arith.constant 0.000000e+00 : f32
    %84 = vector.broadcast %cst_72 : f32 to vector<8x128xf32>
    %85 = arith.maximumf %83, %84 : vector<8x128xf32>
    %c0_73 = arith.constant 0 : index
    %c0_74 = arith.constant 0 : index
    %86 = vector.load %arg24[%c0_73, %c0_74] : memref<16x16xbf16, #tpu.memory_space<vmem>>, vector<16x16xbf16>
    %cst_75 = arith.constant dense<0.000000e+00> : vector<16x128xf32>
    %87 = tpu.matmul %86, %75, %cst_75 {dimension_numbers = #tpu.dot_dimension_numbers<[1], [0], [0], [1], [0, 0, 1, 1], [], []>} : vector<16x16xbf16>, vector<16x128xbf16>, vector<16x128xf32> -> vector<16x128xf32>
    %88 = arith.truncf %87 : vector<16x128xf32> to vector<16x128xbf16>
    %c0_76 = arith.constant 0 : index
    %c0_77 = arith.constant 0 : index
    %89 = vector.load %arg25[%c0_76, %c0_77] : memref<16x16xbf16, #tpu.memory_space<vmem>>, vector<16x16xbf16>
    %cst_78 = arith.constant dense<0.000000e+00> : vector<16x128xf32>
    %90 = tpu.matmul %89, %75, %cst_78 {dimension_numbers = #tpu.dot_dimension_numbers<[1], [0], [0], [1], [0, 0, 1, 1], [], []>} : vector<16x16xbf16>, vector<16x128xbf16>, vector<16x128xf32> -> vector<16x128xf32>
    %91 = arith.truncf %90 : vector<16x128xf32> to vector<16x128xbf16>
    %92 = tpu.concatenate %88, %75, %91 in 1 : vector<16x128xbf16>, vector<16x128xbf16>, vector<16x128xbf16> -> vector<16x384xbf16>
    %c0_79 = arith.constant 0 : index
    %c0_80 = arith.constant 0 : index
    %93 = vector.load %arg16[%c0_79, %c0_80] : memref<384x256xbf16, #tpu.memory_space<vmem>>, vector<384x256xbf16>
    %cst_81 = arith.constant dense<0.000000e+00> : vector<16x256xf32>
    %94 = tpu.matmul %92, %93, %cst_81 {dimension_numbers = #tpu.dot_dimension_numbers<[1], [0], [0], [1], [0, 0, 1, 1], [], []>} : vector<16x384xbf16>, vector<384x256xbf16>, vector<16x256xf32> -> vector<16x256xf32>
    %c0_82 = arith.constant 0 : index
    %c0_83 = arith.constant 0 : index
    %95 = vector.load %arg17[%c0_82, %c0_83] : memref<1x256xf32, #tpu.memory_space<vmem>>, vector<1x256xf32>
    %96 = vector.broadcast %95 : vector<1x256xf32> to vector<16x256xf32>
    %97 = arith.addf %94, %96 : vector<16x256xf32>
    %cst_84 = arith.constant 0.000000e+00 : f32
    %98 = vector.broadcast %cst_84 : f32 to vector<16x256xf32>
    %99 = arith.maximumf %97, %98 : vector<16x256xf32>
    %100 = arith.truncf %99 : vector<16x256xf32> to vector<16x256xbf16>
    %c0_85 = arith.constant 0 : index
    %c0_86 = arith.constant 0 : index
    %101 = vector.load %arg24[%c0_85, %c0_86] : memref<16x16xbf16, #tpu.memory_space<vmem>>, vector<16x16xbf16>
    %cst_87 = arith.constant dense<0.000000e+00> : vector<16x256xf32>
    %102 = tpu.matmul %101, %100, %cst_87 {dimension_numbers = #tpu.dot_dimension_numbers<[1], [0], [0], [1], [0, 0, 1, 1], [], []>} : vector<16x16xbf16>, vector<16x256xbf16>, vector<16x256xf32> -> vector<16x256xf32>
    %103 = arith.truncf %102 : vector<16x256xf32> to vector<16x256xbf16>
    %c0_88 = arith.constant 0 : index
    %c0_89 = arith.constant 0 : index
    %104 = vector.load %arg25[%c0_88, %c0_89] : memref<16x16xbf16, #tpu.memory_space<vmem>>, vector<16x16xbf16>
    %cst_90 = arith.constant dense<0.000000e+00> : vector<16x256xf32>
    %105 = tpu.matmul %104, %100, %cst_90 {dimension_numbers = #tpu.dot_dimension_numbers<[1], [0], [0], [1], [0, 0, 1, 1], [], []>} : vector<16x16xbf16>, vector<16x256xbf16>, vector<16x256xf32> -> vector<16x256xf32>
    %106 = arith.truncf %105 : vector<16x256xf32> to vector<16x256xbf16>
    %107 = tpu.concatenate %103, %100, %106 in 1 : vector<16x256xbf16>, vector<16x256xbf16>, vector<16x256xbf16> -> vector<16x768xbf16>
    %c0_91 = arith.constant 0 : index
    %c0_92 = arith.constant 0 : index
    %108 = vector.load %arg18[%c0_91, %c0_92] : memref<768x256xbf16, #tpu.memory_space<vmem>>, vector<768x256xbf16>
    %cst_93 = arith.constant dense<0.000000e+00> : vector<16x256xf32>
    %109 = tpu.matmul %107, %108, %cst_93 {dimension_numbers = #tpu.dot_dimension_numbers<[1], [0], [0], [1], [0, 0, 1, 1], [], []>} : vector<16x768xbf16>, vector<768x256xbf16>, vector<16x256xf32> -> vector<16x256xf32>
    %c0_94 = arith.constant 0 : index
    %c0_95 = arith.constant 0 : index
    %110 = vector.load %arg19[%c0_94, %c0_95] : memref<1x256xf32, #tpu.memory_space<vmem>>, vector<1x256xf32>
    %111 = vector.broadcast %110 : vector<1x256xf32> to vector<16x256xf32>
    %112 = arith.addf %109, %111 : vector<16x256xf32>
    %cst_96 = arith.constant 0.000000e+00 : f32
    %113 = vector.broadcast %cst_96 : f32 to vector<16x256xf32>
    %114 = arith.maximumf %112, %113 : vector<16x256xf32>
    %c0_97 = arith.constant 0 : index
    %c0_98 = arith.constant 0 : index
    %115 = vector.load %arg22[%c0_97, %c0_98] : memref<8x16xbf16, #tpu.memory_space<vmem>>, vector<8x16xbf16>
    %116 = arith.truncf %114 : vector<16x256xf32> to vector<16x256xbf16>
    %cst_99 = arith.constant dense<0.000000e+00> : vector<8x256xf32>
    %117 = tpu.matmul %115, %116, %cst_99 {dimension_numbers = #tpu.dot_dimension_numbers<[1], [0], [0], [1], [0, 0, 1, 1], [], []>} : vector<8x16xbf16>, vector<16x256xbf16>, vector<8x256xf32> -> vector<8x256xf32>
    %118 = arith.truncf %117 : vector<8x256xf32> to vector<8x256xbf16>
    %c0_100 = arith.constant 0 : index
    %c0_101 = arith.constant 0 : index
    %119 = vector.load %arg23[%c0_100, %c0_101] : memref<256x128xbf16, #tpu.memory_space<vmem>>, vector<256x128xbf16>
    %cst_102 = arith.constant dense<0.000000e+00> : vector<8x128xf32>
    %120 = tpu.matmul %118, %119, %cst_102 {dimension_numbers = #tpu.dot_dimension_numbers<[1], [0], [0], [1], [0, 0, 1, 1], [], []>} : vector<8x256xbf16>, vector<256x128xbf16>, vector<8x128xf32> -> vector<8x128xf32>
    %121 = arith.addf %120, %85 : vector<8x128xf32>
    %122 = vector.extract_strided_slice %121 {offsets = [0, 0], sizes = [4, 128], strides = [1, 1]} : vector<8x128xf32> to vector<4x128xf32>
    %c0_103 = arith.constant 0 : index
    %c0_104 = arith.constant 0 : index
    %c0_105 = arith.constant 0 : index
    %123 = vector.load %arg38[%c0_103, %c0_104, %c0_105] : memref<2x4x128xf32, #tpu.memory_space<vmem>>, vector<1x4x128xf32>
    %124 = vector.shape_cast %123 : vector<1x4x128xf32> to vector<4x128xf32>
    %125 = vector.shape_cast %122 : vector<4x128xf32> to vector<1x4x128xf32>
    tpu.vector_store %arg38[%c0_103, %c0_104, %c0_105], %125 {strides = array<i32>} : memref<2x4x128xf32, #tpu.memory_space<vmem>>, vector<1x4x128xf32>,
    %126 = vector.extract_strided_slice %121 {offsets = [4, 0], sizes = [4, 128], strides = [1, 1]} : vector<8x128xf32> to vector<4x128xf32>
    %c1_106 = arith.constant 1 : index
    %c0_107 = arith.constant 0 : index
    %c0_108 = arith.constant 0 : index
    %127 = vector.load %arg38[%c1_106, %c0_107, %c0_108] : memref<2x4x128xf32, #tpu.memory_space<vmem>>, vector<1x4x128xf32>
    %128 = vector.shape_cast %127 : vector<1x4x128xf32> to vector<4x128xf32>
    %129 = vector.shape_cast %126 : vector<4x128xf32> to vector<1x4x128xf32>
    tpu.vector_store %arg38[%c1_106, %c0_107, %c0_108], %129 {strides = array<i32>} : memref<2x4x128xf32, #tpu.memory_space<vmem>>, vector<1x4x128xf32>,
    %130 = arith.truncf %121 : vector<8x128xf32> to vector<8x128xbf16>
    %c0_109 = arith.constant 0 : index
    %c0_110 = arith.constant 0 : index
    %131 = vector.load %arg32[%c0_109, %c0_110] : memref<4x8xbf16, #tpu.memory_space<vmem>>, vector<4x8xbf16>
    %cst_111 = arith.constant dense<0.000000e+00> : vector<4x128xf32>
    %132 = tpu.matmul %131, %130, %cst_111 {dimension_numbers = #tpu.dot_dimension_numbers<[1], [0], [0], [1], [0, 0, 1, 1], [], []>} : vector<4x8xbf16>, vector<8x128xbf16>, vector<4x128xf32> -> vector<4x128xf32>
    %133 = arith.truncf %132 : vector<4x128xf32> to vector<4x128xbf16>
    %c0_112 = arith.constant 0 : index
    %c0_113 = arith.constant 0 : index
    %134 = vector.load %arg30[%c0_112, %c0_113] : memref<128x64xbf16, #tpu.memory_space<vmem>>, vector<128x64xbf16>
    %cst_114 = arith.constant dense<0.000000e+00> : vector<4x64xf32>
    %135 = tpu.matmul %133, %134, %cst_114 {dimension_numbers = #tpu.dot_dimension_numbers<[1], [0], [0], [1], [0, 0, 1, 1], [], []>} : vector<4x128xbf16>, vector<128x64xbf16>, vector<4x64xf32> -> vector<4x64xf32>
    %c0_115 = arith.constant 0 : index
    %c0_116 = arith.constant 0 : index
    %136 = vector.load %arg31[%c0_115, %c0_116] : memref<1x64xf32, #tpu.memory_space<vmem>>, vector<1x64xf32>
    %137 = vector.broadcast %136 : vector<1x64xf32> to vector<4x64xf32>
    %138 = arith.addf %135, %137 : vector<4x64xf32>
    %cst_117 = arith.constant 0.000000e+00 : f32
    %139 = vector.broadcast %cst_117 : f32 to vector<4x64xf32>
    %140 = arith.maximumf %138, %139 : vector<4x64xf32>
    %c0_118 = arith.constant 0 : index
    %c0_119 = arith.constant 0 : index
    %141 = vector.load %arg34[%c0_118, %c0_119] : memref<8x8xbf16, #tpu.memory_space<vmem>>, vector<8x8xbf16>
    %cst_120 = arith.constant dense<0.000000e+00> : vector<8x128xf32>
    %142 = tpu.matmul %141, %130, %cst_120 {dimension_numbers = #tpu.dot_dimension_numbers<[1], [0], [0], [1], [0, 0, 1, 1], [], []>} : vector<8x8xbf16>, vector<8x128xbf16>, vector<8x128xf32> -> vector<8x128xf32>
    %143 = arith.truncf %142 : vector<8x128xf32> to vector<8x128xbf16>
    %c0_121 = arith.constant 0 : index
    %c0_122 = arith.constant 0 : index
    %144 = vector.load %arg35[%c0_121, %c0_122] : memref<8x8xbf16, #tpu.memory_space<vmem>>, vector<8x8xbf16>
    %cst_123 = arith.constant dense<0.000000e+00> : vector<8x128xf32>
    %145 = tpu.matmul %144, %130, %cst_123 {dimension_numbers = #tpu.dot_dimension_numbers<[1], [0], [0], [1], [0, 0, 1, 1], [], []>} : vector<8x8xbf16>, vector<8x128xbf16>, vector<8x128xf32> -> vector<8x128xf32>
    %146 = arith.truncf %145 : vector<8x128xf32> to vector<8x128xbf16>
    %147 = tpu.concatenate %143, %130, %146 in 1 : vector<8x128xbf16>, vector<8x128xbf16>, vector<8x128xbf16> -> vector<8x384xbf16>
    %c0_124 = arith.constant 0 : index
    %c0_125 = arith.constant 0 : index
    %148 = vector.load %arg26[%c0_124, %c0_125] : memref<384x128xbf16, #tpu.memory_space<vmem>>, vector<384x128xbf16>
    %cst_126 = arith.constant dense<0.000000e+00> : vector<8x128xf32>
    %149 = tpu.matmul %147, %148, %cst_126 {dimension_numbers = #tpu.dot_dimension_numbers<[1], [0], [0], [1], [0, 0, 1, 1], [], []>} : vector<8x384xbf16>, vector<384x128xbf16>, vector<8x128xf32> -> vector<8x128xf32>
    %c0_127 = arith.constant 0 : index
    %c0_128 = arith.constant 0 : index
    %150 = vector.load %arg27[%c0_127, %c0_128] : memref<1x128xf32, #tpu.memory_space<vmem>>, vector<1x128xf32>
    %151 = vector.broadcast %150 : vector<1x128xf32> to vector<8x128xf32>
    %152 = arith.addf %149, %151 : vector<8x128xf32>
    %cst_129 = arith.constant 0.000000e+00 : f32
    %153 = vector.broadcast %cst_129 : f32 to vector<8x128xf32>
    %154 = arith.maximumf %152, %153 : vector<8x128xf32>
    %155 = arith.truncf %154 : vector<8x128xf32> to vector<8x128xbf16>
    %c0_130 = arith.constant 0 : index
    %c0_131 = arith.constant 0 : index
    %156 = vector.load %arg34[%c0_130, %c0_131] : memref<8x8xbf16, #tpu.memory_space<vmem>>, vector<8x8xbf16>
    %cst_132 = arith.constant dense<0.000000e+00> : vector<8x128xf32>
    %157 = tpu.matmul %156, %155, %cst_132 {dimension_numbers = #tpu.dot_dimension_numbers<[1], [0], [0], [1], [0, 0, 1, 1], [], []>} : vector<8x8xbf16>, vector<8x128xbf16>, vector<8x128xf32> -> vector<8x128xf32>
    %158 = arith.truncf %157 : vector<8x128xf32> to vector<8x128xbf16>
    %c0_133 = arith.constant 0 : index
    %c0_134 = arith.constant 0 : index
    %159 = vector.load %arg35[%c0_133, %c0_134] : memref<8x8xbf16, #tpu.memory_space<vmem>>, vector<8x8xbf16>
    %cst_135 = arith.constant dense<0.000000e+00> : vector<8x128xf32>
    %160 = tpu.matmul %159, %155, %cst_135 {dimension_numbers = #tpu.dot_dimension_numbers<[1], [0], [0], [1], [0, 0, 1, 1], [], []>} : vector<8x8xbf16>, vector<8x128xbf16>, vector<8x128xf32> -> vector<8x128xf32>
    %161 = arith.truncf %160 : vector<8x128xf32> to vector<8x128xbf16>
    %162 = tpu.concatenate %158, %155, %161 in 1 : vector<8x128xbf16>, vector<8x128xbf16>, vector<8x128xbf16> -> vector<8x384xbf16>
    %c0_136 = arith.constant 0 : index
    %c0_137 = arith.constant 0 : index
    %163 = vector.load %arg28[%c0_136, %c0_137] : memref<384x128xbf16, #tpu.memory_space<vmem>>, vector<384x128xbf16>
    %cst_138 = arith.constant dense<0.000000e+00> : vector<8x128xf32>
    %164 = tpu.matmul %162, %163, %cst_138 {dimension_numbers = #tpu.dot_dimension_numbers<[1], [0], [0], [1], [0, 0, 1, 1], [], []>} : vector<8x384xbf16>, vector<384x128xbf16>, vector<8x128xf32> -> vector<8x128xf32>
    %c0_139 = arith.constant 0 : index
    %c0_140 = arith.constant 0 : index
    %165 = vector.load %arg29[%c0_139, %c0_140] : memref<1x128xf32, #tpu.memory_space<vmem>>, vector<1x128xf32>
    %166 = vector.broadcast %165 : vector<1x128xf32> to vector<8x128xf32>
    %167 = arith.addf %164, %166 : vector<8x128xf32>
    %cst_141 = arith.constant 0.000000e+00 : f32
    %168 = vector.broadcast %cst_141 : f32 to vector<8x128xf32>
    %169 = arith.maximumf %167, %168 : vector<8x128xf32>
    %c0_142 = arith.constant 0 : index
    %c0_143 = arith.constant 0 : index
    %170 = vector.load %arg32[%c0_142, %c0_143] : memref<4x8xbf16, #tpu.memory_space<vmem>>, vector<4x8xbf16>
    %171 = arith.truncf %169 : vector<8x128xf32> to vector<8x128xbf16>
    %cst_144 = arith.constant dense<0.000000e+00> : vector<4x128xf32>
    %172 = tpu.matmul %170, %171, %cst_144 {dimension_numbers = #tpu.dot_dimension_numbers<[1], [0], [0], [1], [0, 0, 1, 1], [], []>} : vector<4x8xbf16>, vector<8x128xbf16>, vector<4x128xf32> -> vector<4x128xf32>
    %173 = arith.truncf %172 : vector<4x128xf32> to vector<4x128xbf16>
    %c0_145 = arith.constant 0 : index
    %c0_146 = arith.constant 0 : index
    %174 = vector.load %arg33[%c0_145, %c0_146] : memref<128x64xbf16, #tpu.memory_space<vmem>>, vector<128x64xbf16>
    %cst_147 = arith.constant dense<0.000000e+00> : vector<4x64xf32>
    %175 = tpu.matmul %173, %174, %cst_147 {dimension_numbers = #tpu.dot_dimension_numbers<[1], [0], [0], [1], [0, 0, 1, 1], [], []>} : vector<4x128xbf16>, vector<128x64xbf16>, vector<4x64xf32> -> vector<4x64xf32>
    %176 = arith.addf %175, %140 : vector<4x64xf32>
    %177 = vector.extract_strided_slice %176 {offsets = [0, 0], sizes = [2, 64], strides = [1, 1]} : vector<4x64xf32> to vector<2x64xf32>
    %c0_148 = arith.constant 0 : index
    %c0_149 = arith.constant 0 : index
    %c0_150 = arith.constant 0 : index
    %178 = vector.load %arg39[%c0_148, %c0_149, %c0_150] : memref<2x2x64xf32, #tpu.memory_space<vmem>>, vector<1x2x64xf32>
    %179 = vector.shape_cast %178 : vector<1x2x64xf32> to vector<2x64xf32>
    %180 = vector.shape_cast %177 : vector<2x64xf32> to vector<1x2x64xf32>
    tpu.vector_store %arg39[%c0_148, %c0_149, %c0_150], %180 {strides = array<i32>} : memref<2x2x64xf32, #tpu.memory_space<vmem>>, vector<1x2x64xf32>,
    %181 = vector.extract_strided_slice %176 {offsets = [2, 0], sizes = [2, 64], strides = [1, 1]} : vector<4x64xf32> to vector<2x64xf32>
    %c1_151 = arith.constant 1 : index
    %c0_152 = arith.constant 0 : index
    %c0_153 = arith.constant 0 : index
    %182 = vector.load %arg39[%c1_151, %c0_152, %c0_153] : memref<2x2x64xf32, #tpu.memory_space<vmem>>, vector<1x2x64xf32>
    %183 = vector.shape_cast %182 : vector<1x2x64xf32> to vector<2x64xf32>
    %184 = vector.shape_cast %181 : vector<2x64xf32> to vector<1x2x64xf32>
    tpu.vector_store %arg39[%c1_151, %c0_152, %c0_153], %184 {strides = array<i32>} : memref<2x2x64xf32, #tpu.memory_space<vmem>>, vector<1x2x64xf32>,
    return
  }
  func.func @transform_0(%arg0: i32) -> (i32, i32) {
    %c0_i32 = arith.constant 0 : i32
    %c0_i32_0 = arith.constant 0 : i32
    return %arg0, %c0_i32 : i32, i32
  }
  func.func @transform_1(%arg0: i32) -> (i32, i32, i32) {
    %c0_i32 = arith.constant 0 : i32
    %c0_i32_0 = arith.constant 0 : i32
    %c0_i32_1 = arith.constant 0 : i32
    %c0_i32_2 = arith.constant 0 : i32
    return %c0_i32, %c0_i32_0, %c0_i32_1 : i32, i32, i32
  }
  func.func @transform_2(%arg0: i32) -> (i32, i32) {
    %c0_i32 = arith.constant 0 : i32
    %c0_i32_0 = arith.constant 0 : i32
    %c0_i32_1 = arith.constant 0 : i32
    return %c0_i32, %c0_i32_0 : i32, i32
  }
  func.func @transform_3(%arg0: i32) -> (i32, i32) {
    %c0_i32 = arith.constant 0 : i32
    %c0_i32_0 = arith.constant 0 : i32
    %c0_i32_1 = arith.constant 0 : i32
    return %c0_i32, %c0_i32_0 : i32, i32
  }
  func.func @transform_4(%arg0: i32) -> (i32, i32) {
    %c0_i32 = arith.constant 0 : i32
    %c0_i32_0 = arith.constant 0 : i32
    %c0_i32_1 = arith.constant 0 : i32
    return %c0_i32, %c0_i32_0 : i32, i32
  }
  func.func @transform_5(%arg0: i32) -> (i32, i32) {
    %c0_i32 = arith.constant 0 : i32
    %c0_i32_0 = arith.constant 0 : i32
    %c0_i32_1 = arith.constant 0 : i32
    return %c0_i32, %c0_i32_0 : i32, i32
  }
  func.func @transform_6(%arg0: i32) -> (i32, i32) {
    %c0_i32 = arith.constant 0 : i32
    %c0_i32_0 = arith.constant 0 : i32
    %c0_i32_1 = arith.constant 0 : i32
    return %c0_i32, %c0_i32_0 : i32, i32
  }
  func.func @transform_7(%arg0: i32) -> (i32, i32) {
    %c0_i32 = arith.constant 0 : i32
    %c0_i32_0 = arith.constant 0 : i32
    %c0_i32_1 = arith.constant 0 : i32
    return %c0_i32, %c0_i32_0 : i32, i32
  }
  func.func @transform_8(%arg0: i32) -> (i32, i32) {
    %c0_i32 = arith.constant 0 : i32
    %c0_i32_0 = arith.constant 0 : i32
    %c0_i32_1 = arith.constant 0 : i32
    return %c0_i32, %c0_i32_0 : i32, i32
  }
  func.func @transform_9(%arg0: i32) -> (i32, i32) {
    %c0_i32 = arith.constant 0 : i32
    %c0_i32_0 = arith.constant 0 : i32
    %c0_i32_1 = arith.constant 0 : i32
    return %c0_i32, %c0_i32_0 : i32, i32
  }
  func.func @transform_10(%arg0: i32) -> (i32, i32) {
    %c0_i32 = arith.constant 0 : i32
    %c0_i32_0 = arith.constant 0 : i32
    %c0_i32_1 = arith.constant 0 : i32
    return %c0_i32, %c0_i32_0 : i32, i32
  }
  func.func @transform_11(%arg0: i32) -> (i32, i32) {
    %c0_i32 = arith.constant 0 : i32
    %c0_i32_0 = arith.constant 0 : i32
    %c0_i32_1 = arith.constant 0 : i32
    return %c0_i32, %c0_i32_0 : i32, i32
  }
  func.func @transform_12(%arg0: i32) -> (i32, i32) {
    %c0_i32 = arith.constant 0 : i32
    %c0_i32_0 = arith.constant 0 : i32
    %c0_i32_1 = arith.constant 0 : i32
    return %c0_i32, %c0_i32_0 : i32, i32
  }
  func.func @transform_13(%arg0: i32) -> (i32, i32) {
    %c0_i32 = arith.constant 0 : i32
    %c0_i32_0 = arith.constant 0 : i32
    %c0_i32_1 = arith.constant 0 : i32
    return %c0_i32, %c0_i32_0 : i32, i32
  }
  func.func @transform_14(%arg0: i32) -> (i32, i32) {
    %c0_i32 = arith.constant 0 : i32
    %c0_i32_0 = arith.constant 0 : i32
    %c0_i32_1 = arith.constant 0 : i32
    return %c0_i32, %c0_i32_0 : i32, i32
  }
  func.func @transform_15(%arg0: i32) -> (i32, i32) {
    %c0_i32 = arith.constant 0 : i32
    %c0_i32_0 = arith.constant 0 : i32
    %c0_i32_1 = arith.constant 0 : i32
    return %c0_i32, %c0_i32_0 : i32, i32
  }
  func.func @transform_16(%arg0: i32) -> (i32, i32) {
    %c0_i32 = arith.constant 0 : i32
    %c0_i32_0 = arith.constant 0 : i32
    %c0_i32_1 = arith.constant 0 : i32
    return %c0_i32, %c0_i32_0 : i32, i32
  }
  func.func @transform_17(%arg0: i32) -> (i32, i32) {
    %c0_i32 = arith.constant 0 : i32
    %c0_i32_0 = arith.constant 0 : i32
    %c0_i32_1 = arith.constant 0 : i32
    return %c0_i32, %c0_i32_0 : i32, i32
  }
  func.func @transform_18(%arg0: i32) -> (i32, i32) {
    %c0_i32 = arith.constant 0 : i32
    %c0_i32_0 = arith.constant 0 : i32
    %c0_i32_1 = arith.constant 0 : i32
    return %c0_i32, %c0_i32_0 : i32, i32
  }
  func.func @transform_19(%arg0: i32) -> (i32, i32) {
    %c0_i32 = arith.constant 0 : i32
    %c0_i32_0 = arith.constant 0 : i32
    %c0_i32_1 = arith.constant 0 : i32
    return %c0_i32, %c0_i32_0 : i32, i32
  }
  func.func @transform_20(%arg0: i32) -> (i32, i32) {
    %c0_i32 = arith.constant 0 : i32
    %c0_i32_0 = arith.constant 0 : i32
    %c0_i32_1 = arith.constant 0 : i32
    return %c0_i32, %c0_i32_0 : i32, i32
  }
  func.func @transform_21(%arg0: i32) -> (i32, i32) {
    %c0_i32 = arith.constant 0 : i32
    %c0_i32_0 = arith.constant 0 : i32
    %c0_i32_1 = arith.constant 0 : i32
    return %c0_i32, %c0_i32_0 : i32, i32
  }
  func.func @transform_22(%arg0: i32) -> (i32, i32) {
    %c0_i32 = arith.constant 0 : i32
    %c0_i32_0 = arith.constant 0 : i32
    %c0_i32_1 = arith.constant 0 : i32
    return %c0_i32, %c0_i32_0 : i32, i32
  }
  func.func @transform_23(%arg0: i32) -> (i32, i32) {
    %c0_i32 = arith.constant 0 : i32
    %c0_i32_0 = arith.constant 0 : i32
    %c0_i32_1 = arith.constant 0 : i32
    return %c0_i32, %c0_i32_0 : i32, i32
  }
  func.func @transform_24(%arg0: i32) -> (i32, i32) {
    %c0_i32 = arith.constant 0 : i32
    %c0_i32_0 = arith.constant 0 : i32
    %c0_i32_1 = arith.constant 0 : i32
    return %c0_i32, %c0_i32_0 : i32, i32
  }
  func.func @transform_25(%arg0: i32) -> (i32, i32) {
    %c0_i32 = arith.constant 0 : i32
    %c0_i32_0 = arith.constant 0 : i32
    %c0_i32_1 = arith.constant 0 : i32
    return %c0_i32, %c0_i32_0 : i32, i32
  }
  func.func @transform_26(%arg0: i32) -> (i32, i32) {
    %c0_i32 = arith.constant 0 : i32
    %c0_i32_0 = arith.constant 0 : i32
    %c0_i32_1 = arith.constant 0 : i32
    return %c0_i32, %c0_i32_0 : i32, i32
  }
  func.func @transform_27(%arg0: i32) -> (i32, i32) {
    %c0_i32 = arith.constant 0 : i32
    %c0_i32_0 = arith.constant 0 : i32
    %c0_i32_1 = arith.constant 0 : i32
    return %c0_i32, %c0_i32_0 : i32, i32
  }
  func.func @transform_28(%arg0: i32) -> (i32, i32) {
    %c0_i32 = arith.constant 0 : i32
    %c0_i32_0 = arith.constant 0 : i32
    %c0_i32_1 = arith.constant 0 : i32
    return %c0_i32, %c0_i32_0 : i32, i32
  }
  func.func @transform_29(%arg0: i32) -> (i32, i32) {
    %c0_i32 = arith.constant 0 : i32
    %c0_i32_0 = arith.constant 0 : i32
    %c0_i32_1 = arith.constant 0 : i32
    return %c0_i32, %c0_i32_0 : i32, i32
  }
  func.func @transform_30(%arg0: i32) -> (i32, i32) {
    %c0_i32 = arith.constant 0 : i32
    %c0_i32_0 = arith.constant 0 : i32
    %c0_i32_1 = arith.constant 0 : i32
    return %c0_i32, %c0_i32_0 : i32, i32
  }
  func.func @transform_31(%arg0: i32) -> (i32, i32) {
    %c0_i32 = arith.constant 0 : i32
    %c0_i32_0 = arith.constant 0 : i32
    %c0_i32_1 = arith.constant 0 : i32
    return %c0_i32, %c0_i32_0 : i32, i32
  }
  func.func @transform_32(%arg0: i32) -> (i32, i32) {
    %c0_i32 = arith.constant 0 : i32
    %c0_i32_0 = arith.constant 0 : i32
    %c0_i32_1 = arith.constant 0 : i32
    return %c0_i32, %c0_i32_0 : i32, i32
  }
  func.func @transform_33(%arg0: i32) -> (i32, i32) {
    %c0_i32 = arith.constant 0 : i32
    %c0_i32_0 = arith.constant 0 : i32
    %c0_i32_1 = arith.constant 0 : i32
    return %c0_i32, %c0_i32_0 : i32, i32
  }
  func.func @transform_34(%arg0: i32) -> (i32, i32) {
    %c0_i32 = arith.constant 0 : i32
    %c0_i32_0 = arith.constant 0 : i32
    %c0_i32_1 = arith.constant 0 : i32
    return %c0_i32, %c0_i32_0 : i32, i32
  }
  func.func @transform_35(%arg0: i32) -> (i32, i32, i32) {
    %c0_i32 = arith.constant 0 : i32
    %c0_i32_0 = arith.constant 0 : i32
    %c0_i32_1 = arith.constant 0 : i32
    return %arg0, %c0_i32, %c0_i32_0 : i32, i32, i32
  }
  func.func @transform_36(%arg0: i32) -> (i32, i32, i32) {
    %c0_i32 = arith.constant 0 : i32
    %c0_i32_0 = arith.constant 0 : i32
    %c0_i32_1 = arith.constant 0 : i32
    return %arg0, %c0_i32, %c0_i32_0 : i32, i32, i32
  }
  func.func @transform_37(%arg0: i32) -> (i32, i32, i32) {
    %c0_i32 = arith.constant 0 : i32
    %c0_i32_0 = arith.constant 0 : i32
    %c0_i32_1 = arith.constant 0 : i32
    return %arg0, %c0_i32, %c0_i32_0 : i32, i32, i32
  }
  func.func @transform_38(%arg0: i32) -> (i32, i32, i32) {
    %c0_i32 = arith.constant 0 : i32
    %c0_i32_0 = arith.constant 0 : i32
    %c0_i32_1 = arith.constant 0 : i32
    return %arg0, %c0_i32, %c0_i32_0 : i32, i32, i32
  }
}

</mosaic_0001>

<bundles_post_ra>
// kernel: forward.1
= control target key start
LH: loop header
LB: loop body
LE: loop exit
PB: predicated region body
PF: predicated region fallthrough
CT: control target
= control target key end

     0   :  { %s9567_s6 = smov 1   ;;  %s9568_s10 = smov 2   ;;  %s10505_s0 = inlined_call_operand.smem [shape: u32[39], index: -1, kind: input, shape index: {}] }
   0x1   :  { %s9646_s5 = sld [smem:[%s10505_s0]]   ;;  %s9569_s14 = smov 3  }
   0x2   :  { %s9651_s9 = sld [smem:[%s10505_s0 + %s9567_s6]]   ;;  %s9570_s18 = smov 4  }
   0x3   :  { %s9656_s13 = sld [smem:[%s10505_s0 + %s9568_s10]]   ;;  %s9571_s22 = smov 5  }
   0x4   :  { %s9661_s17 = sld [smem:[%s10505_s0 + %s9569_s14]]   ;;  %s9572_s26 = smov 6  }
   0x5   :  { %s9666_s21 = sld [smem:[%s10505_s0 + %s9570_s18]]   ;;  %s9573_s30 = smov 7  }
   0x6   :  { %s9671_s25 = sld [smem:[%s10505_s0 + %s9571_s22]]   ;;  %s9574_s4 = smov 8  }
   0x7   :  { %10520 = sst [smem:[#allocation56_spill]] %s9646_s5  ;;  %s9575_s10 = smov 9  }
   0x8   :  { %10521 = sst [smem:[#allocation57_spill]] %s9651_s9  ;;  %s9576_s15 = smov 10  }
   0x9   :  { %10522 = sst [smem:[#allocation58_spill]] %s9656_s13  ;;  %s9577_s20 = smov 11  }
   0xa   :  { %s9676_s29 = sld [smem:[%s10505_s0 + %s9572_s26]]   ;;  %s9578_s26 = smov 12  }
   0xb   :  { %s9681_s3 = sld [smem:[%s10505_s0 + %s9573_s30]]   ;;  %s9579_s1 = smov 13  }
   0xc   :  { %s9686_s8 = sld [smem:[%s10505_s0 + %s9574_s4]]   ;;  %s9580_s7 = smov 14  }
   0xd   :  { %s9691_s14 = sld [smem:[%s10505_s0 + %s9575_s10]]   ;;  %s9582_s22 = smov 16  }
   0xe   :  { %s9696_s19 = sld [smem:[%s10505_s0 + %s9576_s15]]   ;;  %s9581_s15 = smov 15  }
   0xf   :  { %s9701_s24 = sld [smem:[%s10505_s0 + %s9577_s20]]   ;;  %s9583_s28 = smov 17  }
  0x10   :  { %10523 = sst [smem:[#allocation59_spill]] %s9676_s29 }
  0x11   :  { %10524 = sst [smem:[#allocation60_spill]] %s9681_s3 }
  0x12   :  { %10525 = sst [smem:[#allocation61_spill]] %s9686_s8 }
  0x13   :  { %10526 = sst [smem:[#allocation62_spill]] %s9691_s14 }
  0x14   :  { %s9706_s30 = sld [smem:[%s10505_s0 + %s9578_s26]]  }
  0x15   :  { %10527 = sst [smem:[#allocation63_spill]] %s9701_s24 }
  0x16   :  { %s9711_s6 = sld [smem:[%s10505_s0 + %s9579_s1]]  }
  0x17   :  { %s9716_s12 = sld [smem:[%s10505_s0 + %s9580_s7]]   ;;  %s9584_s7 = smov 18  }
  0x18   :  { %s9721_s20 = sld [smem:[%s10505_s0 + %s9581_s15]]   ;;  %s9585_s15 = smov 19  }
  0x19   :  { %s9726_s27 = sld [smem:[%s10505_s0 + %s9582_s22]]   ;;  %s9586_s22 = smov 20  }
  0x1a   :  { %10528 = sst [smem:[#allocation64_spill]] %s9706_s30 }
  0x1b   :  { %s9731_s4 = sld [smem:[%s10505_s0 + %s9583_s28]]   ;;  %s9587_s28 = smov 21  }
  0x1c   :  { %10529 = sst [smem:[#allocation65_spill]] %s9711_s6 }
  0x1d   :  { %s9736_s30 = sld [smem:[%s10505_s0 + %s9584_s7]]   ;;  %s9588_s7 = smov 22  }
  0x1e   :  { %10530 = sst [smem:[#allocation66_spill]] %s9721_s20 }
  0x1f   :  { %s9741_s29 = sld [smem:[%s10505_s0 + %s9585_s15]]   ;;  %s9589_s15 = smov 23  }
  0x20   :  { %s9746_s3 = sld [smem:[%s10505_s0 + %s9586_s22]]   ;;  %s9590_s22 = smov 24  }
  0x21   :  { %10531 = sst [smem:[#allocation67_spill]] %s9731_s4 }
  0x22   :  { %s9751_s24 = sld [smem:[%s10505_s0 + %s9587_s28]]   ;;  %s9591_s28 = smov 25  }
  0x23   :  { %s9756_s13 = sld [smem:[%s10505_s0 + %s9588_s7]]   ;;  %s9592_s7 = smov 26  }
  0x24   :  { %s9761_s9 = sld [smem:[%s10505_s0 + %s9589_s15]]   ;;  %s9593_s15 = smov 27  }
  0x25   :  { %10532 = sst [smem:[#allocation68_spill]] %s9741_s29 }
  0x26   :  { %10533 = sst [smem:[#allocation69_spill]] %s9746_s3 }
  0x27   :  { %s9766_s5 = sld [smem:[%s10505_s0 + %s9590_s22]]   ;;  %s9594_s22 = smov 28  }
  0x28   :  { %10534 = sst [smem:[#allocation70_spill]] %s9751_s24 }
  0x29   :  { %s9771_s24 = sld [smem:[%s10505_s0 + %s9591_s28]]   ;;  %s9595_s28 = smov 29  }
  0x2a   :  { %10535 = sst [smem:[#allocation71_spill]] %s9761_s9 }
  0x2b   :  { %s9776_s29 = sld [smem:[%s10505_s0 + %s9592_s7]]   ;;  %s9596_s7 = smov 30  }
  0x2c   :  { %s9781_s9 = sld [smem:[%s10505_s0 + %s9593_s15]]   ;;  %s9597_s15 = smov 31  }
  0x2d   :  { %10536 = sst [smem:[#allocation72_spill]] %s9766_s5 }
  0x2e   :  { %s9786_s4 = sld [smem:[%s10505_s0 + %s9594_s22]]   ;;  %s9598_s22 = smov 32  }
  0x2f   :  { %10537 = sst [smem:[#allocation73_spill]] %s9771_s24 }
  0x30   :  { %s9791_s24 = sld [smem:[%s10505_s0 + %s9595_s28]]   ;;  %s9599_s28 = smov 33  }
  0x31   :  { %s9796_s20 = sld [smem:[%s10505_s0 + %s9596_s7]]   ;;  %s9600_s7 = smov 34  }
  0x32   :  { %10538 = sst [smem:[#allocation74_spill]] %s9781_s9 }
  0x33   :  { %s9801_s9 = sld [smem:[%s10505_s0 + %s9597_s15]]   ;;  %s9601_s15 = smov 35  }
  0x34   :  { %10539 = sst [smem:[#allocation75_spill]] %s9786_s4 }
  0x35   :  { %s9806_s6 = sld [smem:[%s10505_s0 + %s9598_s22]]   ;;  %s9602_s22 = smov 36  }
  0x36   :  { %10540 = sst [smem:[#allocation76_spill]] %s9791_s24 }
  0x37   :  { %10541 = sst [smem:[#allocation77_spill]] %s9796_s20 }
  0x38   :  { %s9811_s24 = sld [smem:[%s10505_s0 + %s9599_s28]]   ;;  %s9603_s28 = smov 37  }
  0x39   :  { %s9816_s20 = sld [smem:[%s10505_s0 + %s9600_s7]]   ;;  %s9604_s7 = smov 38  }
  0x3a   :  { %s9821_s14 = sld [smem:[%s10505_s0 + %s9601_s15]]  }
  0x3b   :  { %10542 = sst [smem:[#allocation78_spill]] %s9806_s6 }
  0x3c   :  { %s9826_s6 = sld [smem:[%s10505_s0 + %s9602_s22]]  }
  0x3e   :  { %10543 = sst [smem:[#allocation79_spill]] %s9811_s24 }
  0x3f   :  { %10544 = sst [smem:[#allocation80_spill]] %s9816_s20 }
  0x40   :  { %s9831_s24 = sld [smem:[%s10505_s0 + %s9603_s28]]  }
  0x41   :  { %s9836_s20 = sld [smem:[%s10505_s0 + %s9604_s7]]  }
  0x42   :  { %83 = vsyncpa [#allocation3], 0 }
  0x43   :  { %84 = vsyncpa [#allocation5], 0 }
  0x44   :  { %85 = vsyncpa [#allocation8], 0 }
  0x45   :  { %86 = vsyncpa [#allocation11], 0 }
  0x46   :  { %87 = vsyncpa [#allocation14], 0 }
  0x47   :  { %88 = vsyncpa [#allocation17], 0 }
  0x48   :  { %89 = vsyncpa [#allocation20], 0 }
  0x49   :  { %90 = vsyncpa [#allocation23], 0 }
  0x4a   :  { %91 = vsyncpa [#allocation26], 0 }
  0x4b   :  { %92 = vsyncpa [#allocation29], 0 }
  0x4c   :  { %93 = vsyncpa [#allocation32], 0 }
  0x4d   :  { %94 = vsyncpa [#allocation35], 0 }
  0x4e   :  { %95 = vsyncpa [#allocation38], 0 }
  0x4f   :  { %96 = vsyncpa [#allocation41], 0  ;;  %s9838_s15 = smov 0  }
  0x50 LB: > { %s9844_s0 = sadd.s32 4294967295, %s9565_s15   ;;  %p6969_p0 = scmp.ge.s32.totalorder %s9565_s15, 1  ;;  %s9565_s15 = sphi %s9838_s15, %s102_s15  }
  0x51   : > { %p951_p1 = scmp.lt.s32.totalorder %s9565_s15, 3  ;;  %p10512_p2 = scmp.eq.s32.totalorder %s9844_s0, 0 }
  0x52   : > { %s9605_s18 = smov [#allocation4]   ;;  %s9606_s23 = smov [#allocation7]  }
  0x53   : > { %p9849_p3 = pnand %p6969_p0, %p951_p1  ;;  %s982_s22 = sshll.u32 %s9605_s18, 4  ;;  %s983_s22 = int_to_ptr.vmem [resolvable:$true] %s982_s22 }
  0x54   : > { %s1015_s26 = sshll.u32 %s9606_s23, 4  ;;  %s9607_s1 = smov [#allocation10]   ;;  %s9855_s26 = int_to_ptr.vmem [resolvable:$true] %s1015_s26 }
  0x55   : > { %s10545_s16 = scalar_select %p9849_p3, 1, 0 }
  0x56   : > { %p8052_p4 = pneg %p9849_p3  ;;  %s1039_s2 = sshll.u32 %s9607_s1, 4  ;;  %s9863_s2 = int_to_ptr.vmem [resolvable:$true] %s1039_s2 }
  0x57   : > { %s9608_s7 = smov [#allocation13]   ;;  %s8838_s18 = scalar_lea.vmem %s983_s22, 256 }
  0x58   : > { %p9859_p5 = pnand %p10512_p2, %p8052_p4  ;;  %s9865_s10 = sshll.u32 %s9608_s7, 4  ;;  %s1069_s10 = int_to_ptr.vmem [resolvable:$true] %s9865_s10 }
  0x59   : > { %p8839_p7 = scmp.ne.s32.totalorder %s983_s22, %s8838_s18  ;;  %p8846_p10 = scmp.lt.s32.totalorder %s983_s22, %s983_s22 }
  0x5a   : > { %p9869_p6 = pneg %p9859_p5  ;;  %p8847_p11 = scmp.lt.s32.totalorder %s8838_s18, %s8838_s18 }
  0x5c   : > { %p8841_p8 = pnand %p8839_p7, %p9869_p6  ;;  %p8848_p12 = por %p8847_p11, %p8846_p10 }
  0x5e   : > { %p8842_p9 = pneg %p8841_p8 }
  0x60   : > { %p8849_p13 = pnand %p8848_p12, %p8842_p9 }
  0x62   : > { %8852 = shalt.err (!%p8849_p13)
}
  0x63   : > { %s10514_s23 = smov 64   ;;  %s10516_s1 = smov 4  }
  0x64   : > { %8058 = dma.hbm_to_vmem [thread:$0]  (!%p9859_p5), %s9666_s21, 256, %s983_s22, [#allocation5], %s10514_s23, %s10514_s23, %s10516_s1  }
  0x65   : > { %s8864_s7 = scalar_lea.vmem %s9855_s26, 32  ;;  %p8872_p7 = scmp.lt.s32.totalorder %s9855_s26, %s9855_s26 }
  0x66   : > { %p8865_p0 = scmp.ne.s32.totalorder %s9855_s26, %s8864_s7  ;;  %p8873_p8 = scmp.lt.s32.totalorder %s8864_s7, %s8864_s7 }
  0x68   : > { %p8867_p1 = pnand %p8865_p0, %p9869_p6  ;;  %p8874_p9 = por %p8873_p8, %p8872_p7 }
  0x6a   : > { %p8868_p4 = pneg %p8867_p1 }
  0x6c   : > { %p8875_p10 = pnand %p8874_p9, %p8868_p4 }
  0x6e   : > { %8878 = shalt.err (!%p8875_p10)
}
  0x6f   : > { %s10548_s8 = sld [smem:[#allocation61_spill]]  ;;  %s8890_s22 = scalar_lea.vmem %s9863_s2, 16 }
  0x70   : > { %p8891_p11 = scmp.ne.s32.totalorder %s9863_s2, %s8890_s22  ;;  %s8897_s18 = scalar_lea.vmem %s9863_s2, 32 }
  0x71   : > { %p8898_p0 = scmp.lt.s32.totalorder %s9863_s2, %s9863_s2  ;;  %p8899_p1 = scmp.lt.s32.totalorder %s8897_s18, %s8890_s22 }
  0x72   : > { %p8893_p12 = pnand %p8891_p11, %p9869_p6 }
  0x73   : > { %p8900_p4 = por %p8899_p1, %p8898_p0 }
  0x74   : > { %p8894_p13 = pneg %p8893_p12 }
  0x75   : > { %8064 = dma.hbm_to_vmem [thread:$0]  (!%p9859_p5), %s10548_s8, 32, %s9855_s26, [#allocation8]  }
  0x76   : > { %p8901_p7 = pnand %p8900_p4, %p8894_p13 }
  0x78   : > { %8904 = shalt.err (!%p8901_p7)
}
  0x79   : > { %8070 = dma.hbm_to_vmem [thread:$0]  (!%p9859_p5), %s9696_s19, 16, %s9863_s2, [#allocation11]  }
  0x7a   : > { %s8916_s26 = scalar_lea.vmem %s1069_s10, 256  ;;  %p8924_p11 = scmp.lt.s32.totalorder %s1069_s10, %s1069_s10 }
  0x7b   : > { %p8917_p8 = scmp.ne.s32.totalorder %s1069_s10, %s8916_s26  ;;  %p8925_p12 = scmp.lt.s32.totalorder %s8916_s26, %s8916_s26 }
  0x7d   : > { %p8919_p9 = pnand %p8917_p8, %p9869_p6  ;;  %p8926_p2 = por %p8925_p12, %p8924_p11 }
  0x7f   : > { %p8920_p10 = pneg %p8919_p9 }
  0x81   : > { %p8927_p3 = pnand %p8926_p2, %p8920_p10 }
  0x83   : > { %8930 = shalt.err (!%p8927_p3)
}
  0x84   : > { %8076 = dma.hbm_to_vmem [thread:$0]  (!%p9859_p5), %s9716_s12, 256, %s1069_s10, [#allocation14], %s10514_s23, %s10514_s23, %s10516_s1  }
  0x85   : > { %s9611_s2 = smov [#allocation16]   ;;  %s9612_s22 = smov [#allocation19]  }
  0x86   : > { %s1095_s7 = sshll.u32 %s9611_s2, 4  ;;  %s1119_s18 = sshll.u32 %s9612_s22, 4  ;;  %s1096_s7 = int_to_ptr.vmem [resolvable:$true] %s1095_s7  ;;  %s1120_s18 = int_to_ptr.vmem [resolvable:$true] %s1119_s18 }
  0x87   : > { %s8942_s8 = scalar_lea.vmem %s1096_s7, 32  ;;  %p8950_p2 = scmp.lt.s32.totalorder %s1096_s7, %s1096_s7 }
  0x88   : > { %p8943_p13 = scmp.ne.s32.totalorder %s1096_s7, %s8942_s8  ;;  %p8951_p3 = scmp.lt.s32.totalorder %s8942_s8, %s8942_s8 }
  0x8a   : > { %p8945_p0 = pnand %p8943_p13, %p9869_p6  ;;  %p8952_p4 = por %p8951_p3, %p8950_p2 }
  0x8c   : > { %p8946_p1 = pneg %p8945_p0 }
  0x8e   : > { %p8953_p7 = pnand %p8952_p4, %p8946_p1 }
  0x90   : > { %8956 = shalt.err (!%p8953_p7)
}
  0x91   : > { %8082 = dma.hbm_to_vmem [thread:$0]  (!%p9859_p5), %s9726_s27, 32, %s1096_s7, [#allocation17]  }
  0x92   : > { %s8968_s10 = scalar_lea.vmem %s1120_s18, 32  ;;  %p8976_p11 = scmp.lt.s32.totalorder %s1120_s18, %s1120_s18 }
  0x93   : > { %p8969_p8 = scmp.ne.s32.totalorder %s1120_s18, %s8968_s10  ;;  %p8977_p12 = scmp.lt.s32.totalorder %s8968_s10, %s8968_s10 }
  0x95   : > { %p8971_p9 = pnand %p8969_p8, %p9869_p6  ;;  %p8978_p13 = por %p8977_p12, %p8976_p11 }
  0x97   : > { %p8972_p10 = pneg %p8971_p9 }
  0x99   : > { %p8979_p0 = pnand %p8978_p13, %p8972_p10 }
  0x9b   : > { %8982 = shalt.err (!%p8979_p0)
}
  0x9c   : > { %8088 = dma.hbm_to_vmem [thread:$0]  (!%p9859_p5), %s9736_s30, 32, %s1120_s18, [#allocation20]  }
  0x9d   : > { %s9613_s8 = smov [#allocation22]   ;;  %s9614_s2 = smov [#allocation25]  }
  0x9e   : > { %s1143_s26 = sshll.u32 %s9613_s8, 4  ;;  %s1164_s7 = sshll.u32 %s9614_s2, 4  ;;  %s1144_s26 = int_to_ptr.vmem [resolvable:$true] %s1143_s26  ;;  %s1165_s7 = int_to_ptr.vmem [resolvable:$true] %s1164_s7 }
  0x9f   : > { %s8994_s22 = scalar_lea.vmem %s1144_s26, 16  ;;  %s9001_s23 = scalar_lea.vmem %s1144_s26, 32 }
  0xa0   : > { %p8995_p1 = scmp.ne.s32.totalorder %s1144_s26, %s8994_s22  ;;  %p9002_p4 = scmp.lt.s32.totalorder %s1144_s26, %s1144_s26 }
  0xa1   : > { %p9003_p7 = scmp.lt.s32.totalorder %s9001_s23, %s8994_s22 }
  0xa2   : > { %p8997_p2 = pnand %p8995_p1, %p9869_p6 }
  0xa3   : > { %p9004_p8 = por %p9003_p7, %p9002_p4 }
  0xa4   : > { %p8998_p3 = pneg %p8997_p2 }
  0xa6   : > { %p9005_p9 = pnand %p9004_p8, %p8998_p3 }
  0xa8   : > { %9008 = shalt.err (!%p9005_p9)
}
  0xa9   : > { %s10549_s3 = sld [smem:[#allocation69_spill]]  ;;  %s9020_s18 = scalar_lea.vmem %s1165_s7, 2048 }
  0xaa   : > { %p9021_p10 = scmp.ne.s32.totalorder %s1165_s7, %s9020_s18  ;;  %p9028_p13 = scmp.lt.s32.totalorder %s1165_s7, %s1165_s7 }
  0xab   : > { %p9029_p0 = scmp.lt.s32.totalorder %s9020_s18, %s9020_s18 }
  0xac   : > { %p9023_p11 = pnand %p9021_p10, %p9869_p6 }
  0xad   : > { %p9030_p1 = por %p9029_p0, %p9028_p13 }
  0xae   : > { %p9024_p12 = pneg %p9023_p11 }
  0xaf   : > { %8094 = dma.hbm_to_vmem [thread:$0]  (!%p9859_p5), %s10549_s3, 16, %s1144_s26, [#allocation23]  }
  0xb0   : > { %p9031_p2 = pnand %p9030_p1, %p9024_p12 }
  0xb2   : > { %9034 = shalt.err (!%p9031_p2)
}
  0xb3   : > { %s10550_s23 = smov 64   ;;  %s9615_s10 = smov [#allocation28]  }
  0xb4   : > { %8100 = dma.hbm_to_vmem [thread:$0]  (!%p9859_p5), %s9756_s13, 2048, %s1165_s7, [#allocation26], %s10550_s23, %s10550_s23, %s10516_s1  }
  0xb5   : > { %s1190_s8 = sshll.u32 %s9615_s10, 4  ;;  %s9616_s26 = smov [#allocation31]   ;;  %s1191_s8 = int_to_ptr.vmem [resolvable:$true] %s1190_s8 }
  0xb6   : > { %s1217_s2 = sshll.u32 %s9616_s26, 4  ;;  %s9046_s22 = scalar_lea.vmem %s1191_s8, 128  ;;  %s1218_s2 = int_to_ptr.vmem [resolvable:$true] %s1217_s2 }
  0xb7   : > { %p9047_p3 = scmp.ne.s32.totalorder %s1191_s8, %s9046_s22  ;;  %p9054_p8 = scmp.lt.s32.totalorder %s1191_s8, %s1191_s8 }
  0xb8   : > { %p9055_p9 = scmp.lt.s32.totalorder %s9046_s22, %s9046_s22 }
  0xb9   : > { %p9049_p4 = pnand %p9047_p3, %p9869_p6 }
  0xba   : > { %p9056_p10 = por %p9055_p9, %p9054_p8 }
  0xbb   : > { %p9050_p7 = pneg %p9049_p4 }
  0xbd   : > { %p9057_p11 = pnand %p9056_p10, %p9050_p7 }
  0xbf   : > { %9060 = shalt.err (!%p9057_p11)
}
  0xc0   : > { %s10551_s5 = sld [smem:[#allocation72_spill]]  ;;  %s9072_s7 = scalar_lea.vmem %s1218_s2, 16 }
  0xc1   : > { %p9073_p12 = scmp.ne.s32.totalorder %s1218_s2, %s9072_s7  ;;  %s9079_s18 = scalar_lea.vmem %s1218_s2, 32 }
  0xc2   : > { %p9080_p1 = scmp.lt.s32.totalorder %s1218_s2, %s1218_s2  ;;  %p9081_p2 = scmp.lt.s32.totalorder %s9079_s18, %s9072_s7 }
  0xc3   : > { %p9075_p13 = pnand %p9073_p12, %p9869_p6 }
  0xc4   : > { %p9082_p3 = por %p9081_p2, %p9080_p1 }
  0xc5   : > { %p9076_p0 = pneg %p9075_p13 }
  0xc6   : > { %8106 = dma.hbm_to_vmem [thread:$0]  (!%p9859_p5), %s10551_s5, 128, %s1191_s8, [#allocation29], %s10550_s23, %s10550_s23, %s10516_s1  }
  0xc7   : > { %p9083_p4 = pnand %p9082_p3, %p9076_p0 }
  0xc9   : > { %9086 = shalt.err (!%p9083_p4)
}
  0xca   : > { %8112 = dma.hbm_to_vmem [thread:$0]  (!%p9859_p5), %s9776_s29, 16, %s1218_s2, [#allocation32]  }
  0xcb   : > { %s9617_s10 = smov [#allocation34]   ;;  %s9618_s8 = smov [#allocation37]  }
  0xcc   : > { %s1241_s26 = sshll.u32 %s9617_s10, 4  ;;  %s1266_s22 = sshll.u32 %s9618_s8, 4  ;;  %s1242_s26 = int_to_ptr.vmem [resolvable:$true] %s1241_s26  ;;  %s1267_s22 = int_to_ptr.vmem [resolvable:$true] %s1266_s22 }
  0xcd   : > { %s9098_s1 = scalar_lea.vmem %s1242_s26, 16  ;;  %s9105_s3 = scalar_lea.vmem %s1242_s26, 32 }
  0xce   : > { %p9099_p7 = scmp.ne.s32.totalorder %s1242_s26, %s9098_s1  ;;  %p9106_p10 = scmp.lt.s32.totalorder %s1242_s26, %s1242_s26 }
  0xcf   : > { %p9107_p11 = scmp.lt.s32.totalorder %s9105_s3, %s9098_s1 }
  0xd0   : > { %p9101_p8 = pnand %p9099_p7, %p9869_p6 }
  0xd1   : > { %p9108_p12 = por %p9107_p11, %p9106_p10 }
  0xd2   : > { %p9102_p9 = pneg %p9101_p8 }
  0xd4   : > { %p9109_p13 = pnand %p9108_p12, %p9102_p9 }
  0xd6   : > { %9112 = shalt.err (!%p9109_p13)
}
  0xd7   : > { %s10552_s4 = sld [smem:[#allocation75_spill]]  ;;  %s9124_s2 = scalar_lea.vmem %s1267_s22, 32 }
  0xd8   : > { %p9125_p0 = scmp.ne.s32.totalorder %s1267_s22, %s9124_s2  ;;  %p9132_p3 = scmp.lt.s32.totalorder %s1267_s22, %s1267_s22 }
  0xd9   : > { %p9133_p4 = scmp.lt.s32.totalorder %s9124_s2, %s9124_s2 }
  0xda   : > { %p9127_p1 = pnand %p9125_p0, %p9869_p6 }
  0xdb   : > { %p9134_p7 = por %p9133_p4, %p9132_p3 }
  0xdc   : > { %p9128_p2 = pneg %p9127_p1 }
  0xdd   : > { %8118 = dma.hbm_to_vmem [thread:$0]  (!%p9859_p5), %s10552_s4, 16, %s1242_s26, [#allocation35]  }
  0xde   : > { %p9135_p8 = pnand %p9134_p7, %p9128_p2 }
  0xe0   : > { %9138 = shalt.err (!%p9135_p8)
}
  0xe1   : > { %8124 = dma.hbm_to_vmem [thread:$0]  (!%p9859_p5), %s9801_s9, 32, %s1267_s22, [#allocation38]  }
  0xe2   : > { %s9619_s3 = smov [#allocation2]   ;;  %s9620_s7 = smov [#allocation6]  }
  0xe3   : > { %s969_s1 = sshll.u32 %s9619_s3, 4  ;;  %s995_s18 = sshll.u32 %s9620_s7, 4  ;;  %s970_s1 = int_to_ptr.vmem [resolvable:$true] %s969_s1  ;;  %s996_s18 = int_to_ptr.vmem [resolvable:$true] %s995_s18 }
  0xe4   : > { %s9150_s10 = scalar_lea.vmem %s970_s1, 256  ;;  %p9158_p12 = scmp.lt.s32.totalorder %s970_s1, %s970_s1 }
  0xe5   : > { %p9151_p9 = scmp.ne.s32.totalorder %s970_s1, %s9150_s10  ;;  %p9159_p13 = scmp.lt.s32.totalorder %s9150_s10, %s9150_s10 }
  0xe7   : > { %p9153_p10 = pnand %p9151_p9, %p9869_p6  ;;  %p9160_p0 = por %p9159_p13, %p9158_p12 }
  0xe9   : > { %p9154_p11 = pneg %p9153_p10 }
  0xeb   : > { %p9161_p1 = pnand %p9160_p0, %p9154_p11 }
  0xed   : > { %9164 = shalt.err (!%p9161_p1)
}
  0xee   : > { %s10553_s26 = smov 4   ;;  %s9176_s8 = scalar_lea.vmem %s996_s18, 6144 }
  0xef   : > { %8055 = dma.hbm_to_vmem [thread:$0]  (!%p9859_p5), %s9661_s17, 256, %s970_s1, [#allocation3], %s10550_s23, %s10550_s23, %s10553_s26  }
  0xf0   : > { %p9177_p2 = scmp.ne.s32.totalorder %s996_s18, %s9176_s8  ;;  %p9184_p7 = scmp.lt.s32.totalorder %s996_s18, %s996_s18 }
  0xf1   : > { %p9185_p8 = scmp.lt.s32.totalorder %s9176_s8, %s9176_s8 }
  0xf2   : > { %p9179_p3 = pnand %p9177_p2, %p9869_p6 }
  0xf3   : > { %p9186_p9 = por %p9185_p8, %p9184_p7 }
  0xf4   : > { %p9180_p4 = pneg %p9179_p3 }
  0xf6   : > { %p9187_p10 = pnand %p9186_p9, %p9180_p4 }
  0xf8   : > { %9190 = shalt.err (!%p9187_p10)
}
  0xf9   : > { %s10518_s22 = smov 128   ;;  %s9622_s2 = smov 8  }
  0xfa   : > { %8061 = dma.hbm_to_vmem [thread:$0]  (!%p9859_p5), %s9671_s25, 6144, %s996_s18, [#allocation5], %s10518_s22, %s10518_s22, %s9622_s2  }
  0xfb   : > { %s9623_s3 = smov [#allocation9]   ;;  %s9624_s7 = smov [#allocation12]  }
  0xfc   : > { %s1025_s1 = sshll.u32 %s9623_s3, 4  ;;  %s1055_s10 = sshll.u32 %s9624_s7, 4  ;;  %s1026_s1 = int_to_ptr.vmem [resolvable:$true] %s1025_s1  ;;  %s1056_s10 = int_to_ptr.vmem [resolvable:$true] %s1055_s10 }
  0xfd   : > { %s9202_s4 = scalar_lea.vmem %s1026_s1, 1024  ;;  %p9210_p0 = scmp.lt.s32.totalorder %s1026_s1, %s1026_s1 }
  0xfe   : > { %p9203_p11 = scmp.ne.s32.totalorder %s1026_s1, %s9202_s4  ;;  %p9211_p1 = scmp.lt.s32.totalorder %s9202_s4, %s9202_s4 }
 0x100   : > { %p9205_p12 = pnand %p9203_p11, %p9869_p6  ;;  %p9212_p2 = por %p9211_p1, %p9210_p0 }
 0x102   : > { %p9206_p13 = pneg %p9205_p12 }
 0x104   : > { %p9213_p3 = pnand %p9212_p2, %p9206_p13 }
 0x106   : > { %9216 = shalt.err (!%p9213_p3)
}
 0x107   : > { %s10554_s18 = sld [smem:[#allocation62_spill]]  ;;  %s9228_s8 = scalar_lea.vmem %s1056_s10, 256 }
 0x108   : > { %p9229_p4 = scmp.ne.s32.totalorder %s1056_s10, %s9228_s8  ;;  %p9236_p9 = scmp.lt.s32.totalorder %s1056_s10, %s1056_s10 }
 0x109   : > { %p9237_p10 = scmp.lt.s32.totalorder %s9228_s8, %s9228_s8 }
 0x10a   : > { %p9231_p7 = pnand %p9229_p4, %p9869_p6 }
 0x10b   : > { %p9238_p11 = por %p9237_p10, %p9236_p9 }
 0x10c   : > { %p9232_p8 = pneg %p9231_p7 }
 0x10d   : > { %8067 = dma.hbm_to_vmem [thread:$0]  (!%p9859_p5), %s10554_s18, 1024, %s1026_s1, [#allocation8], %s10550_s23, %s10550_s23, %s10553_s26  }
 0x10e   : > { %p9239_p12 = pnand %p9238_p11, %p9232_p8 }
 0x110   : > { %9242 = shalt.err (!%p9239_p12)
}
 0x111   : > { %s10555_s4 = sld [smem:[#allocation65_spill]]  ;;  %s9625_s3 = smov [#allocation15]  }
 0x112   : > { %s1081_s1 = sshll.u32 %s9625_s3, 4  ;;  %s9626_s7 = smov [#allocation18]   ;;  %s1082_s1 = int_to_ptr.vmem [resolvable:$true] %s1081_s1 }
 0x113   : > { %s1105_s18 = sshll.u32 %s9626_s7, 4  ;;  %s9254_s22 = scalar_lea.vmem %s1082_s1, 6144  ;;  %s1106_s18 = int_to_ptr.vmem [resolvable:$true] %s1105_s18 }
 0x114   : > { %p9255_p13 = scmp.ne.s32.totalorder %s1082_s1, %s9254_s22  ;;  %p9262_p2 = scmp.lt.s32.totalorder %s1082_s1, %s1082_s1 }
 0x115   : > { %p9263_p3 = scmp.lt.s32.totalorder %s9254_s22, %s9254_s22 }
 0x116   : > { %p9257_p0 = pnand %p9255_p13, %p9869_p6 }
 0x117   : > { %8073 = dma.hbm_to_vmem [thread:$0]  (!%p9859_p5), %s10555_s4, 256, %s1056_s10, [#allocation11], %s10550_s23, %s10550_s23, %s10553_s26  }
 0x118   : > { %p9258_p1 = pneg %p9257_p0  ;;  %p9264_p4 = por %p9263_p3, %p9262_p2 }
 0x11a   : > { %p9265_p7 = pnand %p9264_p4, %p9258_p1 }
 0x11c   : > { %9268 = shalt.err (!%p9265_p7)
}
 0x11d   : > { %s10556_s8 = smov 128   ;;  %s10557_s10 = sld [smem:[#allocation66_spill]] }
 0x11e   : > { %s9280_s4 = scalar_lea.vmem %s1106_s18, 12288  ;;  %p9288_p11 = scmp.lt.s32.totalorder %s1106_s18, %s1106_s18 }
 0x11f   : > { %p9281_p8 = scmp.ne.s32.totalorder %s1106_s18, %s9280_s4  ;;  %p9289_p12 = scmp.lt.s32.totalorder %s9280_s4, %s9280_s4 }
 0x121   : > { %p9283_p9 = pnand %p9281_p8, %p9869_p6  ;;  %p9290_p13 = por %p9289_p12, %p9288_p11 }
 0x123   : > { %8079 = dma.hbm_to_vmem [thread:$0]  (!%p9859_p5), %s10557_s10, 6144, %s1082_s1, [#allocation14], %s10556_s8, %s10556_s8, %s9622_s2  }
 0x124   : > { %p9284_p10 = pneg %p9283_p9 }
 0x126   : > { %p9291_p0 = pnand %p9290_p13, %p9284_p10 }
 0x128   : > { %9294 = shalt.err (!%p9291_p0)
}
 0x129   : > { %s10558_s22 = sld [smem:[#allocation67_spill]]  ;;  %s9627_s3 = smov [#allocation21]  }
 0x12a   : > { %s1129_s1 = sshll.u32 %s9627_s3, 4  ;;  %s9628_s7 = smov [#allocation24]   ;;  %s1130_s1 = int_to_ptr.vmem [resolvable:$true] %s1129_s1 }
 0x12b   : > { %s1154_s10 = sshll.u32 %s9628_s7, 4  ;;  %s9306_s5 = scalar_lea.vmem %s1130_s1, 1024  ;;  %s1155_s10 = int_to_ptr.vmem [resolvable:$true] %s1154_s10 }
 0x12c   : > { %p9307_p1 = scmp.ne.s32.totalorder %s1130_s1, %s9306_s5  ;;  %p9314_p4 = scmp.lt.s32.totalorder %s1130_s1, %s1130_s1 }
 0x12d   : > { %p9315_p7 = scmp.lt.s32.totalorder %s9306_s5, %s9306_s5 }
 0x12e   : > { %p9309_p2 = pnand %p9307_p1, %p9869_p6 }
 0x12f   : > { %8085 = dma.hbm_to_vmem [thread:$0]  (!%p9859_p5), %s10558_s22, 12288, %s1106_s18, [#allocation17], %s10556_s8, %s10556_s8, %s9622_s2  }
 0x130   : > { %p9310_p3 = pneg %p9309_p2  ;;  %p9316_p8 = por %p9315_p7, %p9314_p4 }
 0x132   : > { %p9317_p9 = pnand %p9316_p8, %p9310_p3 }
 0x134   : > { %9320 = shalt.err (!%p9317_p9)
}
 0x135   : > { %s10559_s2 = sld [smem:[#allocation68_spill]]  ;;  %s9332_s18 = scalar_lea.vmem %s1155_s10, 64 }
 0x136   : > { %p9333_p10 = scmp.ne.s32.totalorder %s1155_s10, %s9332_s18  ;;  %p9340_p13 = scmp.lt.s32.totalorder %s1155_s10, %s1155_s10 }
 0x137   : > { %p9341_p0 = scmp.lt.s32.totalorder %s9332_s18, %s9332_s18 }
 0x138   : > { %p9335_p11 = pnand %p9333_p10, %p9869_p6 }
 0x139   : > { %p9342_p1 = por %p9341_p0, %p9340_p13 }
 0x13a   : > { %p9336_p12 = pneg %p9335_p11 }
 0x13b   : > { %8091 = dma.hbm_to_vmem [thread:$0]  (!%p9859_p5), %s10559_s2, 1024, %s1130_s1, [#allocation20], %s10550_s23, %s10550_s23, %s10553_s26  }
 0x13c   : > { %p9343_p2 = pnand %p9342_p1, %p9336_p12 }
 0x13e   : > { %9346 = shalt.err (!%p9343_p2)
}
 0x13f   : > { %s10560_s5 = sld [smem:[#allocation70_spill]]  ;;  %s9629_s8 = smov [#allocation27]  }
 0x140   : > { %s1177_s4 = sshll.u32 %s9629_s8, 4  ;;  %s9630_s22 = smov [#allocation30]   ;;  %s1178_s4 = int_to_ptr.vmem [resolvable:$true] %s1177_s4 }
 0x141   : > { %s1203_s3 = sshll.u32 %s9630_s22, 4  ;;  %s9358_s1 = scalar_lea.vmem %s1178_s4, 128  ;;  %s1204_s3 = int_to_ptr.vmem [resolvable:$true] %s1203_s3 }
 0x142   : > { %p9359_p3 = scmp.ne.s32.totalorder %s1178_s4, %s9358_s1  ;;  %p9366_p8 = scmp.lt.s32.totalorder %s1178_s4, %s1178_s4 }
 0x143   : > { %p9367_p9 = scmp.lt.s32.totalorder %s9358_s1, %s9358_s1 }
 0x144   : > { %p9361_p4 = pnand %p9359_p3, %p9869_p6 }
 0x145   : > { %8097 = dma.hbm_to_vmem [thread:$0]  (!%p9859_p5), %s10560_s5, 64, %s1155_s10, [#allocation23]  }
 0x146   : > { %p9362_p7 = pneg %p9361_p4  ;;  %p9368_p10 = por %p9367_p9, %p9366_p8 }
 0x148   : > { %p9369_p11 = pnand %p9368_p10, %p9362_p7 }
 0x14a   : > { %9372 = shalt.err (!%p9369_p11)
}
 0x14b   : > { %s10561_s7 = sld [smem:[#allocation71_spill]]  ;;  %s9384_s10 = scalar_lea.vmem %s1204_s3, 3072 }
 0x14c   : > { %p9385_p12 = scmp.ne.s32.totalorder %s1204_s3, %s9384_s10  ;;  %p9392_p1 = scmp.lt.s32.totalorder %s1204_s3, %s1204_s3 }
 0x14d   : > { %p9393_p2 = scmp.lt.s32.totalorder %s9384_s10, %s9384_s10 }
 0x14e   : > { %p9387_p13 = pnand %p9385_p12, %p9869_p6 }
 0x14f   : > { %p9394_p3 = por %p9393_p2, %p9392_p1 }
 0x150   : > { %p9388_p0 = pneg %p9387_p13 }
 0x151   : > { %8103 = dma.hbm_to_vmem [thread:$0]  (!%p9859_p5), %s10561_s7, 128, %s1178_s4, [#allocation26], %s10550_s23, %s10550_s23, %s10553_s26  }
 0x152   : > { %p9395_p4 = pnand %p9394_p3, %p9388_p0 }
 0x154   : > { %9398 = shalt.err (!%p9395_p4)
}
 0x155   : > { %s10562_s2 = sld [smem:[#allocation73_spill]]  ;;  %s9631_s18 = smov [#allocation33]  }
 0x156   : > { %s1227_s5 = sshll.u32 %s9631_s18, 4  ;;  %s9632_s8 = smov [#allocation36]   ;;  %s1228_s5 = int_to_ptr.vmem [resolvable:$true] %s1227_s5 }
 0x157   : > { %s1255_s4 = sshll.u32 %s9632_s8, 4  ;;  %s9410_s22 = scalar_lea.vmem %s1228_s5, 3072  ;;  %s1256_s4 = int_to_ptr.vmem [resolvable:$true] %s1255_s4 }
 0x158   : > { %p9411_p7 = scmp.ne.s32.totalorder %s1228_s5, %s9410_s22  ;;  %p9418_p10 = scmp.lt.s32.totalorder %s1228_s5, %s1228_s5 }
 0x159   : > { %p9419_p11 = scmp.lt.s32.totalorder %s9410_s22, %s9410_s22 }
 0x15a   : > { %p9413_p8 = pnand %p9411_p7, %p9869_p6 }
 0x15b   : > { %8109 = dma.hbm_to_vmem [thread:$0]  (!%p9859_p5), %s10562_s2, 3072, %s1204_s3, [#allocation29], %s10550_s23, %s10550_s23, %s10553_s26  }
 0x15c   : > { %p9414_p9 = pneg %p9413_p8  ;;  %p9420_p12 = por %p9419_p11, %p9418_p10 }
 0x15e   : > { %p9421_p13 = pnand %p9420_p12, %p9414_p9 }
 0x160   : > { %9424 = shalt.err (!%p9421_p13)
}
 0x161   : > { %s10563_s3 = sld [smem:[#allocation74_spill]]  ;;  %s9436_s1 = scalar_lea.vmem %s1256_s4, 16 }
 0x162   : > { %p9437_p0 = scmp.ne.s32.totalorder %s1256_s4, %s9436_s1  ;;  %s9443_s7 = scalar_lea.vmem %s1256_s4, 32 }
 0x163   : > { %p9444_p3 = scmp.lt.s32.totalorder %s1256_s4, %s1256_s4  ;;  %p9445_p4 = scmp.lt.s32.totalorder %s9443_s7, %s9436_s1 }
 0x164   : > { %p9439_p1 = pnand %p9437_p0, %p9869_p6 }
 0x165   : > { %p9446_p7 = por %p9445_p4, %p9444_p3 }
 0x166   : > { %p9440_p2 = pneg %p9439_p1 }
 0x167   : > { %8115 = dma.hbm_to_vmem [thread:$0]  (!%p9859_p5), %s10563_s3, 3072, %s1228_s5, [#allocation32], %s10550_s23, %s10550_s23, %s10553_s26  }
 0x168   : > { %p9447_p8 = pnand %p9446_p7, %p9440_p2 }
 0x16a   : > { %9450 = shalt.err (!%p9447_p8)
}
 0x16b   : > { %s10564_s10 = sld [smem:[#allocation77_spill]]  ;;  %s9633_s2 = smov [#allocation39]  }
 0x16c   : > { %s1280_s18 = sshll.u32 %s9633_s2, 4  ;;  %s9634_s23 = smov [#allocation40]   ;;  %s1281_s18 = int_to_ptr.vmem [resolvable:$true] %s1280_s18 }
 0x16d   : > { %s1291_s26 = sshll.u32 %s9634_s23, 4  ;;  %s9462_s5 = scalar_lea.vmem %s1281_s18, 64  ;;  %s1292_s26 = int_to_ptr.vmem [resolvable:$true] %s1291_s26 }
 0x16e   : > { %p9463_p9 = scmp.ne.s32.totalorder %s1281_s18, %s9462_s5  ;;  %p9470_p12 = scmp.lt.s32.totalorder %s1281_s18, %s1281_s18 }
 0x16f   : > { %p9471_p13 = scmp.lt.s32.totalorder %s9462_s5, %s9462_s5 }
 0x170   : > { %p9465_p10 = pnand %p9463_p9, %p9869_p6 }
 0x171   : > { %8121 = dma.hbm_to_vmem [thread:$0]  (!%p9859_p5), %s10564_s10, 16, %s1256_s4, [#allocation35]  }
 0x172   : > { %p9466_p11 = pneg %p9465_p10  ;;  %p9472_p0 = por %p9471_p13, %p9470_p12 }
 0x174   : > { %p9473_p1 = pnand %p9472_p0, %p9466_p11 }
 0x176   : > { %9476 = shalt.err (!%p9473_p1)
}
 0x177   : > { %s10565_s8 = sld [smem:[#allocation79_spill]]  ;;  %s9488_s4 = scalar_lea.vmem %s1292_s26, 64 }
 0x178   : > { %p9489_p2 = scmp.ne.s32.totalorder %s1292_s26, %s9488_s4  ;;  %p9496_p7 = scmp.lt.s32.totalorder %s1292_s26, %s1292_s26 }
 0x179   : > { %p9497_p8 = scmp.lt.s32.totalorder %s9488_s4, %s9488_s4 }
 0x17a   : > { %p9491_p3 = pnand %p9489_p2, %p9869_p6 }
 0x17b   : > { %p9498_p9 = por %p9497_p8, %p9496_p7 }
 0x17c   : > { %p9492_p4 = pneg %p9491_p3 }
 0x17d   : > { %8127 = dma.hbm_to_vmem [thread:$0]  (!%p9859_p5), %s10565_s8, 64, %s1281_s18, [#allocation38]  }
 0x17e   : > { %p9499_p10 = pnand %p9498_p9, %p9492_p4 }
 0x180   : > { %9502 = shalt.err (!%p9499_p10)
}
 0x181   : > { %s10566_s22 = sld [smem:[#allocation80_spill]]  ;;  %p10567_p11 = scmp.ne.s32.totalorder %s10545_s16, 0 }
 0x182   : > { %p10568_p12 = scmp.eq.s32.totalorder (!%p10567_p11), %s9844_s0, 0 }
 0x183   : > { %1313 = sbr.rel (%p10567_p11) target bundleno = 4768 (0x12a0), region = 160 }
 0x187   : > { %8130 = dma.hbm_to_vmem [thread:$0]  (!%p9859_p5), %s10566_s22, 64, %s1292_s26, [#allocation41]  }
 0x188   : > { %9508 = dma.done.wait (%p10568_p12), [#allocation3], 256   ;;  %p10569_p13 = pmov %p10568_p12 }
 0x189   : > { %p10570_p6 = pmov %p10568_p12 }
 0x18a   : > { %9510 = vsyncadd (%p10569_p13), [#allocation3], 4294967040 }
 0x18b   : > { %9512 = dma.done.wait (%p10570_p6), [#allocation5], 6400   ;;  %p10571_p0 = pmov %p10570_p6 }
 0x18d   : > { %9514 = vsyncadd (%p10571_p0), [#allocation5], 4294960896  ;;  %p10572_p1 = pmov %p10571_p0 }
 0x18e   : > { %p10573_p5 = pmov %p10571_p0 }
 0x18f   : > { %9516 = dma.done.wait (%p10572_p1), [#allocation8], 1056  }
 0x190   : > { %9518 = vsyncadd (%p10573_p5), [#allocation8], 4294966240  ;;  %p10574_p2 = pmov %p10571_p0 }
 0x191   : > { %p10575_p3 = pmov %p10571_p0 }
 0x192   : > { %9520 = dma.done.wait (%p10574_p2), [#allocation11], 272  }
 0x193   : > { %9522 = vsyncadd (%p10575_p3), [#allocation11], 4294967024  ;;  %p10576_p4 = pmov %p10571_p0 }
 0x194   : > { %p10577_p7 = pmov %p10571_p0 }
 0x195   : > { %9524 = dma.done.wait (%p10576_p4), [#allocation14], 6400  }
 0x196   : > { %9526 = vsyncadd (%p10577_p7), [#allocation14], 4294960896  ;;  %p10578_p8 = pmov %p10571_p0 }
 0x197   : > { %p10579_p9 = pmov %p10571_p0 }
 0x198   : > { %9528 = dma.done.wait (%p10578_p8), [#allocation17], 12320  }
 0x199   : > { %9530 = vsyncadd (%p10579_p9), [#allocation17], 4294954976  ;;  %p10580_p10 = pmov %p10571_p0 }
 0x19a   : > { %p10581_p11 = pmov %p10571_p0 }
 0x19b   : > { %9532 = dma.done.wait (%p10580_p10), [#allocation20], 1056  }
 0x19c   : > { %9534 = vsyncadd (%p10581_p11), [#allocation20], 4294966240  ;;  %p10582_p12 = pmov %p10571_p0 }
 0x19d   : > { %p10583_p13 = pmov %p10571_p0 }
 0x19e   : > { %9536 = dma.done.wait (%p10582_p12), [#allocation23], 80  }
 0x19f   : > { %9538 = vsyncadd (%p10583_p13), [#allocation23], 4294967216  ;;  %p10584_p6 = pmov %p10571_p0 }
 0x1a1   : > { %9540 = dma.done.wait (%p10584_p6), [#allocation26], 2176  }
 0x1a2   : > { %9542 = vsyncadd (%p10571_p0), [#allocation26], 4294965120  ;;  %p10585_p1 = pmov %p10571_p0 }
 0x1a3   : > { %p10586_p5 = pmov %p10571_p0 }
 0x1a4   : > { %9544 = dma.done.wait (%p10585_p1), [#allocation29], 3200  }
 0x1a5   : > { %9546 = vsyncadd (%p10586_p5), [#allocation29], 4294964096  ;;  %p10587_p2 = pmov %p10571_p0 }
 0x1a6   : > { %p10588_p3 = pmov %p10571_p0 }
 0x1a7   : > { %9548 = dma.done.wait (%p10587_p2), [#allocation32], 3088  }
 0x1a8   : > { %9550 = vsyncadd (%p10588_p3), [#allocation32], 4294964208  ;;  %p10589_p4 = pmov %p10571_p0 }
 0x1a9   : > { %p10590_p7 = pmov %p10571_p0 }
 0x1aa   : > { %9552 = dma.done.wait (%p10589_p4), [#allocation35], 32  }
 0x1ab   : > { %9554 = vsyncadd (%p10590_p7), [#allocation35], 4294967264  ;;  %p10591_p8 = pmov %p10571_p0 }
 0x1ac   : > { %p10592_p9 = pmov %p10571_p0 }
 0x1ad   : > { %9556 = dma.done.wait (%p10591_p8), [#allocation38], 96  }
 0x1ae   : > { %9558 = vsyncadd (%p10592_p9), [#allocation38], 4294967200  ;;  %p10593_p10 = pmov %p10571_p0 }
 0x1af   : > { %p10594_p11 = pmov %p10571_p0 }
 0x1b0   : > { %9560 = dma.done.wait (%p10593_p10), [#allocation41], 64  }
 0x1b1   : > { %9562 = vsyncadd (%p10594_p11), [#allocation41], 4294967232  ;;  %s10595_s16 = sld [smem:[#allocation56_spill]]  ;;  %s7024_s28 = sshll.u32 %s9844_s0, 2  ;;  %v8262_v6 = vld [vmem:[#allocation2] sm:$0xff]   ;;  %vm1575_vm0 = vcmask 261120  }
 0x1b2   : > { %p1524_p12 = scmp.lt.s32.totalorder %s7024_s28, 7  ;;  %s10596_s1 = sld [smem:[#allocation57_spill]]  ;;  %v8264_v7 = vld [vmem:[#allocation4] sm:$0xff]   ;;  %7708 = vmatprep.mubr.msk.bf16.mxu0 %vm1575_vm0, %v8262_v6  ;;  %v8263_v8 = vld [vmem:[#allocation2 + $0x8] sm:$0xff]   ;;  %v8265_v10 = vld [vmem:[#allocation4 + $0x8] sm:$0xff]   ;;  %vm1735_vm1 = vcmask 392192  }
 0x1b3   : > { %7716 = vmatprep.mubr.msk.bf16.mxu1 %vm1575_vm0, %v8264_v7  ;;  %v9635_v31 = vmov 0.0   ;;  %v10137_v32 = vld [vmem:[#allocation12] sm:$0xff]   ;;  %vm9636_vm2 = vmmov 0   ;;  %s10597_s7 = sld [smem:[#allocation58_spill]]  ;;  %s7026_s10 = sshll.u32 %s9844_s0, 1  ;;  %v10171_v6 = vld [vmem:[#allocation13 + $0x8] sm:$0xff]  }
 0x1b4   : > { %s10605_s28 = smov (!%p1524_p12, %s7024_s28), 7  ;;  %p1530_p13 = scmp.lt.s32.totalorder %s7026_s10, 3  ;;  %v8312_v7 = vld [vmem:[#allocation9 + $0x28] sm:$0xff]   ;;  %vm3786_vm3 = vcmask 130048   ;;  %vm5472_vm4 = vcmask 1043456   ;;  %vm5468_vm5 = vcmask 64512  }
 0x1b5   : > { %s7025_s11 = sshll.u32 %s10605_s28, 3  ;;  %s10598_s0 = sld [smem:[#allocation63_spill]]  ;;  %vm6514_vm6 = vcmask 517120   ;;  %vm6517_vm7 = vcmask 519170  }
 0x1b6   : > { %s10607_s10 = smov (!%p1530_p13, %s7026_s10), 3  ;;  %s10599_s23 = sld [smem:[#allocation60_spill]] }
 0x1b7   : > { %s1527_s3 = scalar_lea.vmem %s10595_s16, %s7025_s11  ;;  %s7509_s2 = sshll.u32 %s10607_s10, 4 }
 0x1b8   : > { %v1557_v0 = vld [vmem:[%s1527_s3 + $0x10] sm:$0xff]  ;;  %v1558_v1 = vld [vmem:[%s1527_s3 + $0x18] sm:$0xff]  ;;  %v1555_v2 = vld [vmem:[%s1527_s3] sm:$0xff]  ;;  %s1534_s18 = scalar_lea.vmem %s9821_s14, %s7509_s2  ;;  %s10600_s26 = sld [smem:[#allocation59_spill]] }
 0x1b9   : > { %v1560_v3 = vpack.c.bf16 %v1558_v1, %v1557_v0  ;;  %v1556_v4 = vld [vmem:[%s1527_s3 + $0x8] sm:$0xff]  ;;  %v8267_v11 = vld [vmem:[%s10596_s1 + $0x20] sm:$0xff]   ;;  %v8268_v12 = vld [vmem:[%s10596_s1 + $0x18] sm:$0xff]   ;;  %s10601_s5 = sld [smem:[#allocation64_spill]]  ;;  %s7030_s8 = sshll.u32 %s10607_s10, 3 }
 0x1ba   : > { %v1559_v5 = vpack.c.bf16 %v1556_v4, %v1555_v2  ;;  %v8266_v9 = vld [vmem:[%s10596_s1 + $0x28] sm:$0xff]   ;;  %v8269_v13 = vld [vmem:[%s10596_s1 + $0x10] sm:$0xff]   ;;  %v8271_v15 = vld [vmem:[%s10596_s1] sm:$0xff]   ;;  %s1540_s4 = scalar_lea.vmem %s9826_s6, %s7030_s8  ;;  %s7032_s22 = sshll.u32 %s10607_s10, 2 }
 0x1bb   : > { %7704 = vmatprep.subr.bf16.mxu0 %v1560_v3  ;;  %7712 = vmatprep.subr.bf16.mxu1 %v1560_v3  ;;  %v8270_v14 = vld [vmem:[%s10596_s1 + $0x8] sm:$0xff]   ;;  %v8272_v16 = vld [vmem:[%s10596_s1 + $0x40] sm:$0xff]   ;;  %v8273_v28 = vld [vmem:[%s10596_s1 + $0x38] sm:$0xff]   ;;  %s10602_s16 = sld [smem:[#allocation76_spill]]  ;;  %s1546_s28 = scalar_lea.vmem %s9831_s24, %s7032_s22 }
 0x1bc   : > { %7705 = vmatpush3.bf16.msra.mxu0 %v1560_v3  ;;  %7713 = vmatpush3.bf16.msra.mxu1 %v1560_v3  ;;  %v8274_v29 = vld [vmem:[%s10596_s1 + $0x30] sm:$0xff]   ;;  %v7070_v43 = vld [vmem:[%s10597_s7] ss:$0 sm:$0xff]  ;;  %s10603_s11 = sld [smem:[#allocation78_spill]]  ;;  %s7034_s3 = sshll.u32 %s10607_s10, 1 }
 0x1bd   : > { %7706 = vmatprep.subr.bf16.mxu0 %v1559_v5  ;;  %7714 = vmatprep.subr.bf16.mxu1 %v1559_v5  ;;  %v8275_v0 = vld [vmem:[%s10598_s0] sm:$0xff]   ;;  %v10156_v1 = vld [vmem:[#allocation12 + $0x8] sm:$0xff]   ;;  %s1552_s7 = scalar_lea.vmem %s9836_s20, %s7034_s3 }
 0x1be   : > { %v8304_v2 = vld [vmem:[#allocation9 + $0x38] sm:$0xff]   ;;  %v8308_v4 = vld [vmem:[#allocation9 + $0x30] sm:$0xff]  }
 0x1c0   : > { %7707 = vmatpush3.bf16.msra.mxu0 %v1559_v5  ;;  %7715 = vmatpush3.bf16.msra.mxu1 %v1559_v5 }
 0x1c1   : > { %7720 = vmatprep.subr.bf16.mxu0 %v8266_v9  ;;  %7750 = vmatprep.subr.bf16.mxu1 %v9635_v31 }
 0x1c3   : > { %7709 = vmatmul.mubr.msk.bf16.vlgmr.msra.gmra.mxu0 %vm1575_vm0, %v8263_v8  ;;  %7717 = vmatmul.mubr.msk.bf16.vlgmr.msra.gmra.mxu1 %vm1575_vm0, %v8265_v10  ;;  %v8280_v8 = vld [vmem:[#allocation6 + $0x70] ss:$8 sps:$4 sm:$0xff]   ;;  %v8316_v10 = vld [vmem:[#allocation9 + $0x20] sm:$0xff]  }
 0x1c4   : > { %7721 = vmatpush3.bf16.msra.mxu0 %v8266_v9  ;;  %7726 = vmatprep.mubr.msk.bf16.mxu0 %vm1735_vm1, %v1559_v5  ;;  %v8282_v5 = vld [vmem:[#allocation6 + $0x74] ss:$8 sps:$4 sm:$0xff]   ;;  %v8285_v9 = vld [vmem:[#allocation6 + $0x64] ss:$8 sps:$4 sm:$0xff]  }
 0x1c5   : > { %7722 = vmatprep.subr.bf16.mxu0 %v8267_v11  ;;  %7754 = vmatprep.mubr.msk.bf16.mxu1 %vm9636_vm2, %v9635_v31 }
 0x1c8   : > { %7723 = vmatpush3.bf16.msra.mxu0 %v8267_v11  ;;  %v8283_v11 = vld [vmem:[#allocation6 + $0x60] ss:$8 sps:$4 sm:$0xff]  }
 0x1c9   : > { %7724 = vmatprep.subr.bf16.mxu0 %v8268_v12 }
 0x1cc   : > { %7725 = vmatpush3.bf16.msra.mxu0 %v8268_v12  ;;  %v8288_v12 = vld [vmem:[#allocation6 + $0x54] ss:$8 sps:$4 sm:$0xff]  }
 0x1cd   : > { %7730 = vmatprep.subr.bf16.mxu0 %v8269_v13 }
 0x1cf   : > { %7727 = vmatmul.mubr.msk.bf16.vlgmr.msra.gmra.mxu0 %vm1735_vm1, %v1560_v3  ;;  %v10158_v3 = vld [vmem:[#allocation13] sm:$0xff]  }
 0x1d0   : > { %7731 = vmatpush3.bf16.msra.mxu0 %v8269_v13  ;;  %v8320_v13 = vld [vmem:[#allocation9 + $0x18] sm:$0xff]  }
 0x1d1   : > { %7732 = vmatprep.subr.bf16.mxu0 %v8270_v14 }
 0x1d4   : > { %7733 = vmatpush3.bf16.msra.mxu0 %v8270_v14  ;;  %v8286_v14 = vld [vmem:[#allocation6 + $0x50] ss:$8 sps:$4 sm:$0xff]  }
 0x1d5   : > { %7734 = vmatprep.subr.bf16.mxu0 %v8271_v15 }
 0x1d8   : > { %7735 = vmatpush3.bf16.msra.mxu0 %v8271_v15  ;;  %v8291_v15 = vld [vmem:[#allocation6 + $0x44] ss:$8 sps:$4 sm:$0xff]  }
 0x1d9   : > { %7740 = vmatprep.subr.bf16.mxu0 %v8272_v16 }
 0x283   : > { %v7710_v17 = vpop.f32.mrf.mxu0  ;;  %v7718_v18 = vpop.f32.mrf.mxu1 }
 0x285   : > { %v1616_v19 = vpop.f32.mrf.mxu0  ;;  %v1687_v20 = vpop.f32.mrf.mxu1 }
 0x287   : > { %v7711_v21 = vpop.f32.mrf.mxu0  ;;  %v7719_v22 = vpop.f32.mrf.mxu1 }
 0x288   : > { %v1632_v27 = vpack.c.bf16 %v7711_v21, %v7710_v17  ;;  %v1703_v30 = vpack.c.bf16 %v7719_v22, %v7718_v18  ;;  %v8289_v17 = vld [vmem:[#allocation6 + $0x40] ss:$8 sps:$4 sm:$0xff]   ;;  %v8294_v18 = vld [vmem:[#allocation6 + $0x34] ss:$8 sps:$4 sm:$0xff]   ;;  %v8297_v21 = vld [vmem:[#allocation6 + $0x24] ss:$8 sps:$4 sm:$0xff]  }
 0x289   : > { %v1619_v23 = vpop.f32.mrf.mxu0  ;;  %v1690_v24 = vpop.f32.mrf.mxu1  ;;  %v8295_v22 = vld [vmem:[#allocation6 + $0x20] ss:$8 sps:$4 sm:$0xff]  }
 0x28a   : > { %v1631_v25 = vpack.c.bf16 %v1619_v23, %v1616_v19  ;;  %v1702_v26 = vpack.c.bf16 %v1690_v24, %v1687_v20  ;;  %v8328_v19 = vld [vmem:[#allocation9 + $0x8] sm:$0xff]   ;;  %v8300_v23 = vld [vmem:[#allocation6 + $0x14] ss:$8 sps:$4 sm:$0xff]  }
 0x28b   : > { %v8292_v20 = vld [vmem:[#allocation6 + $0x30] ss:$8 sps:$4 sm:$0xff]  }
 0x28c   : > { %7736 = vmatprep.mubr.msk.bf16.mxu0 %vm1735_vm1, %v1631_v25  ;;  %v8298_v24 = vld [vmem:[#allocation6 + $0x10] ss:$8 sps:$4 sm:$0xff]   ;;  %v8303_v25 = vld [vmem:[#allocation6 + $0x4] ss:$8 sps:$4 sm:$0xff]  }
 0x28d   : > { %7737 = vmatmul.mubr.msk.bf16.vlgmr.msra.gmra.mxu0 %vm1735_vm1, %v1632_v27  ;;  %v8307_v27 = vld [vmem:[#allocation6 + $0xf4] ss:$8 sps:$4 sm:$0xff]  }
 0x28e   : > { %7741 = vmatpush3.bf16.msra.mxu0 %v8272_v16  ;;  %7746 = vmatprep.mubr.msk.bf16.mxu0 %vm1735_vm1, %v1702_v26  ;;  %v8324_v16 = vld [vmem:[#allocation9 + $0x10] sm:$0xff]   ;;  %v8301_v26 = vld [vmem:[#allocation6] ss:$8 sps:$4 sm:$0xff]  }
 0x28f   : > { %7742 = vmatprep.subr.bf16.mxu0 %v8273_v28  ;;  %v7728_v33 = vpop.f32.mrf.mxu0 }
 0x291   : > { %v1776_v34 = vpop.f32.mrf.mxu0 }
 0x292   : > { %7743 = vmatpush3.bf16.msra.mxu0 %v8273_v28  ;;  %v8305_v28 = vld [vmem:[#allocation6 + $0xf0] ss:$8 sps:$4 sm:$0xff]  }
 0x293   : > { %7744 = vmatprep.subr.bf16.mxu0 %v8274_v29  ;;  %v7729_v35 = vpop.f32.mrf.mxu0 }
 0x295   : > { %v1779_v36 = vpop.f32.mrf.mxu0 }
 0x296   : > { %7745 = vmatpush3.bf16.msra.mxu0 %v8274_v29  ;;  %v8311_v29 = vld [vmem:[#allocation6 + $0xe4] ss:$8 sps:$4 sm:$0xff]  }
 0x299   : > { %7747 = vmatmul.mubr.msk.bf16.vlgmr.msra.gmra.mxu0 %vm1735_vm1, %v1703_v30  ;;  %v8309_v30 = vld [vmem:[#allocation6 + $0xe0] ss:$8 sps:$4 sm:$0xff]  }
 0x29a   : > { %7782 = vmatprep.mubr.msk.bf16.mxu0 %vm1575_vm0, %v10137_v32 }
 0x34d   : > { %v7738_v37 = vpop.f32.mrf.mxu0 }
 0x34e   : > { %v1858_v41 = vadd.f32 %v7738_v37, %v7728_v33  ;;  %v8315_v33 = vld [vmem:[#allocation6 + $0xd4] ss:$8 sps:$4 sm:$0xff]  }
 0x34f   : > { %v1849_v38 = vpop.f32.mrf.mxu0  ;;  %v8323_v37 = vld [vmem:[#allocation6 + $0xb4] ss:$8 sps:$4 sm:$0xff]  }
 0x350   : > { %v1850_v44 = vadd.f32 %v1849_v38, %v1776_v34  ;;  %v8313_v34 = vld [vmem:[#allocation6 + $0xd0] ss:$8 sps:$4 sm:$0xff]  }
 0x351   : > { %v7739_v39 = vpop.f32.mrf.mxu0  ;;  %v8321_v38 = vld [vmem:[#allocation6 + $0xb0] ss:$8 sps:$4 sm:$0xff]  }
 0x352   : > { %v1861_v47 = vadd.f32 %v7739_v39, %v7729_v35  ;;  %v8319_v35 = vld [vmem:[#allocation6 + $0xc4] ss:$8 sps:$4 sm:$0xff]  }
 0x353   : > { %v1852_v40 = vpop.f32.mrf.mxu0  ;;  %v8327_v39 = vld [vmem:[#allocation6 + $0xa4] ss:$8 sps:$4 sm:$0xff]  }
 0x354   : > { %v1853_v51 = vadd.f32 %v1852_v40, %v1779_v36  ;;  %v8317_v36 = vld [vmem:[#allocation6 + $0xc0] ss:$8 sps:$4 sm:$0xff]  }
 0x355   : > { %v8325_v40 = vld [vmem:[#allocation6 + $0xa0] ss:$8 sps:$4 sm:$0xff]  }
 0x359   : > { %v7748_v42 = vpop.f32.mrf.mxu0 }
 0x35a   : > { %v1946_v45 = vadd.f32 %v7748_v42, %v1858_v41  ;;  %v8331_v41 = vld [vmem:[#allocation6 + $0x94] ss:$8 sps:$4 sm:$0xff]   ;;  %v8329_v42 = vld [vmem:[#allocation6 + $0x90] ss:$8 sps:$4 sm:$0xff]  }
 0x35b   : > { %v1929_v46 = vpop.f32.mrf.mxu0 }
 0x35c   : > { %v1957_v48 = vadd.f32 %v7070_v43, %v1946_v45  ;;  %v1944_v49 = vadd.f32 %v1929_v46, %v1850_v44  ;;  %v8335_v44 = vld [vmem:[#allocation6 + $0x84] ss:$8 sps:$4 sm:$0xff]   ;;  %v8338_v45 = vld [vmem:[#allocation6 + $0x174] ss:$8 sps:$4 sm:$0xff]   ;;  %v8333_v46 = vld [vmem:[#allocation6 + $0x80] ss:$8 sps:$4 sm:$0xff]  }
 0x35d   : > { %v7749_v50 = vpop.f32.mrf.mxu0 }
 0x35e   : > { %v1961_v52 = vmax.f32 %v1957_v48, 0.0  ;;  %v1955_v53 = vadd.f32 %v7070_v43, %v1944_v49  ;;  %v1947_v54 = vadd.f32 %v7749_v50, %v1861_v47 }
 0x35f   : > { %v1932_v55 = vpop.f32.mrf.mxu0 }
 0x360   : > { %1965 = vst [vmem:[%s1534_s18 + $0x10] sm:$0xff] %v1961_v52  ;;  %v1959_v56 = vmax.f32 %v1955_v53, 0.0  ;;  %v1958_v57 = vadd.f32 %v7070_v43, %v1947_v54  ;;  %v1945_v58 = vadd.f32 %v1932_v55, %v1853_v51  ;;  %v8341_v55 = vld [vmem:[#allocation6 + $0x164] ss:$8 sps:$4 sm:$0xff]  }
 0x362   : > { %1963 = vst [vmem:[%s1534_s18] sm:$0xff] %v1959_v56  ;;  %v1962_v59 = vmax.f32 %v1958_v57, 0.0  ;;  %v1956_v60 = vadd.f32 %v7070_v43, %v1945_v58  ;;  %v8332_v43 = vld [vmem:[#allocation9] sm:$0xff]  }
 0x364   : > { %1966 = vst [vmem:[%s1534_s18 + $0x18] sm:$0xff] %v1962_v59  ;;  %v10149_v61 = vpack.c.bf16 %v1962_v59, %v1961_v52  ;;  %v1960_v62 = vmax.f32 %v1956_v60, 0.0  ;;  %v8336_v52 = vld [vmem:[#allocation6 + $0x170] ss:$8 sps:$4 sm:$0xff]   ;;  %v8339_v59 = vld [vmem:[#allocation6 + $0x160] ss:$8 sps:$4 sm:$0xff]  }
 0x365   : > { %v9637_v60 = vmov 0  }
 0x366   : > { %1964 = vst [vmem:[%s1534_s18 + $0x8] sm:$0xff] %v1960_v62  ;;  %v1967_v63 = vpack.c.bf16 %v1960_v62, %v1959_v56  ;;  %7751 = vmatpush3.bf16.msra.mxu1 %v10149_v61  ;;  %7778 = vmatprep.subr.bf16.mxu0 %v10149_v61  ;;  %v8344_v62 = vld [vmem:[#allocation6 + $0x154] ss:$8 sps:$4 sm:$0xff]  }
 0x367   : > { %7779 = vmatpush3.bf16.msra.mxu0 %v10149_v61  ;;  %7752 = vmatprep.subr.bf16.mxu1 %v9635_v31 }
 0x368   : > { %7780 = vmatprep.subr.bf16.mxu0 %v1967_v63 }
 0x36a   : > { %7753 = vmatpush3.bf16.msra.mxu1 %v1967_v63 }
 0x36b   : > { %7781 = vmatpush3.bf16.msra.mxu0 %v1967_v63  ;;  %7758 = vmatprep.subr.bf16.mxu1 %v9635_v31 }
 0x36c   : > { %7786 = vmatprep.subr.bf16.mxu0 %v10149_v61 }
 0x36d   : > { %7755 = vmatmul.mubr.msk.bf16.vlgmr.msra.gmra.mxu1 %vm1575_vm0, %v8275_v0  ;;  %v8347_v0 = vld [vmem:[#allocation6 + $0x144] ss:$8 sps:$4 sm:$0xff]  }
 0x36e   : > { %7783 = vmatmul.mubr.msk.bf16.vlgmr.msra.gmra.mxu0 %vm1575_vm0, %v10156_v1  ;;  %7759 = vmatpush3.bf16.msra.mxu1 %v8304_v2 }
 0x36f   : > { %7787 = vmatpush3.bf16.msra.mxu0 %v10149_v61  ;;  %7790 = vmatprep.mubr.msk.bf16.mxu0 %vm1575_vm0, %v10158_v3 }
 0x370   : > { %7788 = vmatprep.subr.bf16.mxu0 %v1967_v63  ;;  %7760 = vmatprep.subr.bf16.mxu1 %v9635_v31 }
 0x371   : > { %7774 = vmatprep.mubr.msk.bf16.mxu1 %vm9636_vm2, %v9635_v31 }
 0x372   : > { %7761 = vmatpush3.bf16.msra.mxu1 %v8308_v4  ;;  %v8345_v4 = vld [vmem:[#allocation6 + $0x140] ss:$8 sps:$4 sm:$0xff]  }
 0x373   : > { %7789 = vmatpush3.bf16.msra.mxu0 %v1967_v63  ;;  %7762 = vmatprep.subr.bf16.mxu1 %v9635_v31 }
 0x374   : > { %2577 = vmatprep.subr.bf16.mxu0 %v8282_v5  ;;  %v8350_v5 = vld [vmem:[#allocation6 + $0x134] ss:$8 sps:$4 sm:$0xff]  }
 0x376   : > { %7791 = vmatmul.mubr.msk.bf16.vlgmr.msra.gmra.mxu0 %vm1575_vm0, %v10171_v6  ;;  %7763 = vmatpush3.bf16.msra.mxu1 %v8312_v7  ;;  %v8348_v7 = vld [vmem:[#allocation6 + $0x130] ss:$8 sps:$4 sm:$0xff]  }
 0x377   : > { %2609 = vmatprep.mubr.bf16.mxu0 %v1967_v63  ;;  %2578 = vmatpush1.bf16.msra.mxu0 %v8280_v8  ;;  %v8342_v63 = vld [vmem:[#allocation6 + $0x150] ss:$8 sps:$4 sm:$0xff]   ;;  %v8353_v8 = vld [vmem:[#allocation6 + $0x124] ss:$8 sps:$4 sm:$0xff]  }
 0x378   : > { %2579 = vmatprep.subr.bf16.mxu0 %v8285_v9  ;;  %7764 = vmatprep.subr.bf16.mxu1 %v9635_v31 }
 0x37a   : > { %7765 = vmatpush3.bf16.msra.mxu1 %v8316_v10  ;;  %v8351_v10 = vld [vmem:[#allocation6 + $0x120] ss:$8 sps:$4 sm:$0xff]  }
 0x37b   : > { %2580 = vmatpush1.bf16.msra.mxu0 %v8283_v11  ;;  %7766 = vmatprep.subr.bf16.mxu1 %v9635_v31  ;;  %v8356_v11 = vld [vmem:[#allocation6 + $0x114] ss:$8 sps:$4 sm:$0xff]  }
 0x37c   : > { %2581 = vmatprep.subr.bf16.mxu0 %v8288_v12  ;;  %v8354_v12 = vld [vmem:[#allocation6 + $0x110] ss:$8 sps:$4 sm:$0xff]  }
 0x37e   : > { %7767 = vmatpush3.bf16.msra.mxu1 %v8320_v13  ;;  %v8359_v13 = vld [vmem:[#allocation6 + $0x104] ss:$8 sps:$4 sm:$0xff]  }
 0x37f   : > { %2582 = vmatpush1.bf16.msra.mxu0 %v8286_v14  ;;  %7768 = vmatprep.subr.bf16.mxu1 %v9635_v31 }
 0x380   : > { %2583 = vmatprep.subr.bf16.mxu0 %v8291_v15  ;;  %v8357_v15 = vld [vmem:[#allocation6 + $0x100] ss:$8 sps:$4 sm:$0xff]  }
 0x382   : > { %7769 = vmatpush3.bf16.msra.mxu1 %v8324_v16 }
 0x383   : > { %2584 = vmatpush1.bf16.msra.mxu0 %v8289_v17  ;;  %7770 = vmatprep.subr.bf16.mxu1 %v9635_v31 }
 0x384   : > { %2585 = vmatprep.subr.bf16.mxu0 %v8294_v18 }
 0x386   : > { %7771 = vmatpush3.bf16.msra.mxu1 %v8328_v19 }
 0x387   : > { %2586 = vmatpush1.bf16.msra.mxu0 %v8292_v20  ;;  %7772 = vmatprep.subr.bf16.mxu1 %v9635_v31 }
 0x388   : > { %2587 = vmatprep.subr.bf16.mxu0 %v8297_v21 }
 0x38a   : > { %7773 = vmatpush3.bf16.msra.mxu1 %v8332_v43 }
 0x38b   : > { %2588 = vmatpush1.bf16.msra.mxu0 %v8295_v22  ;;  %2630 = vmatprep.subr.bf16.mxu1 %v8338_v45 }
 0x38c   : > { %2589 = vmatprep.subr.bf16.mxu0 %v8300_v23 }
 0x38f   : > { %2590 = vmatpush1.bf16.msra.mxu0 %v8298_v24 }
 0x390   : > { %2591 = vmatprep.subr.bf16.mxu0 %v8303_v25  ;;  %v8408_v25 = vld [vmem:[%s10599_s23 + $0x70] ss:$8 sps:$4 sm:$0xff]  }
 0x393   : > { %2592 = vmatpush1.bf16.msra.mxu0 %v8301_v26  ;;  %v8410_v26 = vld [vmem:[%s10599_s23 + $0x74] ss:$8 sps:$4 sm:$0xff]  }
 0x394   : > { %2593 = vmatprep.subr.bf16.mxu0 %v8307_v27 }
 0x397   : > { %2594 = vmatpush2.bf16.msra.mxu0 %v8305_v28  ;;  %v8413_v28 = vld [vmem:[%s10599_s23 + $0x64] ss:$8 sps:$4 sm:$0xff]  }
 0x398   : > { %2595 = vmatprep.subr.bf16.mxu0 %v8311_v29  ;;  %v8411_v29 = vld [vmem:[%s10599_s23 + $0x60] ss:$8 sps:$4 sm:$0xff]  }
 0x39b   : > { %2596 = vmatpush2.bf16.msra.mxu0 %v8309_v30  ;;  %v8416_v30 = vld [vmem:[%s10599_s23 + $0x54] ss:$8 sps:$4 sm:$0xff]  }
 0x39c   : > { %2597 = vmatprep.subr.bf16.mxu0 %v8315_v33 }
 0x39f   : > { %2598 = vmatpush2.bf16.msra.mxu0 %v8313_v34  ;;  %v2327_v34 = vlaneseq }
 0x3a0   : > { %2599 = vmatprep.subr.bf16.mxu0 %v8319_v35  ;;  %v8414_v35 = vld [vmem:[%s10599_s23 + $0x50] ss:$8 sps:$4 sm:$0xff]  }
 0x3a3   : > { %2600 = vmatpush2.bf16.msra.mxu0 %v8317_v36  ;;  %v8419_v36 = vld [vmem:[%s10599_s23 + $0x44] ss:$8 sps:$4 sm:$0xff]  }
 0x3a4   : > { %2601 = vmatprep.subr.bf16.mxu0 %v8323_v37 }
 0x3a7   : > { %2602 = vmatpush2.bf16.msra.mxu0 %v8321_v38  ;;  %v2328_v38 = vshrl.u32 %v2327_v34, 7  ;;  %v8432_v34 = vld [vmem:[%s10599_s23 + $0xf0] ss:$8 sps:$4 sm:$0xff]  }
 0x3a8   : > { %2603 = vmatprep.subr.bf16.mxu0 %v8327_v39 }
 0x3a9   : > { %v10202_v45 = vsub.s32 1, %v2328_v38 }
 0x3ab   : > { %2604 = vmatpush2.bf16.msra.mxu0 %v8325_v40  ;;  %v8417_v40 = vld [vmem:[%s10599_s23 + $0x40] ss:$8 sps:$4 sm:$0xff]  }
 0x3ac   : > { %2605 = vmatprep.subr.bf16.mxu0 %v8331_v41  ;;  %v8422_v41 = vld [vmem:[%s10599_s23 + $0x34] ss:$8 sps:$4 sm:$0xff]  }
 0x3af   : > { %2606 = vmatpush2.bf16.msra.mxu0 %v8329_v42 }
 0x3b0   : > { %2607 = vmatprep.subr.bf16.mxu0 %v8335_v44  ;;  %v10200_v44 = vsub.s32 0, %v2328_v38 }
 0x3b3   : > { %2608 = vmatpush2.bf16.msra.mxu0 %v8333_v46  ;;  %v2325_v46 = vld [vmem:[%s10600_s26] sm:$0x3] }
 0x3b4   : > { %3397 = vmatprep.subr.bf16.mxu0 %v8410_v26  ;;  %v8434_v26 = vld [vmem:[%s10599_s23 + $0xf4] ss:$8 sps:$4 sm:$0xff]  }
 0x42d   : > { %v2013_v47 = vpop.f32.mrf.mxu1 }
 0x42e   : > { %v7784_v48 = vpop.f32.mrf.mxu0 }
 0x42f   : > { %v7756_v49 = vpop.f32.mrf.mxu1 }
 0x430   : > { %v2189_v50 = vpop.f32.mrf.mxu0  ;;  %v8425_v49 = vld [vmem:[%s10599_s23 + $0x24] ss:$8 sps:$4 sm:$0xff]  }
 0x431   : > { %v2016_v51 = vpop.f32.mrf.mxu1 }
 0x432   : > { %v2020_v53 = vpack.c.bf16 %v2016_v51, %v2013_v47  ;;  %v7785_v54 = vpop.f32.mrf.mxu0 }
 0x433   : > { %v7757_v56 = vpop.f32.mrf.mxu1  ;;  %v2205_v2 = vpack.c.bf16 %v7785_v54, %v7784_v48  ;;  %v8420_v48 = vld [vmem:[%s10599_s23 + $0x30] ss:$8 sps:$4 sm:$0xff]  }
 0x434   : > { %7775 = vmatmul.mubr.bf16.vlgmr.msra.gmra.mxu1 %v2020_v53  ;;  %v2192_v57 = vpop.f32.mrf.mxu0  ;;  %v2334_v53 = vrot.slane %v2325_v46, %v10202_v45  ;;  %v8428_v56 = vld [vmem:[%s10599_s23 + $0x14] ss:$8 sps:$4 sm:$0xff]  }
 0x435   : > { %v2204_v58 = vpack.c.bf16 %v2192_v57, %v2189_v50  ;;  %2631 = vmatpush1.bf16.msra.mxu1 %v8336_v52  ;;  %2662 = vmatprep.mubr.bf16.mxu1 %v9637_v60  ;;  %v2330_v52 = vrot.slane %v2325_v46, %v10200_v44  ;;  %v8441_v46 = vld [vmem:[%s10599_s23 + $0xc0] ss:$8 sps:$4 sm:$0xff]  }
 0x436   : > { %2632 = vmatprep.subr.bf16.mxu1 %v8341_v55  ;;  %v7792_v9 = vpop.f32.mrf.mxu0  ;;  %v8423_v55 = vld [vmem:[%s10599_s23 + $0x20] ss:$8 sps:$4 sm:$0xff]  }
 0x437   : > { %2610 = vmatmul.mubr.bf16.vlgmr.msra.gmra.mxu0 %v2204_v58 }
 0x438   : > { %2619 = vmatprep.mubr.bf16.mxu0 %v10149_v61  ;;  %v2260_v61 = vpop.f32.mrf.mxu0  ;;  %3398 = vmatpush1.bf16.msra.mxu0 %v8408_v25 }
 0x439   : > { %2633 = vmatpush1.bf16.msra.mxu1 %v8339_v59  ;;  %3399 = vmatprep.subr.bf16.mxu0 %v8413_v28 }
 0x43a   : > { %2634 = vmatprep.subr.bf16.mxu1 %v8344_v62  ;;  %v7793_v14 = vpop.f32.mrf.mxu0 }
 0x43b   : > { %v2276_v18 = vpack.c.bf16 %v7793_v14, %v7792_v9 }
 0x43c   : > { %v2263_v16 = vpop.f32.mrf.mxu0  ;;  %3400 = vmatpush1.bf16.msra.mxu0 %v8411_v29 }
 0x43d   : > { %2635 = vmatpush1.bf16.msra.mxu1 %v8342_v63  ;;  %v2275_v17 = vpack.c.bf16 %v2263_v16, %v2260_v61  ;;  %3401 = vmatprep.subr.bf16.mxu0 %v8416_v30 }
 0x43e   : > { %2636 = vmatprep.subr.bf16.mxu1 %v8347_v0 }
 0x43f   : > { %2620 = vmatmul.mubr.bf16.gmra.mxu0 %v2205_v2 }
 0x440   : > { %3402 = vmatpush1.bf16.msra.mxu0 %v8414_v35 }
 0x441   : > { %2637 = vmatpush1.bf16.msra.mxu1 %v8345_v4  ;;  %3403 = vmatprep.subr.bf16.mxu0 %v8419_v36  ;;  %v8437_v36 = vld [vmem:[%s10599_s23 + $0xe4] ss:$8 sps:$4 sm:$0xff]  }
 0x442   : > { %2638 = vmatprep.subr.bf16.mxu1 %v8350_v5  ;;  %v8426_v5 = vld [vmem:[%s10599_s23 + $0x10] ss:$8 sps:$4 sm:$0xff]  }
 0x444   : > { %3404 = vmatpush1.bf16.msra.mxu0 %v8417_v40  ;;  %v8440_v40 = vld [vmem:[%s10599_s23 + $0xd4] ss:$8 sps:$4 sm:$0xff]  }
 0x445   : > { %2639 = vmatpush1.bf16.msra.mxu1 %v8348_v7  ;;  %3405 = vmatprep.subr.bf16.mxu0 %v8422_v41  ;;  %v8438_v41 = vld [vmem:[%s10599_s23 + $0xd0] ss:$8 sps:$4 sm:$0xff]  }
 0x446   : > { %2640 = vmatprep.subr.bf16.mxu1 %v8353_v8 }
 0x448   : > { %3406 = vmatpush1.bf16.msra.mxu0 %v8420_v48  ;;  %v8449_v48 = vld [vmem:[%s10599_s23 + $0xa4] ss:$8 sps:$4 sm:$0xff]  }
 0x449   : > { %2641 = vmatpush1.bf16.msra.mxu1 %v8351_v10  ;;  %3407 = vmatprep.subr.bf16.mxu0 %v8425_v49  ;;  %v8447_v49 = vld [vmem:[%s10599_s23 + $0xa0] ss:$8 sps:$4 sm:$0xff]  }
 0x44a   : > { %2642 = vmatprep.subr.bf16.mxu1 %v8356_v11  ;;  %v8431_v11 = vld [vmem:[%s10599_s23 + $0x4] ss:$8 sps:$4 sm:$0xff]  }
 0x44c   : > { %3408 = vmatpush1.bf16.msra.mxu0 %v8423_v55  ;;  %v8374_v55 = vld [vmem:[%s10599_s23 + $0x134] ss:$8 sps:$4 sm:$0xff]  }
 0x44d   : > { %2643 = vmatpush1.bf16.msra.mxu1 %v8354_v12  ;;  %3409 = vmatprep.subr.bf16.mxu0 %v8428_v56  ;;  %v8372_v56 = vld [vmem:[%s10599_s23 + $0x130] ss:$8 sps:$4 sm:$0xff]  }
 0x44e   : > { %2644 = vmatprep.subr.bf16.mxu1 %v8359_v13 }
 0x450   : > { %3410 = vmatpush1.bf16.msra.mxu0 %v8426_v5  ;;  %v8387_v5 = vld [vmem:[%s10599_s23 + $0x1e0] ss:$8 sps:$4 sm:$0xff]  }
 0x451   : > { %2645 = vmatpush1.bf16.msra.mxu1 %v8357_v15  ;;  %3411 = vmatprep.subr.bf16.mxu0 %v8431_v11  ;;  %v8398_v11 = vld [vmem:[%s10599_s23 + $0x1b4] ss:$8 sps:$4 sm:$0xff]  }
 0x454   : > { %2663 = vmatmul.mubr.bf16.vlgmr.msra.gmra.mxu1 %v2275_v17 }
 0x455   : > { %2672 = vmatprep.mubr.bf16.mxu1 %v9637_v60 }
 0x45c   : > { %2673 = vmatmul.mubr.bf16.gmra.mxu1 %v2276_v18 }
 0x45d   : > { %2727 = vmatprep.mubr.bf16.mxu1 %v9637_v60 }
 0x4f4   : > { %v10185_v19 = vpop.f32.mrf.mxu1 }
 0x4f6   : > { %v7776_v20 = vpop.f32.mrf.mxu1 }
 0x4f7   : > { %v10189_v23 = vpop.f32.mrf.mxu0  ;;  %v8429_v20 = vld [vmem:[%s10599_s23] ss:$8 sps:$4 sm:$0xff]  }
 0x4f8   : > { %v10187_v21 = vpop.f32.mrf.mxu1  ;;  %v2612_v16 = vadd.f32 %v10189_v23, %v2330_v52  ;;  %3412 = vmatpush1.bf16.msra.mxu0 %v8429_v20  ;;  %v8453_v20 = vld [vmem:[%s10599_s23 + $0x80] ss:$8 sps:$4 sm:$0xff]  }
 0x4f9   : > { %v2613_v24 = vpop.f32.mrf.mxu0  ;;  %3413 = vmatprep.subr.bf16.mxu0 %v8434_v26 }
 0x4fa   : > { %v7777_v22 = vpop.f32.mrf.mxu1  ;;  %v2614_v0 = vadd.f32 %v2613_v24, %v2334_v53 }
 0x4fb   : > { %v2615_v27 = vpop.f32.mrf.mxu0 }
 0x4fc   : > { %v2616_v61 = vadd.f32 %v2615_v27, %v2330_v52  ;;  %3414 = vmatpush2.bf16.msra.mxu0 %v8432_v34  ;;  %v8456_v34 = vld [vmem:[%s10599_s23 + $0x270] ss:$8 sps:$4 sm:$0xff]  }
 0x4fd   : > { %v2617_v33 = vpop.f32.mrf.mxu0  ;;  %3415 = vmatprep.subr.bf16.mxu0 %v8437_v36 }
 0x4fe   : > { %v2618_v59 = vadd.f32 %v2617_v33, %v2334_v53 }
 0x4ff   : > { %v2621_v37 = vpop.f32.mrf.mxu0 }
 0x500   : > { %v2622_v2 = vadd.f32 %v2621_v37, %v2330_v52 }
 0x501   : > { %v2623_v42 = vpop.f32.mrf.mxu0 }
 0x502   : > { %v2624_v62 = vadd.f32 %v2623_v42, %v2334_v53  ;;  %v8443_v42 = vld [vmem:[%s10599_s23 + $0xc4] ss:$8 sps:$4 sm:$0xff]  }
 0x503   : > { %v2625_v50 = vpop.f32.mrf.mxu0 }
 0x504   : > { %v2626_v63 = vadd.f32 %v2625_v50, %v2330_v52  ;;  %v8360_v50 = vld [vmem:[%s10599_s23 + $0x170] ss:$8 sps:$4 sm:$0xff]   ;;  %v8368_v52 = vld [vmem:[%s10599_s23 + $0x154] ss:$8 sps:$4 sm:$0xff]  }
 0x505   : > { %v2627_v57 = vpop.f32.mrf.mxu0 }
 0x506   : > { %v2628_v7 = vadd.f32 %v2627_v57, %v2334_v53  ;;  %v8366_v53 = vld [vmem:[%s10599_s23 + $0x150] ss:$8 sps:$4 sm:$0xff]   ;;  %v8377_v57 = vld [vmem:[%s10599_s23 + $0x124] ss:$8 sps:$4 sm:$0xff]  }
 0x514   : > { %v2664_v39 = vpop.f32.mrf.mxu1 }
 0x515   : > { %v2665_v28 = vadd.f32 %v2664_v39, %v2612_v16  ;;  %v8435_v39 = vld [vmem:[%s10599_s23 + $0xe0] ss:$8 sps:$4 sm:$0xff]   ;;  %v8404_v16 = vld [vmem:[%s10599_s23 + $0x194] ss:$8 sps:$4 sm:$0xff]  }
 0x516   : > { %v2666_v43 = vpop.f32.mrf.mxu1  ;;  %3416 = vmatpush2.bf16.msra.mxu0 %v8435_v39  ;;  %v8464_v39 = vld [vmem:[%s10599_s23 + $0x254] ss:$8 sps:$4 sm:$0xff]  }
 0x517   : > { %v2667_v14 = vadd.f32 %v2666_v43, %v2614_v0  ;;  %v2683_v37 = vmax.f32 %v2665_v28, 0.0  ;;  %3417 = vmatprep.subr.bf16.mxu0 %v8440_v40  ;;  %v8362_v43 = vld [vmem:[%s10599_s23 + $0x174] ss:$8 sps:$4 sm:$0xff]  }
 0x518   : > { %v2668_v47 = vpop.f32.mrf.mxu1  ;;  %v8386_v0 = vld [vmem:[%s10599_s23 + $0x1f4] ss:$8 sps:$4 sm:$0xff]  }
 0x519   : > { %v2669_v17 = vadd.f32 %v2668_v47, %v2616_v61  ;;  %v2684_v27 = vmax.f32 %v2667_v14, 0.0  ;;  %v8446_v47 = vld [vmem:[%s10599_s23 + $0xb4] ss:$8 sps:$4 sm:$0xff]   ;;  %v8396_v61 = vld [vmem:[%s10599_s23 + $0x1b0] ss:$8 sps:$4 sm:$0xff]  }
 0x51a   : > { %v2670_v51 = vpop.f32.mrf.mxu1  ;;  %3418 = vmatpush2.bf16.msra.mxu0 %v8438_v41  ;;  %v8452_v14 = vld [vmem:[%s10599_s23 + $0x94] ss:$8 sps:$4 sm:$0xff]  }
 0x51b   : > { %v2671_v8 = vadd.f32 %v2670_v51, %v2618_v59  ;;  %v2685_v33 = vmax.f32 %v2669_v17, 0.0  ;;  %3419 = vmatprep.subr.bf16.mxu0 %v8443_v42  ;;  %v8365_v51 = vld [vmem:[%s10599_s23 + $0x164] ss:$8 sps:$4 sm:$0xff]   ;;  %v8380_v59 = vld [vmem:[%s10599_s23 + $0x114] ss:$8 sps:$4 sm:$0xff]  }
 0x51c   : > { %v2674_v54 = vpop.f32.mrf.mxu1  ;;  %v8455_v17 = vld [vmem:[%s10599_s23 + $0x84] ss:$8 sps:$4 sm:$0xff]  }
 0x51d   : > { %v2675_v12 = vadd.f32 %v2674_v54, %v2622_v2  ;;  %v2686_v22 = vmax.f32 %v2671_v8, 0.0  ;;  %v10224_v38 = vpack.c.bf16 %v2685_v33, %v2683_v37  ;;  %v8371_v54 = vld [vmem:[%s10599_s23 + $0x144] ss:$8 sps:$4 sm:$0xff]   ;;  %v8384_v2 = vld [vmem:[%s10599_s23 + $0x1f0] ss:$8 sps:$4 sm:$0xff]  }
 0x51e   : > { %v2676_v58 = vpop.f32.mrf.mxu1  ;;  %3420 = vmatpush2.bf16.msra.mxu0 %v8441_v46  ;;  %v8390_v8 = vld [vmem:[%s10599_s23 + $0x1d0] ss:$8 sps:$4 sm:$0xff]   ;;  %v8461_v37 = vld [vmem:[%s10599_s23 + $0x264] ss:$8 sps:$4 sm:$0xff]  }
 0x51f   : > { %v2677_v9 = vadd.f32 %v2676_v58, %v2624_v62  ;;  %v2687_v29 = vmax.f32 %v2675_v12, 0.0  ;;  %v2692_v35 = vpack.c.bf16 %v2686_v22, %v2684_v27  ;;  %3421 = vmatprep.subr.bf16.mxu0 %v8446_v47  ;;  %v8375_v58 = vld [vmem:[%s10599_s23 + $0x120] ss:$8 sps:$4 sm:$0xff]   ;;  %v8383_v62 = vld [vmem:[%s10599_s23 + $0x104] ss:$8 sps:$4 sm:$0xff]  }
 0x520   : > { %v2678_v4 = vpop.f32.mrf.mxu1  ;;  %v8401_v12 = vld [vmem:[%s10599_s23 + $0x1a4] ss:$8 sps:$4 sm:$0xff]  }
 0x521   : > { %v2679_v10 = vadd.f32 %v2678_v4, %v2626_v63  ;;  %v2688_v24 = vmax.f32 %v2677_v9, 0.0  ;;  %v8381_v63 = vld [vmem:[%s10599_s23 + $0x100] ss:$8 sps:$4 sm:$0xff]   ;;  %v8389_v4 = vld [vmem:[%s10599_s23 + $0x1e4] ss:$8 sps:$4 sm:$0xff]  }
 0x522   : > { %v2680_v13 = vpop.f32.mrf.mxu1  ;;  %v8395_v9 = vld [vmem:[%s10599_s23 + $0x1c4] ss:$8 sps:$4 sm:$0xff]  }
 0x523   : > { %v2681_v15 = vadd.f32 %v2680_v13, %v2628_v7  ;;  %v2689_v18 = vmax.f32 %v2679_v10, 0.0  ;;  %v8392_v7 = vld [vmem:[%s10599_s23 + $0x1d4] ss:$8 sps:$4 sm:$0xff]   ;;  %v8393_v10 = vld [vmem:[%s10599_s23 + $0x1c0] ss:$8 sps:$4 sm:$0xff]  }
 0x524   : > { %v8450_v13 = vld [vmem:[%s10599_s23 + $0x90] ss:$8 sps:$4 sm:$0xff]   ;;  %v8407_v22 = vld [vmem:[%s10599_s23 + $0x184] ss:$8 sps:$4 sm:$0xff]  }
 0x525   : > { %v2690_v25 = vmax.f32 %v2681_v15, 0.0  ;;  %v10218_v23 = vpack.c.bf16 %v2689_v18, %v2687_v29  ;;  %v8399_v15 = vld [vmem:[%s10599_s23 + $0x1a0] ss:$8 sps:$4 sm:$0xff]   ;;  %v8402_v18 = vld [vmem:[%s10599_s23 + $0x190] ss:$8 sps:$4 sm:$0xff]  }
 0x526   : > { %v8467_v46 = vld [vmem:[%s10599_s23 + $0x244] ss:$8 sps:$4 sm:$0xff]  }
 0x527   : > { %v10216_v30 = vpack.c.bf16 %v2690_v25, %v2688_v24  ;;  %v8458_v24 = vld [vmem:[%s10599_s23 + $0x274] ss:$8 sps:$4 sm:$0xff]   ;;  %v8405_v25 = vld [vmem:[%s10599_s23 + $0x180] ss:$8 sps:$4 sm:$0xff]  }
 0x529   : > { %2707 = vmatprep.subr.bf16.mxu1 %v10216_v30 }
 0x52a   : > { %2708 = vmatpush1.bf16.msra.mxu1 %v10218_v23 }
 0x52b   : > { %2709 = vmatprep.subr.bf16.mxu1 %v2692_v35 }
 0x52e   : > { %2710 = vmatpush1.bf16.msra.mxu1 %v10224_v38 }
 0x52f   : > { %2764 = vmatprep.subr.bf16.mxu1 %v10216_v30 }
 0x531   : > { %7138 = vmatmul.mubr.msk.bf16.vlgmr.msra.gmra.mxu1 %vm1575_vm0, %v10137_v32  ;;  %v8444_v32 = vld [vmem:[%s10599_s23 + $0xb0] ss:$8 sps:$4 sm:$0xff]  }
 0x532   : > { %2765 = vmatpush1.bf16.msra.mxu1 %v10218_v23  ;;  %2737 = vmatprep.mubr.bf16.mxu1 %v9637_v60 }
 0x533   : > { %2766 = vmatprep.subr.bf16.mxu1 %v2692_v35  ;;  %3422 = vmatpush2.bf16.msra.mxu0 %v8444_v32 }
 0x534   : > { %3423 = vmatprep.subr.bf16.mxu0 %v8449_v48  ;;  %v8465_v48 = vld [vmem:[%s10599_s23 + $0x240] ss:$8 sps:$4 sm:$0xff]  }
 0x536   : > { %2767 = vmatpush1.bf16.msra.mxu1 %v10224_v38 }
 0x537   : > { %3450 = vmatprep.subr.bf16.mxu1 %v8362_v43  ;;  %3424 = vmatpush2.bf16.msra.mxu0 %v8447_v49  ;;  %v8462_v43 = vld [vmem:[%s10599_s23 + $0x250] ss:$8 sps:$4 sm:$0xff]   ;;  %v8470_v49 = vld [vmem:[%s10599_s23 + $0x234] ss:$8 sps:$4 sm:$0xff]  }
 0x538   : > { %3425 = vmatprep.subr.bf16.mxu0 %v8452_v14  ;;  %v8503_v14 = vld [vmem:[%s10599_s23 + $0x284] ss:$8 sps:$4 sm:$0xff]  }
 0x539   : > { %7139 = vmatmul.mubr.msk.bf16.gmra.mxu1 %vm1575_vm0, %v10156_v1  ;;  %v8363_v1 = vld [vmem:[%s10599_s23 + $0x160] ss:$8 sps:$4 sm:$0xff]  }
 0x53a   : > { %2784 = vmatprep.mubr.bf16.mxu1 %v9637_v60 }
 0x53b   : > { %3426 = vmatpush2.bf16.msra.mxu0 %v8450_v13 }
 0x53c   : > { %3427 = vmatprep.subr.bf16.mxu0 %v8455_v17 }
 0x53f   : > { %3428 = vmatpush2.bf16.msra.mxu0 %v8453_v20 }
 0x540   : > { %3503 = vmatprep.subr.bf16.mxu0 %v8458_v24 }
 0x541   : > { %7140 = vmatmul.mubr.msk.bf16.vlgmr.msra.gmra.mxu1 %vm1575_vm0, %v10158_v3  ;;  %v8369_v3 = vld [vmem:[%s10599_s23 + $0x140] ss:$8 sps:$4 sm:$0xff]  }
 0x542   : > { %3451 = vmatpush1.bf16.msra.mxu1 %v8360_v50  ;;  %2794 = vmatprep.mubr.bf16.mxu1 %v9637_v60 }
 0x543   : > { %3452 = vmatprep.subr.bf16.mxu1 %v8365_v51 }
 0x546   : > { %3453 = vmatpush1.bf16.msra.mxu1 %v8363_v1  ;;  %v8468_v1 = vld [vmem:[%s10599_s23 + $0x230] ss:$8 sps:$4 sm:$0xff]  }
 0x547   : > { %3454 = vmatprep.subr.bf16.mxu1 %v8368_v52 }
 0x549   : > { %7141 = vmatmul.mubr.msk.bf16.gmra.mxu1 %vm1575_vm0, %v10171_v6  ;;  %v8378_v6 = vld [vmem:[%s10599_s23 + $0x110] ss:$8 sps:$4 sm:$0xff]  }
 0x54a   : > { %3455 = vmatpush1.bf16.msra.mxu1 %v8366_v53  ;;  %3482 = vmatprep.mubr.bf16.mxu1 %v2692_v35  ;;  %v8473_v53 = vld [vmem:[%s10599_s23 + $0x224] ss:$8 sps:$4 sm:$0xff]  }
 0x54b   : > { %3456 = vmatprep.subr.bf16.mxu1 %v8371_v54  ;;  %v8471_v54 = vld [vmem:[%s10599_s23 + $0x220] ss:$8 sps:$4 sm:$0xff]  }
 0x54e   : > { %3457 = vmatpush1.bf16.msra.mxu1 %v8369_v3  ;;  %v8476_v3 = vld [vmem:[%s10599_s23 + $0x214] ss:$8 sps:$4 sm:$0xff]  }
 0x54f   : > { %3458 = vmatprep.subr.bf16.mxu1 %v8374_v55  ;;  %v8474_v55 = vld [vmem:[%s10599_s23 + $0x210] ss:$8 sps:$4 sm:$0xff]  }
 0x552   : > { %3459 = vmatpush1.bf16.msra.mxu1 %v8372_v56  ;;  %v8479_v56 = vld [vmem:[%s10599_s23 + $0x204] ss:$8 sps:$4 sm:$0xff]  }
 0x553   : > { %3460 = vmatprep.subr.bf16.mxu1 %v8377_v57  ;;  %v8477_v57 = vld [vmem:[%s10599_s23 + $0x200] ss:$8 sps:$4 sm:$0xff]  }
 0x556   : > { %3461 = vmatpush1.bf16.msra.mxu1 %v8375_v58  ;;  %v8482_v58 = vld [vmem:[%s10599_s23 + $0x2f4] ss:$8 sps:$4 sm:$0xff]  }
 0x557   : > { %3462 = vmatprep.subr.bf16.mxu1 %v8380_v59  ;;  %v8480_v59 = vld [vmem:[%s10599_s23 + $0x2f0] ss:$8 sps:$4 sm:$0xff]  }
 0x55a   : > { %3463 = vmatpush1.bf16.msra.mxu1 %v8378_v6  ;;  %v8485_v6 = vld [vmem:[%s10599_s23 + $0x2e4] ss:$8 sps:$4 sm:$0xff]  }
 0x55b   : > { %3464 = vmatprep.subr.bf16.mxu1 %v8383_v62  ;;  %v8483_v62 = vld [vmem:[%s10599_s23 + $0x2e0] ss:$8 sps:$4 sm:$0xff]  }
 0x55e   : > { %3465 = vmatpush1.bf16.msra.mxu1 %v8381_v63  ;;  %v8488_v63 = vld [vmem:[%s10599_s23 + $0x2d4] ss:$8 sps:$4 sm:$0xff]  }
 0x55f   : > { %3466 = vmatprep.subr.bf16.mxu1 %v8386_v0  ;;  %v8486_v0 = vld [vmem:[%s10599_s23 + $0x2d0] ss:$8 sps:$4 sm:$0xff]  }
 0x562   : > { %3467 = vmatpush2.bf16.msra.mxu1 %v8384_v2  ;;  %v8491_v2 = vld [vmem:[%s10599_s23 + $0x2c4] ss:$8 sps:$4 sm:$0xff]  }
 0x563   : > { %3468 = vmatprep.subr.bf16.mxu1 %v8389_v4  ;;  %v8489_v4 = vld [vmem:[%s10599_s23 + $0x2c0] ss:$8 sps:$4 sm:$0xff]  }
 0x566   : > { %3469 = vmatpush2.bf16.msra.mxu1 %v8387_v5  ;;  %v8494_v5 = vld [vmem:[%s10599_s23 + $0x2b4] ss:$8 sps:$4 sm:$0xff]  }
 0x567   : > { %3470 = vmatprep.subr.bf16.mxu1 %v8392_v7  ;;  %v8492_v7 = vld [vmem:[%s10599_s23 + $0x2b0] ss:$8 sps:$4 sm:$0xff]  }
 0x56a   : > { %3471 = vmatpush2.bf16.msra.mxu1 %v8390_v8  ;;  %v8497_v8 = vld [vmem:[%s10599_s23 + $0x2a4] ss:$8 sps:$4 sm:$0xff]  }
 0x56b   : > { %3472 = vmatprep.subr.bf16.mxu1 %v8395_v9 }
 0x56e   : > { %3473 = vmatpush2.bf16.msra.mxu1 %v8393_v10  ;;  %v8495_v10 = vld [vmem:[%s10599_s23 + $0x2a0] ss:$8 sps:$4 sm:$0xff]  }
 0x56f   : > { %3474 = vmatprep.subr.bf16.mxu1 %v8398_v11  ;;  %v8500_v11 = vld [vmem:[%s10599_s23 + $0x294] ss:$8 sps:$4 sm:$0xff]  }
 0x572   : > { %3475 = vmatpush2.bf16.msra.mxu1 %v8396_v61 }
 0x573   : > { %3476 = vmatprep.subr.bf16.mxu1 %v8401_v12  ;;  %v8498_v12 = vld [vmem:[%s10599_s23 + $0x290] ss:$8 sps:$4 sm:$0xff]  }
 0x576   : > { %3477 = vmatpush2.bf16.msra.mxu1 %v8399_v15  ;;  %v8501_v15 = vld [vmem:[%s10599_s23 + $0x280] ss:$8 sps:$4 sm:$0xff]  }
 0x577   : > { %3478 = vmatprep.subr.bf16.mxu1 %v8404_v16 }
 0x57a   : > { %3479 = vmatpush2.bf16.msra.mxu1 %v8402_v18 }
 0x57b   : > { %3480 = vmatprep.subr.bf16.mxu1 %v8407_v22 }
 0x57e   : > { %3481 = vmatpush2.bf16.msra.mxu1 %v8405_v25 }
 0x581   : > { %3483 = vmatmul.mubr.bf16.vlgmr.msra.gmra.mxu1 %v10224_v38 }
 0x582   : > { %3492 = vmatprep.mubr.bf16.mxu1 %v10216_v30  ;;  %v8459_v30 = vld [vmem:[%s10599_s23 + $0x260] ss:$8 sps:$4 sm:$0xff]  }
 0x589   : > { %3493 = vmatmul.mubr.bf16.gmra.mxu1 %v10218_v23 }
 0x58a   : > { %3600 = vmatprep.mubr.bf16.mxu1 %v9637_v60 }
 0x5f1   : > { %v2729_v26 = vpop.f32.mrf.mxu1 }
 0x5f3   : > { %v2731_v28 = vpop.f32.mrf.mxu1 }
 0x5f5   : > { %v2733_v29 = vpop.f32.mrf.mxu1 }
 0x5f6   : > { %v2748_v35 = vpack.c.bf16 %v2733_v29, %v2729_v26 }
 0x5f7   : > { %v2735_v27 = vpop.f32.mrf.mxu1 }
 0x5f8   : > { %v2749_v33 = vpack.c.bf16 %v2735_v27, %v2731_v28 }
 0x5f9   : > { %v2739_v36 = vpop.f32.mrf.mxu1 }
 0x5fa   : > { %3429 = vmatprep.mubr.bf16.mxu0 %v2749_v33 }
 0x5fb   : > { %v2741_v38 = vpop.f32.mrf.mxu1  ;;  %3430 = vmatmul.mubr.bf16.vlgmr.msra.gmra.mxu0 %v2748_v35 }
 0x5fc   : > { %3504 = vmatpush1.bf16.msra.mxu0 %v8456_v34 }
 0x5fd   : > { %v2743_v23 = vpop.f32.mrf.mxu1  ;;  %3505 = vmatprep.subr.bf16.mxu0 %v8461_v37 }
 0x5fe   : > { %v2750_v40 = vpack.c.bf16 %v2743_v23, %v2739_v36  ;;  %v2905_v23 = vld [vmem:[#allocation7] sm:$0x3] }
 0x5ff   : > { %v2745_v41 = vpop.f32.mrf.mxu1 }
 0x600   : > { %v2751_v42 = vpack.c.bf16 %v2745_v41, %v2741_v38  ;;  %3506 = vmatpush1.bf16.msra.mxu0 %v8459_v30  ;;  %v2914_v41 = vrot.slane %v2905_v23, %v10202_v45 }
 0x601   : > { %3507 = vmatprep.subr.bf16.mxu0 %v8464_v39  ;;  %v10297_v47 = vpop.f32.mrf.mxu1 }
 0x602   : > { %3439 = vmatprep.mubr.bf16.mxu0 %v2751_v42 }
 0x603   : > { %3440 = vmatmul.mubr.bf16.gmra.mxu0 %v2750_v40  ;;  %v2788_v32 = vpop.f32.mrf.mxu1 }
 0x604   : > { %3508 = vmatpush1.bf16.msra.mxu0 %v8462_v43  ;;  %v2910_v43 = vrot.slane %v2905_v23, %v10200_v44  ;;  %v8512_v23 = vld [vmem:[%s10601_s5 + $0x58] sm:$0xff]  }
 0x605   : > { %3509 = vmatprep.subr.bf16.mxu0 %v8467_v46  ;;  %v2790_v50 = vpop.f32.mrf.mxu1 }
 0x606   : > { %v2805_v18 = vpack.c.bf16 %v2790_v50, %v10297_v47 }
 0x607   : > { %v2792_v51 = vpop.f32.mrf.mxu1 }
 0x608   : > { %3510 = vmatpush1.bf16.msra.mxu0 %v8465_v48  ;;  %v2806_v52 = vpack.c.bf16 %v2792_v51, %v2788_v32 }
 0x609   : > { %3511 = vmatprep.subr.bf16.mxu0 %v8470_v49  ;;  %v2796_v9 = vpop.f32.mrf.mxu1 }
 0x60a   : > { %3535 = vmatprep.mubr.bf16.mxu0 %v2806_v52 }
 0x60b   : > { %v2798_v61 = vpop.f32.mrf.mxu1 }
 0x60c   : > { %3512 = vmatpush1.bf16.msra.mxu0 %v8468_v1 }
 0x60d   : > { %3513 = vmatprep.subr.bf16.mxu0 %v8473_v53  ;;  %v2800_v13 = vpop.f32.mrf.mxu1 }
 0x60e   : > { %v2807_v20 = vpack.c.bf16 %v2800_v13, %v2796_v9 }
 0x60f   : > { %v2802_v16 = vpop.f32.mrf.mxu1 }
 0x610   : > { %3514 = vmatpush1.bf16.msra.mxu0 %v8471_v54  ;;  %v2808_v17 = vpack.c.bf16 %v2802_v16, %v2798_v61 }
 0x611   : > { %3515 = vmatprep.subr.bf16.mxu0 %v8476_v3 }
 0x614   : > { %3516 = vmatpush1.bf16.msra.mxu0 %v8474_v55 }
 0x615   : > { %3517 = vmatprep.subr.bf16.mxu0 %v8479_v56 }
 0x618   : > { %3518 = vmatpush1.bf16.msra.mxu0 %v8477_v57 }
 0x619   : > { %3519 = vmatprep.subr.bf16.mxu0 %v8482_v58 }
 0x61c   : > { %3520 = vmatpush2.bf16.msra.mxu0 %v8480_v59 }
 0x61d   : > { %3521 = vmatprep.subr.bf16.mxu0 %v8485_v6 }
 0x620   : > { %3522 = vmatpush2.bf16.msra.mxu0 %v8483_v62 }
 0x621   : > { %3523 = vmatprep.subr.bf16.mxu0 %v8488_v63 }
 0x624   : > { %3524 = vmatpush2.bf16.msra.mxu0 %v8486_v0 }
 0x625   : > { %3525 = vmatprep.subr.bf16.mxu0 %v8491_v2 }
 0x628   : > { %3526 = vmatpush2.bf16.msra.mxu0 %v8489_v4 }
 0x629   : > { %3527 = vmatprep.subr.bf16.mxu0 %v8494_v5 }
 0x62c   : > { %3528 = vmatpush2.bf16.msra.mxu0 %v8492_v7 }
 0x62d   : > { %3529 = vmatprep.subr.bf16.mxu0 %v8497_v8 }
 0x630   : > { %3530 = vmatpush2.bf16.msra.mxu0 %v8495_v10 }
 0x631   : > { %3531 = vmatprep.subr.bf16.mxu0 %v8500_v11 }
 0x634   : > { %3532 = vmatpush2.bf16.msra.mxu0 %v8498_v12 }
 0x635   : > { %3533 = vmatprep.subr.bf16.mxu0 %v8503_v14 }
 0x638   : > { %3534 = vmatpush2.bf16.msra.mxu0 %v8501_v15 }
 0x639   : > { %7800 = vmatprep.subr.bf16.mxu0 %v9635_v31 }
 0x63b   : > { %3536 = vmatmul.mubr.bf16.vlgmr.msra.gmra.mxu0 %v2805_v18 }
 0x63c   : > { %3545 = vmatprep.mubr.bf16.mxu0 %v2808_v17 }
 0x641   : > { %v3484_v28 = vpop.f32.mrf.mxu1 }
 0x643   : > { %3546 = vmatmul.mubr.bf16.gmra.mxu0 %v2807_v20  ;;  %v3486_v27 = vpop.f32.mrf.mxu1 }
 0x644   : > { %7816 = vmatprep.mubr.msk.bf16.mxu0 %vm9636_vm2, %v9635_v31 }
 0x645   : > { %v3488_v34 = vpop.f32.mrf.mxu1 }
 0x647   : > { %v3490_v36 = vpop.f32.mrf.mxu1 }
 0x649   : > { %v3494_v38 = vpop.f32.mrf.mxu1 }
 0x64b   : > { %v3496_v40 = vpop.f32.mrf.mxu1 }
 0x64d   : > { %v3498_v49 = vpop.f32.mrf.mxu1 }
 0x64f   : > { %v3500_v57 = vpop.f32.mrf.mxu1 }
 0x6bb   : > { %v3431_v22 = vpop.f32.mrf.mxu0 }
 0x6bc   : > { %v3432_v58 = vadd.f32 %v3431_v22, %v2910_v43 }
 0x6bd   : > { %v3433_v24 = vpop.f32.mrf.mxu0 }
 0x6be   : > { %v3434_v50 = vadd.f32 %v3433_v24, %v2914_v41  ;;  %v3485_v11 = vadd.f32 %v3484_v28, %v3432_v58  ;;  %v8504_v28 = vld [vmem:[%s10601_s5 + $0x78] sm:$0xff]   ;;  %v8562_v58 = vld [vmem:[#allocation21] sm:$0xff]  }
 0x6bf   : > { %v3435_v25 = vpop.f32.mrf.mxu0 }
 0x6c0   : > { %v3436_v53 = vadd.f32 %v3435_v25, %v2910_v43  ;;  %v3487_v59 = vadd.f32 %v3486_v27, %v3434_v50  ;;  %v8505_v27 = vld [vmem:[%s10601_s5 + $0x38] sm:$0xff]  }
 0x6c1   : > { %v3437_v26 = vpop.f32.mrf.mxu0 }
 0x6c2   : > { %v3438_v47 = vadd.f32 %v3437_v26, %v2914_v41  ;;  %v3489_v5 = vadd.f32 %v3488_v34, %v3436_v53  ;;  %v8826_v34 = vld [vmem:[%s10598_s0] sm:$0xff]   ;;  %v8538_v53 = vld [vmem:[#allocation21 + $0x30] sm:$0xff]  }
 0x6c3   : > { %v3441_v29 = vpop.f32.mrf.mxu0 }
 0x6c4   : > { %v3442_v51 = vadd.f32 %v3441_v29, %v2910_v43  ;;  %v3491_v3 = vadd.f32 %v3490_v36, %v3438_v47  ;;  %v8508_v36 = vld [vmem:[%s10601_s5 + $0x68] sm:$0xff]   ;;  %v8519_v47 = vld [vmem:[%s10601_s5] sm:$0xff]  }
 0x6c5   : > { %v3443_v33 = vpop.f32.mrf.mxu0 }
 0x6c6   : > { %v3444_v32 = vadd.f32 %v3443_v33, %v2914_v41  ;;  %v3495_v6 = vadd.f32 %v3494_v38, %v3442_v51  ;;  %v8506_v33 = vld [vmem:[%s10601_s5 + $0x70] sm:$0xff]   ;;  %v8510_v38 = vld [vmem:[%s10601_s5 + $0x60] sm:$0xff]  }
 0x6c7   : > { %v3445_v35 = vpop.f32.mrf.mxu0 }
 0x6c8   : > { %v3446_v48 = vadd.f32 %v3445_v35, %v2910_v43  ;;  %v3497_v55 = vadd.f32 %v3496_v40, %v3444_v32  ;;  %v8507_v35 = vld [vmem:[%s10601_s5 + $0x30] sm:$0xff]   ;;  %v8517_v43 = vld [vmem:[%s10601_s5 + $0x8] sm:$0xff]  }
 0x6c9   : > { %v3447_v37 = vpop.f32.mrf.mxu0  ;;  %v8514_v40 = vld [vmem:[%s10601_s5 + $0x50] sm:$0xff]  }
 0x6ca   : > { %v3448_v52 = vadd.f32 %v3447_v37, %v2914_v41  ;;  %v3499_v56 = vadd.f32 %v3498_v49, %v3446_v48  ;;  %v8509_v37 = vld [vmem:[%s10601_s5 + $0x28] sm:$0xff]   ;;  %v8515_v41 = vld [vmem:[%s10601_s5 + $0x10] sm:$0xff]  }
 0x6cc   : > { %v3501_v4 = vadd.f32 %v3500_v57, %v3448_v52  ;;  %v8534_v52 = vld [vmem:[#allocation21 + $0x38] sm:$0xff]   ;;  %v8558_v57 = vld [vmem:[#allocation21 + $0x8] sm:$0xff]  }
 0x6cd   : > { %7801 = vmatpush3.bf16.msra.mxu0 %v8534_v52  ;;  %v8566_v52 = vld [vmem:[#allocation15 + $0x170] ss:$8 sps:$4 sm:$0xff]  }
 0x6ce   : > { %7802 = vmatprep.subr.bf16.mxu0 %v9635_v31 }
 0x6d1   : > { %7803 = vmatpush3.bf16.msra.mxu0 %v8538_v53 }
 0x6d2   : > { %7804 = vmatprep.subr.bf16.mxu0 %v9635_v31 }
 0x6fb   : > { %v3537_v30 = vpop.f32.mrf.mxu0 }
 0x6fc   : > { %v3538_v16 = vadd.f32 %v3537_v30, %v3485_v11  ;;  %v8511_v30 = vld [vmem:[%s10601_s5 + $0x20] sm:$0xff]  }
 0x6fd   : > { %v3539_v39 = vpop.f32.mrf.mxu0 }
 0x6fe   : > { %v3540_v9 = vadd.f32 %v3539_v39, %v3487_v59  ;;  %v3556_v26 = vmax.f32 %v3538_v16, 0.0  ;;  %v8513_v39 = vld [vmem:[%s10601_s5 + $0x18] sm:$0xff]   ;;  %v7073_v59 = vld [vmem:[#allocation10] ss:$0 sm:$0xff]  ;;  %v8525_v16 = vld [vmem:[#allocation15 + $0x60] ss:$8 sps:$4 sm:$0xff]  }
 0x6ff   : > { %v3541_v42 = vpop.f32.mrf.mxu0 }
 0x700   : > { %v3542_v61 = vadd.f32 %v3541_v42, %v3489_v5  ;;  %v3557_v18 = vmax.f32 %v3540_v9, 0.0  ;;  %v8516_v42 = vld [vmem:[%s10601_s5 + $0x48] sm:$0xff]  }
 0x701   : > { %v3543_v46 = vpop.f32.mrf.mxu0 }
 0x702   : > { %v3544_v63 = vadd.f32 %v3543_v46, %v3491_v3  ;;  %v3558_v22 = vmax.f32 %v3542_v61, 0.0  ;;  %v8518_v46 = vld [vmem:[%s10601_s5 + $0x40] sm:$0xff]   ;;  %v8546_v3 = vld [vmem:[#allocation21 + $0x20] sm:$0xff]  }
 0x703   : > { %v3547_v1 = vpop.f32.mrf.mxu0 }
 0x704   : > { %v3548_v7 = vadd.f32 %v3547_v1, %v3495_v6  ;;  %v3559_v13 = vmax.f32 %v3544_v63, 0.0  ;;  %v3564_v29 = vpack.c.bf16 %v3558_v22, %v3556_v26  ;;  %v2127_v6 = vadd.f32 %v7073_v59, %v10185_v19  ;;  %v10370_v19 = vld [vmem:[#allocation27] sm:$0xff]  }
 0x705   : > { %v3549_v54 = vpop.f32.mrf.mxu0  ;;  %v8531_v22 = vld [vmem:[#allocation15 + $0x40] ss:$8 sps:$4 sm:$0xff]   ;;  %v8541_v26 = vld [vmem:[#allocation15 + $0x24] ss:$8 sps:$4 sm:$0xff]  }
 0x706   : > { %v3550_v0 = vadd.f32 %v3549_v54, %v3497_v55  ;;  %v3560_v17 = vmax.f32 %v3548_v7, 0.0  ;;  %v3565_v25 = vpack.c.bf16 %v3559_v13, %v3557_v18  ;;  %v8542_v54 = vld [vmem:[#allocation21 + $0x28] sm:$0xff]   ;;  %v8550_v55 = vld [vmem:[#allocation21 + $0x18] sm:$0xff]  }
 0x707   : > { %v3551_v62 = vpop.f32.mrf.mxu0  ;;  %7805 = vmatpush3.bf16.msra.mxu0 %v8542_v54  ;;  %v10376_v13 = vld [vmem:[#allocation28] sm:$0xff]   ;;  %v8574_v54 = vld [vmem:[#allocation15 + $0x164] ss:$8 sps:$4 sm:$0xff]  }
 0x708   : > { %v3552_v2 = vadd.f32 %v3551_v62, %v3499_v56  ;;  %v3561_v14 = vmax.f32 %v3550_v0, 0.0  ;;  %7806 = vmatprep.subr.bf16.mxu0 %v9635_v31  ;;  %v8554_v56 = vld [vmem:[#allocation21 + $0x10] sm:$0xff]   ;;  %v2133_v0 = vmax.f32 %v2127_v6, 0.0 }
 0x709   : > { %v3553_v8 = vpop.f32.mrf.mxu0  ;;  %v8528_v18 = vld [vmem:[#allocation15 + $0x50] ss:$8 sps:$4 sm:$0xff]  }
 0x70a   : > { %v3554_v10 = vadd.f32 %v3553_v8, %v3501_v4  ;;  %v3562_v12 = vmax.f32 %v3552_v2, 0.0  ;;  %v2130_v2 = vadd.f32 %v7073_v59, %v10187_v21  ;;  %v8524_v21 = vld [vmem:[#allocation15 + $0x74] ss:$8 sps:$4 sm:$0xff]   ;;  %v8578_v59 = vld [vmem:[#allocation15 + $0x150] ss:$8 sps:$4 sm:$0xff]  }
 0x70b   : > { %7807 = vmatpush3.bf16.msra.mxu0 %v8546_v3 }
 0x70c   : > { %v3563_v15 = vmax.f32 %v3554_v10, 0.0  ;;  %v3566_v24 = vpack.c.bf16 %v3562_v12, %v3560_v17  ;;  %7808 = vmatprep.subr.bf16.mxu0 %v9635_v31  ;;  %v2134_v9 = vmax.f32 %v2130_v2, 0.0  ;;  %v10362_v12 = vld [vmem:[#allocation24] sm:$0xf]  ;;  %v8530_v17 = vld [vmem:[#allocation15 + $0x54] ss:$8 sps:$4 sm:$0xff]  }
 0x70e   : > { %v3567_v20 = vpack.c.bf16 %v3563_v15, %v3561_v14  ;;  %v8522_v14 = vld [vmem:[#allocation15 + $0x70] ss:$8 sps:$4 sm:$0xff]   ;;  %v8527_v15 = vld [vmem:[#allocation15 + $0x64] ss:$8 sps:$4 sm:$0xff]  }
 0x70f   : > { %7809 = vmatpush3.bf16.msra.mxu0 %v8550_v55 }
 0x710   : > { %3580 = vmatprep.subr.bf16.mxu1 %v3567_v20  ;;  %7810 = vmatprep.subr.bf16.mxu0 %v9635_v31  ;;  %v8533_v20 = vld [vmem:[#allocation15 + $0x44] ss:$8 sps:$4 sm:$0xff]  }
 0x711   : > { %3581 = vmatpush1.bf16.msra.mxu1 %v3566_v24  ;;  %v8537_v24 = vld [vmem:[#allocation15 + $0x34] ss:$8 sps:$4 sm:$0xff]  }
 0x712   : > { %3582 = vmatprep.subr.bf16.mxu1 %v3565_v25  ;;  %v8535_v25 = vld [vmem:[#allocation15 + $0x30] ss:$8 sps:$4 sm:$0xff]  }
 0x713   : > { %7811 = vmatpush3.bf16.msra.mxu0 %v8554_v56  ;;  %v8572_v56 = vld [vmem:[#allocation15 + $0x160] ss:$8 sps:$4 sm:$0xff]  }
 0x714   : > { %7812 = vmatprep.subr.bf16.mxu0 %v9635_v31 }
 0x715   : > { %3583 = vmatpush1.bf16.msra.mxu1 %v3564_v29  ;;  %v8545_v29 = vld [vmem:[#allocation15 + $0x14] ss:$8 sps:$4 sm:$0xff]  }
 0x716   : > { %7553 = vmatprep.subr.bf16.mxu1 %v8504_v28  ;;  %v8539_v28 = vld [vmem:[#allocation15 + $0x20] ss:$8 sps:$4 sm:$0xff]  }
 0x717   : > { %7813 = vmatpush3.bf16.msra.mxu0 %v8558_v57  ;;  %v8580_v57 = vld [vmem:[#allocation15 + $0x154] ss:$8 sps:$4 sm:$0xff]  }
 0x718   : > { %7238 = vmatmul.mubr.msk.bf16.vlgmr.msra.gmra.mxu1 %vm1575_vm0, %v8826_v34  ;;  %7814 = vmatprep.subr.bf16.mxu0 %v9635_v31  ;;  %v8547_v34 = vld [vmem:[#allocation15] ss:$8 sps:$4 sm:$0xff]  }
 0x719   : > { %7554 = vmatpush3.bf16.msra.mxu1 %v8505_v27  ;;  %v8543_v27 = vld [vmem:[#allocation15 + $0x10] ss:$8 sps:$4 sm:$0xff]  }
 0x71a   : > { %7555 = vmatprep.subr.bf16.mxu1 %v8506_v33  ;;  %v8549_v33 = vld [vmem:[#allocation15 + $0x4] ss:$8 sps:$4 sm:$0xff]  }
 0x71b   : > { %7815 = vmatpush3.bf16.msra.mxu0 %v8562_v58 }
 0x71d   : > { %7556 = vmatpush3.bf16.msra.mxu1 %v8507_v35  ;;  %v8553_v35 = vld [vmem:[#allocation15 + $0xf4] ss:$8 sps:$4 sm:$0xff]  }
 0x71e   : > { %7557 = vmatprep.subr.bf16.mxu1 %v8508_v36  ;;  %v8551_v36 = vld [vmem:[#allocation15 + $0xf0] ss:$8 sps:$4 sm:$0xff]  }
 0x721   : > { %7558 = vmatpush3.bf16.msra.mxu1 %v8509_v37  ;;  %v8557_v37 = vld [vmem:[#allocation15 + $0xe4] ss:$8 sps:$4 sm:$0xff]  }
 0x722   : > { %7559 = vmatprep.subr.bf16.mxu1 %v8510_v38  ;;  %v8555_v38 = vld [vmem:[#allocation15 + $0xe0] ss:$8 sps:$4 sm:$0xff]  }
 0x725   : > { %7560 = vmatpush3.bf16.msra.mxu1 %v8511_v30  ;;  %v8561_v30 = vld [vmem:[#allocation15 + $0xd4] ss:$8 sps:$4 sm:$0xff]  }
 0x726   : > { %7561 = vmatprep.subr.bf16.mxu1 %v8512_v23  ;;  %v8559_v23 = vld [vmem:[#allocation15 + $0xd0] ss:$8 sps:$4 sm:$0xff]  }
 0x729   : > { %7562 = vmatpush3.bf16.msra.mxu1 %v8513_v39  ;;  %v8565_v39 = vld [vmem:[#allocation15 + $0xc4] ss:$8 sps:$4 sm:$0xff]  }
 0x72a   : > { %7563 = vmatprep.subr.bf16.mxu1 %v8514_v40  ;;  %v8563_v40 = vld [vmem:[#allocation15 + $0xc0] ss:$8 sps:$4 sm:$0xff]  }
 0x72d   : > { %7564 = vmatpush3.bf16.msra.mxu1 %v8515_v41  ;;  %v8571_v41 = vld [vmem:[#allocation15 + $0xb4] ss:$8 sps:$4 sm:$0xff]  }
 0x72e   : > { %7565 = vmatprep.subr.bf16.mxu1 %v8516_v42  ;;  %v8569_v42 = vld [vmem:[#allocation15 + $0xb0] ss:$8 sps:$4 sm:$0xff]  }
 0x731   : > { %7566 = vmatpush3.bf16.msra.mxu1 %v8517_v43  ;;  %v8568_v43 = vld [vmem:[#allocation15 + $0x174] ss:$8 sps:$4 sm:$0xff]  }
 0x732   : > { %7567 = vmatprep.subr.bf16.mxu1 %v8518_v46  ;;  %4390 = vmatprep.subr.bf16.mxu0 %v8568_v43  ;;  %v8577_v46 = vld [vmem:[#allocation15 + $0xa4] ss:$8 sps:$4 sm:$0xff]   ;;  %v8634_v43 = vld [vmem:[#allocation18 + $0x1d4] ss:$8 sps:$4 sm:$0xff]  }
 0x735   : > { %7568 = vmatpush3.bf16.msra.mxu1 %v8519_v47  ;;  %v8575_v47 = vld [vmem:[#allocation15 + $0xa0] ss:$8 sps:$4 sm:$0xff]  }
 0x736   : > { %7794 = vmatprep.subr.bf16.mxu1 %v9635_v31 }
 0x7d8   : > { %v3602_v32 = vpop.f32.mrf.mxu1 }
 0x7da   : > { %v3604_v48 = vpop.f32.mrf.mxu1 }
 0x7dc   : > { %v3606_v49 = vpop.f32.mrf.mxu1 }
 0x7dd   : > { %v3611_v1 = vpack.c.bf16 %v3606_v49, %v3602_v32  ;;  %v8583_v32 = vld [vmem:[#allocation15 + $0x94] ss:$8 sps:$4 sm:$0xff]   ;;  %v8589_v49 = vld [vmem:[#allocation15 + $0x84] ss:$8 sps:$4 sm:$0xff]  }
 0x7de   : > { %v3608_v50 = vpop.f32.mrf.mxu1 }
 0x7df   : > { %v3612_v51 = vpack.c.bf16 %v3608_v50, %v3604_v48  ;;  %v8581_v48 = vld [vmem:[#allocation15 + $0x90] ss:$8 sps:$4 sm:$0xff]   ;;  %v8587_v50 = vld [vmem:[#allocation15 + $0x80] ss:$8 sps:$4 sm:$0xff]  }
 0x7e1   : > { %3773 = vmatprep.mubr.bf16.mxu1 %v3612_v51  ;;  %v8604_v51 = vld [vmem:[#allocation18 + $0x174] ss:$8 sps:$4 sm:$0xff]  }
 0x7e2   : > { %3774 = vmatmul.mubr.bf16.vlgmr.msra.gmra.mxu1 %v3611_v1 }
 0x7e3   : > { %7796 = vmatprep.mubr.msk.bf16.mxu1 %vm9636_vm2, %v9635_v31 }
 0x8a2   : > { %v7569_v62 = vpop.f32.mrf.mxu1 }
 0x8a4   : > { %v7570_v63 = vpop.f32.mrf.mxu1 }
 0x8a5   : > { %v7571_v4 = vadd.f32 %v7570_v63, %v7569_v62  ;;  %v8586_v62 = vld [vmem:[#allocation15 + $0x144] ss:$8 sps:$4 sm:$0xff]  }
 0x8a6   : > { %v7572_v5 = vpop.f32.mrf.mxu1 }
 0x8a7   : > { %v3776_v7 = vadd.f32 %v7571_v4, %v2133_v0  ;;  %v8584_v0 = vld [vmem:[#allocation15 + $0x140] ss:$8 sps:$4 sm:$0xff]   ;;  %v8602_v4 = vld [vmem:[#allocation18 + $0x170] ss:$8 sps:$4 sm:$0xff]  }
 0x8a8   : > { %v7573_v8 = vpop.f32.mrf.mxu1 }
 0x8a9   : > { %3782 = vst [vmem:[%s1540_s4] sm:$0xff] %v3776_v7  ;;  %v7574_v10 = vadd.f32 %v7573_v8, %v7572_v5  ;;  %v8607_v8 = vld [vmem:[#allocation18 + $0x164] ss:$8 sps:$4 sm:$0xff]  }
 0x8ab   : > { %v3779_v11 = vadd.f32 %v7574_v10, %v2134_v9  ;;  %v8590_v10 = vld [vmem:[#allocation15 + $0x130] ss:$8 sps:$4 sm:$0xff]  }
 0x8ad   : > { %3783 = vst [vmem:[%s1540_s4 + $0x8] sm:$0xff] %v3779_v11  ;;  %v3784_v61 = vpack.c.bf16 %v3779_v11, %v3776_v7  ;;  %v8592_v7 = vld [vmem:[#allocation15 + $0x134] ss:$8 sps:$4 sm:$0xff]  }
 0x8af   : > { %7795 = vmatpush3.bf16.msra.mxu1 %v3784_v61 }
 0x8b0   : > { %7820 = vmatprep.subr.bf16.mxu1 %v9635_v31 }
 0x8b2   : > { %7797 = vmatmul.mubr.msk.bf16.vlgmr.msra.gmra.mxu1 %vm3786_vm3, %v10362_v12 }
 0x8b3   : > { %7821 = vmatpush3.bf16.msra.mxu1 %v3784_v61  ;;  %7822 = vmatprep.mubr.msk.bf16.mxu1 %vm9636_vm2, %v9635_v31 }
 0x8b4   : > { %7826 = vmatprep.subr.bf16.mxu1 %v9635_v31 }
 0x8ba   : > { %7823 = vmatmul.mubr.msk.bf16.vlgmr.msra.gmra.mxu1 %vm3786_vm3, %v10370_v19 }
 0x8bb   : > { %7827 = vmatpush3.bf16.msra.mxu1 %v3784_v61  ;;  %7828 = vmatprep.mubr.msk.bf16.mxu1 %vm9636_vm2, %v9635_v31 }
 0x8bc   : > { %4347 = vmatprep.subr.bf16.mxu1 %v8524_v21  ;;  %v8595_v21 = vld [vmem:[#allocation15 + $0x124] ss:$8 sps:$4 sm:$0xff]  }
 0x8c2   : > { %7829 = vmatmul.mubr.msk.bf16.vlgmr.msra.gmra.mxu1 %vm3786_vm3, %v10376_v13 }
 0x8c3   : > { %4379 = vmatprep.mubr.bf16.mxu1 %v3784_v61  ;;  %4348 = vmatpush1.bf16.msra.mxu1 %v8522_v14  ;;  %v8605_v61 = vld [vmem:[#allocation18 + $0x160] ss:$8 sps:$4 sm:$0xff]   ;;  %v8610_v14 = vld [vmem:[#allocation18 + $0x154] ss:$8 sps:$4 sm:$0xff]  }
 0x8c4   : > { %4349 = vmatprep.subr.bf16.mxu1 %v8527_v15 }
 0x8c7   : > { %4350 = vmatpush1.bf16.msra.mxu1 %v8525_v16  ;;  %v8593_v16 = vld [vmem:[#allocation15 + $0x120] ss:$8 sps:$4 sm:$0xff]  }
 0x8c8   : > { %4351 = vmatprep.subr.bf16.mxu1 %v8530_v17 }
 0x8cb   : > { %4352 = vmatpush1.bf16.msra.mxu1 %v8528_v18  ;;  %v8608_v18 = vld [vmem:[#allocation18 + $0x150] ss:$8 sps:$4 sm:$0xff]  }
 0x8cc   : > { %4353 = vmatprep.subr.bf16.mxu1 %v8533_v20  ;;  %v8598_v20 = vld [vmem:[#allocation15 + $0x114] ss:$8 sps:$4 sm:$0xff]  }
 0x8cf   : > { %4354 = vmatpush1.bf16.msra.mxu1 %v8531_v22  ;;  %v8613_v22 = vld [vmem:[#allocation18 + $0x144] ss:$8 sps:$4 sm:$0xff]  }
 0x8d0   : > { %4355 = vmatprep.subr.bf16.mxu1 %v8537_v24 }
 0x8d3   : > { %4356 = vmatpush1.bf16.msra.mxu1 %v8535_v25  ;;  %v8596_v25 = vld [vmem:[#allocation15 + $0x110] ss:$8 sps:$4 sm:$0xff]  }
 0x8d4   : > { %4357 = vmatprep.subr.bf16.mxu1 %v8541_v26  ;;  %v8611_v26 = vld [vmem:[#allocation18 + $0x140] ss:$8 sps:$4 sm:$0xff]  }
 0x8d7   : > { %4358 = vmatpush1.bf16.msra.mxu1 %v8539_v28  ;;  %v8601_v28 = vld [vmem:[#allocation15 + $0x104] ss:$8 sps:$4 sm:$0xff]  }
 0x8d8   : > { %4359 = vmatprep.subr.bf16.mxu1 %v8545_v29  ;;  %v8616_v29 = vld [vmem:[#allocation18 + $0x134] ss:$8 sps:$4 sm:$0xff]  }
 0x8db   : > { %4360 = vmatpush1.bf16.msra.mxu1 %v8543_v27  ;;  %v8599_v27 = vld [vmem:[#allocation15 + $0x100] ss:$8 sps:$4 sm:$0xff]  }
 0x8dc   : > { %4361 = vmatprep.subr.bf16.mxu1 %v8549_v33  ;;  %v8614_v33 = vld [vmem:[#allocation18 + $0x130] ss:$8 sps:$4 sm:$0xff]  }
 0x8df   : > { %4362 = vmatpush1.bf16.msra.mxu1 %v8547_v34 }
 0x8e0   : > { %4363 = vmatprep.subr.bf16.mxu1 %v8553_v35  ;;  %v8619_v35 = vld [vmem:[#allocation18 + $0x124] ss:$8 sps:$4 sm:$0xff]  }
 0x8e3   : > { %4364 = vmatpush2.bf16.msra.mxu1 %v8551_v36  ;;  %v8617_v36 = vld [vmem:[#allocation18 + $0x120] ss:$8 sps:$4 sm:$0xff]  }
 0x8e4   : > { %4365 = vmatprep.subr.bf16.mxu1 %v8557_v37  ;;  %v8620_v37 = vld [vmem:[#allocation18 + $0x110] ss:$8 sps:$4 sm:$0xff]  }
 0x8e7   : > { %4366 = vmatpush2.bf16.msra.mxu1 %v8555_v38  ;;  %v8622_v38 = vld [vmem:[#allocation18 + $0x114] ss:$8 sps:$4 sm:$0xff]  }
 0x8e8   : > { %4367 = vmatprep.subr.bf16.mxu1 %v8561_v30  ;;  %v8625_v30 = vld [vmem:[#allocation18 + $0x104] ss:$8 sps:$4 sm:$0xff]  }
 0x8eb   : > { %4368 = vmatpush2.bf16.msra.mxu1 %v8559_v23  ;;  %v8623_v23 = vld [vmem:[#allocation18 + $0x100] ss:$8 sps:$4 sm:$0xff]  }
 0x8ec   : > { %4369 = vmatprep.subr.bf16.mxu1 %v8565_v39  ;;  %v8628_v39 = vld [vmem:[#allocation18 + $0x1f4] ss:$8 sps:$4 sm:$0xff]  }
 0x8ef   : > { %4370 = vmatpush2.bf16.msra.mxu1 %v8563_v40  ;;  %v8626_v40 = vld [vmem:[#allocation18 + $0x1f0] ss:$8 sps:$4 sm:$0xff]  }
 0x8f0   : > { %4371 = vmatprep.subr.bf16.mxu1 %v8571_v41  ;;  %v8631_v41 = vld [vmem:[#allocation18 + $0x1e4] ss:$8 sps:$4 sm:$0xff]  }
 0x8f3   : > { %4372 = vmatpush2.bf16.msra.mxu1 %v8569_v42  ;;  %v8629_v42 = vld [vmem:[#allocation18 + $0x1e0] ss:$8 sps:$4 sm:$0xff]  }
 0x8f4   : > { %4373 = vmatprep.subr.bf16.mxu1 %v8577_v46  ;;  %v8632_v46 = vld [vmem:[#allocation18 + $0x1d0] ss:$8 sps:$4 sm:$0xff]  }
 0x8f7   : > { %4374 = vmatpush2.bf16.msra.mxu1 %v8575_v47  ;;  %v8637_v47 = vld [vmem:[#allocation18 + $0x1c4] ss:$8 sps:$4 sm:$0xff]  }
 0x8f8   : > { %4375 = vmatprep.subr.bf16.mxu1 %v8583_v32  ;;  %v8635_v32 = vld [vmem:[#allocation18 + $0x1c0] ss:$8 sps:$4 sm:$0xff]  }
 0x8fb   : > { %4376 = vmatpush2.bf16.msra.mxu1 %v8581_v48  ;;  %v8640_v48 = vld [vmem:[#allocation18 + $0x1b4] ss:$8 sps:$4 sm:$0xff]  }
 0x8fc   : > { %4377 = vmatprep.subr.bf16.mxu1 %v8589_v49  ;;  %v8638_v49 = vld [vmem:[#allocation18 + $0x1b0] ss:$8 sps:$4 sm:$0xff]  }
 0x8ff   : > { %4378 = vmatpush2.bf16.msra.mxu1 %v8587_v50  ;;  %v8643_v50 = vld [vmem:[#allocation18 + $0x1a4] ss:$8 sps:$4 sm:$0xff]  }
 0x900   : > { %5160 = vmatprep.subr.bf16.mxu1 %v8604_v51  ;;  %v8641_v51 = vld [vmem:[#allocation18 + $0x1a0] ss:$8 sps:$4 sm:$0xff]  }
 0x972   : > { %v3824_v1 = vpop.f32.mrf.mxu1 }
 0x973   : > { %v3830_v53 = vpack.c.bf16 %v3824_v1, %v3824_v1  ;;  %v8646_v1 = vld [vmem:[#allocation18 + $0x194] ss:$8 sps:$4 sm:$0xff]  }
 0x974   : > { %v7798_v3 = vpop.f32.mrf.mxu1 }
 0x975   : > { %7817 = vmatmul.mubr.bf16.vlgmr.msra.gmra.mxu0 %v3830_v53  ;;  %v8649_v53 = vld [vmem:[#allocation18 + $0x184] ss:$8 sps:$4 sm:$0xff]  }
 0x976   : > { %4391 = vmatpush1.bf16.msra.mxu0 %v8566_v52  ;;  %v3827_v55 = vpop.f32.mrf.mxu1  ;;  %4422 = vmatprep.mubr.bf16.mxu0 %v9637_v60  ;;  %v8644_v52 = vld [vmem:[#allocation18 + $0x190] ss:$8 sps:$4 sm:$0xff]  }
 0x977   : > { %4392 = vmatprep.subr.bf16.mxu0 %v8574_v54  ;;  %v8647_v54 = vld [vmem:[#allocation18 + $0x180] ss:$8 sps:$4 sm:$0xff]  }
 0x978   : > { %v7799_v58 = vpop.f32.mrf.mxu1 }
 0x97a   : > { %4393 = vmatpush1.bf16.msra.mxu0 %v8572_v56  ;;  %v3987_v6 = vpop.f32.mrf.mxu1 }
 0x97b   : > { %4394 = vmatprep.subr.bf16.mxu0 %v8580_v57 }
 0x97c   : > { %v7824_v63 = vpop.f32.mrf.mxu1 }
 0x97e   : > { %4395 = vmatpush1.bf16.msra.mxu0 %v8578_v59  ;;  %v3990_v2 = vpop.f32.mrf.mxu1 }
 0x97f   : > { %4396 = vmatprep.subr.bf16.mxu0 %v8586_v62  ;;  %v3994_v5 = vpack.c.bf16 %v3990_v2, %v3987_v6  ;;  %v4095_v6 = vld [vmem:[#allocation16] sm:$0x3] }
 0x980   : > { %v7825_v9 = vpop.f32.mrf.mxu1  ;;  %v4100_v63 = vrot.slane %v4095_v6, %v10200_v44 }
 0x981   : > { %4380 = vmatmul.mubr.bf16.vlgmr.msra.gmra.mxu1 %v3994_v5 }
 0x982   : > { %4397 = vmatpush1.bf16.msra.mxu0 %v8584_v0  ;;  %v4039_v11 = vpop.f32.mrf.mxu1  ;;  %5161 = vmatpush1.bf16.msra.mxu1 %v8602_v4  ;;  %v4104_v0 = vrot.slane %v4095_v6, %v10202_v45 }
 0x983   : > { %4398 = vmatprep.subr.bf16.mxu0 %v8592_v7  ;;  %5162 = vmatprep.subr.bf16.mxu1 %v8607_v8 }
 0x984   : > { %v7830_v15 = vpop.f32.mrf.mxu1 }
 0x986   : > { %4399 = vmatpush1.bf16.msra.mxu0 %v8590_v10  ;;  %v4042_v17 = vpop.f32.mrf.mxu1  ;;  %5163 = vmatpush1.bf16.msra.mxu1 %v8605_v61 }
 0x987   : > { %4400 = vmatprep.subr.bf16.mxu0 %v8595_v21  ;;  %5164 = vmatprep.subr.bf16.mxu1 %v8610_v14  ;;  %v4046_v34 = vpack.c.bf16 %v4042_v17, %v4039_v11 }
 0x988   : > { %v7831_v24 = vpop.f32.mrf.mxu1 }
 0x98a   : > { %4401 = vmatpush1.bf16.msra.mxu0 %v8593_v16  ;;  %5165 = vmatpush1.bf16.msra.mxu1 %v8608_v18 }
 0x98b   : > { %4402 = vmatprep.subr.bf16.mxu0 %v8598_v20  ;;  %5166 = vmatprep.subr.bf16.mxu1 %v8613_v22 }
 0x98e   : > { %4403 = vmatpush1.bf16.msra.mxu0 %v8596_v25  ;;  %5167 = vmatpush1.bf16.msra.mxu1 %v8611_v26  ;;  %v8652_v26 = vld [vmem:[#allocation18 + $0x74] ss:$8 sps:$4 sm:$0xff]  }
 0x98f   : > { %4404 = vmatprep.subr.bf16.mxu0 %v8601_v28  ;;  %5168 = vmatprep.subr.bf16.mxu1 %v8616_v29  ;;  %v8650_v28 = vld [vmem:[#allocation18 + $0x70] ss:$8 sps:$4 sm:$0xff]   ;;  %v8655_v29 = vld [vmem:[#allocation18 + $0x64] ss:$8 sps:$4 sm:$0xff]  }
 0x992   : > { %4405 = vmatpush1.bf16.msra.mxu0 %v8599_v27  ;;  %5169 = vmatpush1.bf16.msra.mxu1 %v8614_v33  ;;  %v8653_v27 = vld [vmem:[#allocation18 + $0x60] ss:$8 sps:$4 sm:$0xff]   ;;  %v8658_v33 = vld [vmem:[#allocation18 + $0x54] ss:$8 sps:$4 sm:$0xff]  }
 0x993   : > { %5170 = vmatprep.subr.bf16.mxu1 %v8619_v35  ;;  %v8661_v35 = vld [vmem:[#allocation18 + $0x44] ss:$8 sps:$4 sm:$0xff]  }
 0x995   : > { %4423 = vmatmul.mubr.bf16.vlgmr.msra.gmra.mxu0 %v4046_v34  ;;  %v8656_v34 = vld [vmem:[#allocation18 + $0x50] ss:$8 sps:$4 sm:$0xff]  }
 0x996   : > { %4471 = vmatprep.mubr.bf16.mxu0 %v9637_v60  ;;  %5171 = vmatpush1.bf16.msra.mxu1 %v8617_v36  ;;  %v8659_v36 = vld [vmem:[#allocation18 + $0x40] ss:$8 sps:$4 sm:$0xff]  }
 0x997   : > { %5172 = vmatprep.subr.bf16.mxu1 %v8622_v38  ;;  %v8665_v38 = vld [vmem:[#allocation18 + $0x20] ss:$8 sps:$4 sm:$0xff]  }
 0x99a   : > { %5173 = vmatpush1.bf16.msra.mxu1 %v8620_v37  ;;  %v8667_v37 = vld [vmem:[#allocation18 + $0x24] ss:$8 sps:$4 sm:$0xff]  }
 0x99b   : > { %5174 = vmatprep.subr.bf16.mxu1 %v8625_v30  ;;  %v8668_v30 = vld [vmem:[#allocation18 + $0x10] ss:$8 sps:$4 sm:$0xff]  }
 0x99e   : > { %5175 = vmatpush1.bf16.msra.mxu1 %v8623_v23  ;;  %v8673_v23 = vld [vmem:[#allocation18 + $0x4] ss:$8 sps:$4 sm:$0xff]  }
 0x99f   : > { %5176 = vmatprep.subr.bf16.mxu1 %v8628_v39  ;;  %v8671_v39 = vld [vmem:[#allocation18] ss:$8 sps:$4 sm:$0xff]  }
 0x9a2   : > { %5177 = vmatpush2.bf16.msra.mxu1 %v8626_v40  ;;  %v8676_v40 = vld [vmem:[#allocation18 + $0xf4] ss:$8 sps:$4 sm:$0xff]  }
 0x9a3   : > { %5178 = vmatprep.subr.bf16.mxu1 %v8631_v41  ;;  %v8674_v41 = vld [vmem:[#allocation18 + $0xf0] ss:$8 sps:$4 sm:$0xff]  }
 0x9a6   : > { %5179 = vmatpush2.bf16.msra.mxu1 %v8629_v42  ;;  %v8679_v42 = vld [vmem:[#allocation18 + $0xe4] ss:$8 sps:$4 sm:$0xff]  }
 0x9a7   : > { %5180 = vmatprep.subr.bf16.mxu1 %v8634_v43  ;;  %v8677_v43 = vld [vmem:[#allocation18 + $0xe0] ss:$8 sps:$4 sm:$0xff]  }
 0x9aa   : > { %5181 = vmatpush2.bf16.msra.mxu1 %v8632_v46  ;;  %v8682_v46 = vld [vmem:[#allocation18 + $0xd4] ss:$8 sps:$4 sm:$0xff]  }
 0x9ab   : > { %5182 = vmatprep.subr.bf16.mxu1 %v8637_v47  ;;  %v8680_v47 = vld [vmem:[#allocation18 + $0xd0] ss:$8 sps:$4 sm:$0xff]  }
 0x9ae   : > { %5183 = vmatpush2.bf16.msra.mxu1 %v8635_v32  ;;  %v8685_v32 = vld [vmem:[#allocation18 + $0xc4] ss:$8 sps:$4 sm:$0xff]  }
 0x9af   : > { %5184 = vmatprep.subr.bf16.mxu1 %v8640_v48  ;;  %v8683_v48 = vld [vmem:[#allocation18 + $0xc0] ss:$8 sps:$4 sm:$0xff]  }
 0x9b2   : > { %5185 = vmatpush2.bf16.msra.mxu1 %v8638_v49  ;;  %v8688_v49 = vld [vmem:[#allocation18 + $0xb4] ss:$8 sps:$4 sm:$0xff]  }
 0x9b3   : > { %5186 = vmatprep.subr.bf16.mxu1 %v8643_v50  ;;  %v8686_v50 = vld [vmem:[#allocation18 + $0xb0] ss:$8 sps:$4 sm:$0xff]  }
 0x9b6   : > { %5187 = vmatpush2.bf16.msra.mxu1 %v8641_v51  ;;  %v8691_v51 = vld [vmem:[#allocation18 + $0xa4] ss:$8 sps:$4 sm:$0xff]  }
 0x9b7   : > { %5188 = vmatprep.subr.bf16.mxu1 %v8646_v1  ;;  %v8689_v1 = vld [vmem:[#allocation18 + $0xa0] ss:$8 sps:$4 sm:$0xff]  }
 0x9ba   : > { %5189 = vmatpush2.bf16.msra.mxu1 %v8644_v52  ;;  %v8694_v52 = vld [vmem:[#allocation18 + $0x94] ss:$8 sps:$4 sm:$0xff]  }
 0x9bb   : > { %5190 = vmatprep.subr.bf16.mxu1 %v8649_v53  ;;  %v8692_v53 = vld [vmem:[#allocation18 + $0x90] ss:$8 sps:$4 sm:$0xff]  }
 0x9be   : > { %5191 = vmatpush2.bf16.msra.mxu1 %v8647_v54  ;;  %v8697_v54 = vld [vmem:[#allocation18 + $0x84] ss:$8 sps:$4 sm:$0xff]  }
 0xa35   : > { %v10382_v3 = vpop.f32.mrf.mxu0 }
 0xa37   : > { %v7818_v55 = vpop.f32.mrf.mxu0 }
 0xa38   : > { %v8695_v55 = vld [vmem:[#allocation18 + $0x80] ss:$8 sps:$4 sm:$0xff]  }
 0xa39   : > { %v3939_v56 = vpop.f32.mrf.mxu0 }
 0xa3a   : > { %v8700_v56 = vld [vmem:[#allocation18 + $0x274] ss:$8 sps:$4 sm:$0xff]  }
 0xa3b   : > { %v7819_v57 = vpop.f32.mrf.mxu0 }
 0xa41   : > { %v4381_v58 = vpop.f32.mrf.mxu1 }
 0xa42   : > { %v4382_v9 = vadd.f32 %v4381_v58, %v4100_v63 }
 0xa43   : > { %v4383_v59 = vpop.f32.mrf.mxu1 }
 0xa44   : > { %v4384_v7 = vadd.f32 %v4383_v59, %v4104_v0 }
 0xa45   : > { %v4385_v62 = vpop.f32.mrf.mxu1 }
 0xa46   : > { %v4386_v8 = vadd.f32 %v4385_v62, %v4100_v63  ;;  %v8698_v63 = vld [vmem:[#allocation18 + $0x270] ss:$8 sps:$4 sm:$0xff]  }
 0xa47   : > { %v4387_v4 = vpop.f32.mrf.mxu1 }
 0xa48   : > { %v4388_v11 = vadd.f32 %v4387_v4, %v4104_v0 }
 0xa55   : > { %v4424_v2 = vpop.f32.mrf.mxu0 }
 0xa56   : > { %v4425_v14 = vadd.f32 %v4424_v2, %v4382_v9  ;;  %v8703_v2 = vld [vmem:[#allocation18 + $0x264] ss:$8 sps:$4 sm:$0xff]  }
 0xa57   : > { %v4426_v5 = vpop.f32.mrf.mxu0 }
 0xa58   : > { %v4427_v61 = vadd.f32 %v4426_v5, %v4384_v7  ;;  %v4433_v22 = vmax.f32 %v4425_v14, 0.0  ;;  %v8701_v7 = vld [vmem:[#allocation18 + $0x260] ss:$8 sps:$4 sm:$0xff]  }
 0xa59   : > { %v4428_v10 = vpop.f32.mrf.mxu0  ;;  %v8707_v14 = vld [vmem:[#allocation18 + $0x240] ss:$8 sps:$4 sm:$0xff]  }
 0xa5a   : > { %v4429_v21 = vadd.f32 %v4428_v10, %v4386_v8  ;;  %v4434_v18 = vmax.f32 %v4427_v61, 0.0  ;;  %v8706_v8 = vld [vmem:[#allocation18 + $0x254] ss:$8 sps:$4 sm:$0xff]  }
 0xa5b   : > { %v4430_v15 = vpop.f32.mrf.mxu0 }
 0xa5c   : > { %v4431_v16 = vadd.f32 %v4430_v15, %v4388_v11  ;;  %v4435_v17 = vmax.f32 %v4429_v21, 0.0  ;;  %v8704_v11 = vld [vmem:[#allocation18 + $0x250] ss:$8 sps:$4 sm:$0xff]   ;;  %v8709_v21 = vld [vmem:[#allocation18 + $0x244] ss:$8 sps:$4 sm:$0xff]  }
 0xa5d   : > { %v8712_v15 = vld [vmem:[#allocation18 + $0x234] ss:$8 sps:$4 sm:$0xff]  }
 0xa5e   : > { %v4436_v20 = vmax.f32 %v4431_v16, 0.0  ;;  %v4437_v25 = vpack.c.bf16 %v4435_v17, %v4433_v22  ;;  %v8710_v16 = vld [vmem:[#allocation18 + $0x230] ss:$8 sps:$4 sm:$0xff]   ;;  %v8715_v17 = vld [vmem:[#allocation18 + $0x224] ss:$8 sps:$4 sm:$0xff]  }
 0xa5f   : > { %v8716_v22 = vld [vmem:[#allocation18 + $0x210] ss:$8 sps:$4 sm:$0xff]  }
 0xa60   : > { %v4438_v24 = vpack.c.bf16 %v4436_v20, %v4434_v18  ;;  %v8713_v18 = vld [vmem:[#allocation18 + $0x220] ss:$8 sps:$4 sm:$0xff]   ;;  %v8718_v20 = vld [vmem:[#allocation18 + $0x214] ss:$8 sps:$4 sm:$0xff]  }
 0xa62   : > { %4453 = vmatprep.subr.bf16.mxu0 %v4438_v24  ;;  %5192 = vmatprep.mubr.bf16.mxu1 %v4438_v24 }
 0xa63   : > { %4454 = vmatpush1.bf16.msra.mxu0 %v4437_v25  ;;  %5193 = vmatmul.mubr.bf16.vlgmr.msra.gmra.mxu1 %v4437_v25 }
 0xa64   : > { %4498 = vmatprep.subr.bf16.mxu0 %v4438_v24  ;;  %5284 = vmatprep.mubr.bf16.mxu1 %v9637_v60  ;;  %v8721_v24 = vld [vmem:[#allocation18 + $0x204] ss:$8 sps:$4 sm:$0xff]  }
 0xa66   : > { %7317 = vmatmul.mubr.msk.bf16.vlgmr.msra.gmra.mxu0 %vm3786_vm3, %v10370_v19  ;;  %v8664_v19 = vld [vmem:[#allocation18 + $0x34] ss:$8 sps:$4 sm:$0xff]  }
 0xa67   : > { %4499 = vmatpush1.bf16.msra.mxu0 %v4437_v25  ;;  %4516 = vmatprep.mubr.bf16.mxu0 %v9637_v60  ;;  %v8662_v60 = vld [vmem:[#allocation18 + $0x30] ss:$8 sps:$4 sm:$0xff]   ;;  %v8719_v25 = vld [vmem:[#allocation18 + $0x200] ss:$8 sps:$4 sm:$0xff]  }
 0xa68   : > { %5117 = vmatprep.subr.bf16.mxu0 %v8652_v26  ;;  %v8724_v26 = vld [vmem:[#allocation18 + $0x2f4] ss:$8 sps:$4 sm:$0xff]  }
 0xa6e   : > { %7318 = vmatmul.mubr.msk.bf16.vlgmr.msra.gmra.mxu0 %vm3786_vm3, %v10376_v13  ;;  %v8670_v13 = vld [vmem:[#allocation18 + $0x14] ss:$8 sps:$4 sm:$0xff]  }
 0xa6f   : > { %5118 = vmatpush1.bf16.msra.mxu0 %v8650_v28  ;;  %v8722_v28 = vld [vmem:[#allocation18 + $0x2f0] ss:$8 sps:$4 sm:$0xff]  }
 0xa70   : > { %5119 = vmatprep.subr.bf16.mxu0 %v8655_v29  ;;  %v8727_v29 = vld [vmem:[#allocation18 + $0x2e4] ss:$8 sps:$4 sm:$0xff]  }
 0xa73   : > { %5120 = vmatpush1.bf16.msra.mxu0 %v8653_v27  ;;  %v8725_v27 = vld [vmem:[#allocation18 + $0x2e0] ss:$8 sps:$4 sm:$0xff]  }
 0xa74   : > { %5121 = vmatprep.subr.bf16.mxu0 %v8658_v33  ;;  %v8730_v33 = vld [vmem:[#allocation18 + $0x2d4] ss:$8 sps:$4 sm:$0xff]  }
 0xa77   : > { %5122 = vmatpush1.bf16.msra.mxu0 %v8656_v34  ;;  %v8728_v34 = vld [vmem:[#allocation18 + $0x2d0] ss:$8 sps:$4 sm:$0xff]  }
 0xa78   : > { %5123 = vmatprep.subr.bf16.mxu0 %v8661_v35  ;;  %v8733_v35 = vld [vmem:[#allocation18 + $0x2c4] ss:$8 sps:$4 sm:$0xff]  }
 0xa7b   : > { %5124 = vmatpush1.bf16.msra.mxu0 %v8659_v36  ;;  %v8731_v36 = vld [vmem:[#allocation18 + $0x2c0] ss:$8 sps:$4 sm:$0xff]  }
 0xa7c   : > { %5125 = vmatprep.subr.bf16.mxu0 %v8664_v19  ;;  %v8736_v19 = vld [vmem:[#allocation18 + $0x2b4] ss:$8 sps:$4 sm:$0xff]  }
 0xa7f   : > { %5126 = vmatpush1.bf16.msra.mxu0 %v8662_v60  ;;  %v8734_v60 = vld [vmem:[#allocation18 + $0x2b0] ss:$8 sps:$4 sm:$0xff]  }
 0xa80   : > { %5127 = vmatprep.subr.bf16.mxu0 %v8667_v37  ;;  %v8739_v37 = vld [vmem:[#allocation18 + $0x2a4] ss:$8 sps:$4 sm:$0xff]  }
 0xa83   : > { %5128 = vmatpush1.bf16.msra.mxu0 %v8665_v38  ;;  %v8737_v38 = vld [vmem:[#allocation18 + $0x2a0] ss:$8 sps:$4 sm:$0xff]  }
 0xa84   : > { %5129 = vmatprep.subr.bf16.mxu0 %v8670_v13  ;;  %v8742_v13 = vld [vmem:[#allocation18 + $0x294] ss:$8 sps:$4 sm:$0xff]  }
 0xa87   : > { %5130 = vmatpush1.bf16.msra.mxu0 %v8668_v30  ;;  %v8740_v30 = vld [vmem:[#allocation18 + $0x290] ss:$8 sps:$4 sm:$0xff]  }
 0xa88   : > { %5131 = vmatprep.subr.bf16.mxu0 %v8673_v23  ;;  %v8745_v23 = vld [vmem:[#allocation18 + $0x284] ss:$8 sps:$4 sm:$0xff]  }
 0xa8b   : > { %5132 = vmatpush1.bf16.msra.mxu0 %v8671_v39  ;;  %v8743_v39 = vld [vmem:[#allocation18 + $0x280] ss:$8 sps:$4 sm:$0xff]  }
 0xa8c   : > { %5133 = vmatprep.subr.bf16.mxu0 %v8676_v40 }
 0xa8f   : > { %5134 = vmatpush2.bf16.msra.mxu0 %v8674_v41 }
 0xa90   : > { %5135 = vmatprep.subr.bf16.mxu0 %v8679_v42 }
 0xa93   : > { %5136 = vmatpush2.bf16.msra.mxu0 %v8677_v43 }
 0xa94   : > { %5137 = vmatprep.subr.bf16.mxu0 %v8682_v46  ;;  %v4625_v46 = vld [vmem:[#allocation19] sm:$0x3] }
 0xa97   : > { %5138 = vmatpush2.bf16.msra.mxu0 %v8680_v47 }
 0xa98   : > { %5139 = vmatprep.subr.bf16.mxu0 %v8685_v32  ;;  %v4634_v32 = vrot.slane %v4625_v46, %v10202_v45 }
 0xa9b   : > { %5140 = vmatpush2.bf16.msra.mxu0 %v8683_v48 }
 0xa9c   : > { %5141 = vmatprep.subr.bf16.mxu0 %v8688_v49  ;;  %v4630_v49 = vrot.slane %v4625_v46, %v10200_v44 }
 0xa9f   : > { %5142 = vmatpush2.bf16.msra.mxu0 %v8686_v50 }
 0xaa0   : > { %5143 = vmatprep.subr.bf16.mxu0 %v8691_v51 }
 0xaa3   : > { %5144 = vmatpush2.bf16.msra.mxu0 %v8689_v1 }
 0xaa4   : > { %5145 = vmatprep.subr.bf16.mxu0 %v8694_v52 }
 0xaa7   : > { %5146 = vmatpush2.bf16.msra.mxu0 %v8692_v53 }
 0xaa8   : > { %5147 = vmatprep.subr.bf16.mxu0 %v8697_v54 }
 0xaab   : > { %5148 = vmatpush2.bf16.msra.mxu0 %v8695_v55 }
 0xaac   : > { %5203 = vmatprep.subr.bf16.mxu0 %v8700_v56 }
 0xb23   : > { %v5194_v43 = vpop.f32.mrf.mxu1 }
 0xb25   : > { %v5196_v48 = vpop.f32.mrf.mxu1 }
 0xb26   : > { %v4473_v57 = vpop.f32.mrf.mxu0 }
 0xb27   : > { %v5198_v52 = vpop.f32.mrf.mxu1 }
 0xb28   : > { %v4475_v58 = vpop.f32.mrf.mxu0 }
 0xb2a   : > { %v4477_v59 = vpop.f32.mrf.mxu0 }
 0xb2b   : > { %v4482_v0 = vpack.c.bf16 %v4477_v59, %v4473_v57  ;;  %v5200_v59 = vpop.f32.mrf.mxu1 }
 0xb2c   : > { %v4479_v6 = vpop.f32.mrf.mxu0 }
 0xb2d   : > { %v4483_v62 = vpack.c.bf16 %v4479_v6, %v4475_v58 }
 0xb2e   : > { %v10392_v4 = vpop.f32.mrf.mxu0 }
 0xb2f   : > { %5149 = vmatprep.mubr.bf16.mxu0 %v4483_v62 }
 0xb30   : > { %5150 = vmatmul.mubr.bf16.vlgmr.msra.gmra.mxu0 %v4482_v0  ;;  %v4520_v5 = vpop.f32.mrf.mxu0 }
 0xb31   : > { %5204 = vmatpush1.bf16.msra.mxu0 %v8698_v63 }
 0xb32   : > { %5205 = vmatprep.subr.bf16.mxu0 %v8703_v2  ;;  %v4522_v9 = vpop.f32.mrf.mxu0 }
 0xb33   : > { %v4527_v40 = vpack.c.bf16 %v4522_v9, %v10392_v4 }
 0xb34   : > { %v4524_v10 = vpop.f32.mrf.mxu0 }
 0xb35   : > { %5206 = vmatpush1.bf16.msra.mxu0 %v8701_v7  ;;  %v4528_v61 = vpack.c.bf16 %v4524_v10, %v4520_v5 }
 0xb36   : > { %5207 = vmatprep.subr.bf16.mxu0 %v8706_v8 }
 0xb37   : > { %5235 = vmatprep.mubr.bf16.mxu0 %v4528_v61 }
 0xb39   : > { %5208 = vmatpush1.bf16.msra.mxu0 %v8704_v11  ;;  %v8746_v11 = vld [vmem:[#allocation25 + $0x78] sm:$0xff]  }
 0xb3a   : > { %5209 = vmatprep.subr.bf16.mxu0 %v8709_v21  ;;  %v8747_v21 = vld [vmem:[#allocation25 + $0x38] sm:$0xff]  }
 0xb3d   : > { %5210 = vmatpush1.bf16.msra.mxu0 %v8707_v14  ;;  %v8748_v14 = vld [vmem:[#allocation25 + $0x70] sm:$0xff]  }
 0xb3e   : > { %5211 = vmatprep.subr.bf16.mxu0 %v8712_v15  ;;  %v8749_v15 = vld [vmem:[#allocation25 + $0x30] sm:$0xff]  }
 0xb41   : > { %5212 = vmatpush1.bf16.msra.mxu0 %v8710_v16  ;;  %v8750_v16 = vld [vmem:[#allocation25 + $0x68] sm:$0xff]  }
 0xb42   : > { %5213 = vmatprep.subr.bf16.mxu0 %v8715_v17  ;;  %v8751_v17 = vld [vmem:[#allocation25 + $0x28] sm:$0xff]  }
 0xb45   : > { %5214 = vmatpush1.bf16.msra.mxu0 %v8713_v18  ;;  %v8752_v18 = vld [vmem:[#allocation25 + $0x60] sm:$0xff]  }
 0xb46   : > { %5215 = vmatprep.subr.bf16.mxu0 %v8718_v20  ;;  %v8753_v20 = vld [vmem:[#allocation25 + $0x20] sm:$0xff]  }
 0xb49   : > { %5216 = vmatpush1.bf16.msra.mxu0 %v8716_v22  ;;  %v8754_v22 = vld [vmem:[#allocation25 + $0x58] sm:$0xff]  }
 0xb4a   : > { %5217 = vmatprep.subr.bf16.mxu0 %v8721_v24  ;;  %v8755_v24 = vld [vmem:[#allocation25 + $0x18] sm:$0xff]  }
 0xb4d   : > { %5218 = vmatpush1.bf16.msra.mxu0 %v8719_v25  ;;  %v8756_v25 = vld [vmem:[#allocation25 + $0x50] sm:$0xff]  }
 0xb4e   : > { %5219 = vmatprep.subr.bf16.mxu0 %v8724_v26  ;;  %v8757_v26 = vld [vmem:[#allocation25 + $0x10] sm:$0xff]  }
 0xb51   : > { %5220 = vmatpush2.bf16.msra.mxu0 %v8722_v28  ;;  %v8759_v28 = vld [vmem:[#allocation25 + $0x8] sm:$0xff]  }
 0xb52   : > { %5221 = vmatprep.subr.bf16.mxu0 %v8727_v29  ;;  %v8760_v29 = vld [vmem:[#allocation25 + $0x40] sm:$0xff]  }
 0xb55   : > { %5222 = vmatpush2.bf16.msra.mxu0 %v8725_v27  ;;  %v8761_v27 = vld [vmem:[#allocation25] sm:$0xff]  }
 0xb56   : > { %5223 = vmatprep.subr.bf16.mxu0 %v8730_v33 }
 0xb59   : > { %5224 = vmatpush2.bf16.msra.mxu0 %v8728_v34 }
 0xb5a   : > { %5225 = vmatprep.subr.bf16.mxu0 %v8733_v35 }
 0xb5d   : > { %5226 = vmatpush2.bf16.msra.mxu0 %v8731_v36 }
 0xb5e   : > { %5227 = vmatprep.subr.bf16.mxu0 %v8736_v19 }
 0xb61   : > { %5228 = vmatpush2.bf16.msra.mxu0 %v8734_v60 }
 0xb62   : > { %5229 = vmatprep.subr.bf16.mxu0 %v8739_v37  ;;  %v7256_v37 = vld [vmem:[#allocation22] ss:$0 sm:$0xff] }
 0xb65   : > { %5230 = vmatpush2.bf16.msra.mxu0 %v8737_v38  ;;  %v3937_v38 = vadd.f32 %v7256_v37, %v10382_v3  ;;  %v10411_v3 = vld [vmem:[#allocation39] sm:$0xf] }
 0xb66   : > { %5231 = vmatprep.subr.bf16.mxu0 %v8742_v13 }
 0xb69   : > { %5232 = vmatpush2.bf16.msra.mxu0 %v8740_v30 }
 0xb6a   : > { %5233 = vmatprep.subr.bf16.mxu0 %v8745_v23  ;;  %v3942_v23 = vmax.f32 %v3937_v38, 0.0 }
 0xb6d   : > { %5234 = vmatpush2.bf16.msra.mxu0 %v8743_v39 }
 0xb6e   : > { %7858 = vmatprep.subr.bf16.mxu0 %v9635_v31 }
 0xb70   : > { %5236 = vmatmul.mubr.bf16.vlgmr.msra.gmra.mxu0 %v4527_v40 }
 0xb71   : > { %7860 = vmatprep.mubr.msk.bf16.mxu0 %vm9636_vm2, %v9635_v31 }
 0xbf0   : > { %v5151_v41 = vpop.f32.mrf.mxu0 }
 0xbf1   : > { %v5152_v53 = vadd.f32 %v5151_v41, %v4630_v49 }
 0xbf2   : > { %v5153_v42 = vpop.f32.mrf.mxu0 }
 0xbf3   : > { %v5154_v51 = vadd.f32 %v5153_v42, %v4634_v32  ;;  %v5195_v6 = vadd.f32 %v5194_v43, %v5152_v53  ;;  %v8772_v53 = vld [vmem:[#allocation30 + $0x30] sm:$0xff]  }
 0xbf4   : > { %v5155_v47 = vpop.f32.mrf.mxu0 }
 0xbf5   : > { %v5156_v1 = vadd.f32 %v5155_v47, %v4630_v49  ;;  %v5197_v57 = vadd.f32 %v5196_v48, %v5154_v51  ;;  %v10409_v47 = vld [vmem:[#allocation37] sm:$0x3]  ;;  %v8768_v48 = vld [vmem:[#allocation30 + $0x78] sm:$0xff]  }
 0xbf6   : > { %v5157_v50 = vpop.f32.mrf.mxu0  ;;  %v8763_v49 = vld [vmem:[%s10602_s16 + $0x30] sm:$0xff]  }
 0xbf7   : > { %v5158_v55 = vadd.f32 %v5157_v50, %v4634_v32  ;;  %v5199_v58 = vadd.f32 %v5198_v52, %v5156_v1  ;;  %v8762_v32 = vld [vmem:[%s10602_s16 + $0x38] sm:$0xff]   ;;  %v10426_v50 = vld [vmem:[#allocation40] sm:$0xf]  ;;  %v8771_v52 = vld [vmem:[#allocation30 + $0x70] sm:$0xff]  }
 0xbf8   : > { %v8769_v51 = vld [vmem:[#allocation30 + $0x38] sm:$0xff]   ;;  %v8764_v1 = vld [vmem:[%s10602_s16 + $0x28] sm:$0xff]  }
 0xbf9   : > { %v5201_v2 = vadd.f32 %v5200_v59, %v5158_v55  ;;  %v8766_v55 = vld [vmem:[%s10602_s16 + $0x18] sm:$0xff]   ;;  %v8774_v59 = vld [vmem:[#allocation30 + $0x68] sm:$0xff]  }
 0xc30   : > { %v5237_v54 = vpop.f32.mrf.mxu0 }
 0xc31   : > { %v5238_v45 = vadd.f32 %v5237_v54, %v5195_v6  ;;  %v8765_v54 = vld [vmem:[%s10602_s16 + $0x20] sm:$0xff]  }
 0xc32   : > { %v5239_v56 = vpop.f32.mrf.mxu0  ;;  %v8775_v6 = vld [vmem:[#allocation30 + $0x28] sm:$0xff]  }
 0xc33   : > { %v5240_v63 = vadd.f32 %v5239_v56, %v5197_v57  ;;  %v5246_v9 = vmax.f32 %v5238_v45, 0.0  ;;  %v8767_v56 = vld [vmem:[%s10602_s16 + $0x10] sm:$0xff]   ;;  %v8770_v57 = vld [vmem:[%s10602_s16 + $0x8] sm:$0xff]  }
 0xc34   : > { %v5241_v62 = vpop.f32.mrf.mxu0  ;;  %v8783_v45 = vld [vmem:[#allocation30 + $0x50] sm:$0xff]  }
 0xc35   : > { %v5242_v0 = vadd.f32 %v5241_v62, %v5199_v58  ;;  %v5247_v7 = vmax.f32 %v5240_v63, 0.0  ;;  %v8773_v58 = vld [vmem:[%s10602_s16] sm:$0xff]  }
 0xc36   : > { %v5243_v4 = vpop.f32.mrf.mxu0  ;;  %v8777_v62 = vld [vmem:[#allocation30 + $0x60] sm:$0xff]  }
 0xc37   : > { %v5244_v5 = vadd.f32 %v5243_v4, %v5201_v2  ;;  %v5248_v44 = vmax.f32 %v5242_v0, 0.0  ;;  %v8778_v63 = vld [vmem:[#allocation30 + $0x20] sm:$0xff]   ;;  %v8780_v0 = vld [vmem:[#allocation30 + $0x58] sm:$0xff]   ;;  %v8784_v4 = vld [vmem:[#allocation30 + $0x10] sm:$0xff]  }
 0xc38   : > { %v8781_v2 = vld [vmem:[#allocation30 + $0x18] sm:$0xff]  }
 0xc39   : > { %v5249_v8 = vmax.f32 %v5244_v5, 0.0  ;;  %v5250_v61 = vpack.c.bf16 %v5248_v44, %v5246_v9  ;;  %v8786_v5 = vld [vmem:[#allocation30 + $0x48] sm:$0xff]  }
 0xc3a   : > { %v8787_v44 = vld [vmem:[#allocation30 + $0x8] sm:$0xff]  }
 0xc3b   : > { %v5251_v10 = vpack.c.bf16 %v5249_v8, %v5247_v7  ;;  %v8789_v7 = vld [vmem:[#allocation30 + $0x40] sm:$0xff]  }
 0xc3c   : > { %v8790_v8 = vld [vmem:[#allocation30] sm:$0xff]  }
 0xc3d   : > { %5266 = vmatprep.subr.bf16.mxu1 %v5251_v10  ;;  %v8776_v10 = vld [vmem:[#allocation30 + $0xb8] sm:$0xff]  }
 0xc3e   : > { %5267 = vmatpush1.bf16.msra.mxu1 %v5250_v61 }
 0xc3f   : > { %7590 = vmatprep.subr.bf16.mxu1 %v8746_v11 }
 0xc41   : > { %7415 = vmatmul.mubr.msk.bf16.vlgmr.msra.gmra.mxu1 %vm3786_vm3, %v10362_v12  ;;  %v8758_v12 = vld [vmem:[#allocation25 + $0x48] sm:$0xff]  }
 0xc42   : > { %7591 = vmatpush3.bf16.msra.mxu1 %v8747_v21 }
 0xc43   : > { %7592 = vmatprep.subr.bf16.mxu1 %v8748_v14 }
 0xc46   : > { %7593 = vmatpush3.bf16.msra.mxu1 %v8749_v15 }
 0xc47   : > { %7594 = vmatprep.subr.bf16.mxu1 %v8750_v16 }
 0xc4a   : > { %7595 = vmatpush3.bf16.msra.mxu1 %v8751_v17  ;;  %v8779_v17 = vld [vmem:[#allocation30 + $0xb0] sm:$0xff]  }
 0xc4b   : > { %7596 = vmatprep.subr.bf16.mxu1 %v8752_v18 }
 0xc4e   : > { %7597 = vmatpush3.bf16.msra.mxu1 %v8753_v20 }
 0xc4f   : > { %7598 = vmatprep.subr.bf16.mxu1 %v8754_v22 }
 0xc52   : > { %7599 = vmatpush3.bf16.msra.mxu1 %v8755_v24  ;;  %v8782_v24 = vld [vmem:[#allocation30 + $0xa8] sm:$0xff]  }
 0xc53   : > { %7600 = vmatprep.subr.bf16.mxu1 %v8756_v25 }
 0xc56   : > { %7601 = vmatpush3.bf16.msra.mxu1 %v8757_v26 }
 0xc57   : > { %7602 = vmatprep.subr.bf16.mxu1 %v8758_v12  ;;  %v8785_v12 = vld [vmem:[#allocation30 + $0xa0] sm:$0xff]  }
 0xc5a   : > { %7603 = vmatpush3.bf16.msra.mxu1 %v8759_v28 }
 0xc5b   : > { %7604 = vmatprep.subr.bf16.mxu1 %v8760_v29 }
 0xc5e   : > { %7605 = vmatpush3.bf16.msra.mxu1 %v8761_v27  ;;  %v8788_v27 = vld [vmem:[#allocation30 + $0x98] sm:$0xff]  }
 0xc5f   : > { %7832 = vmatprep.subr.bf16.mxu1 %v9635_v31 }
 0xd01   : > { %v5286_v33 = vpop.f32.mrf.mxu1 }
 0xd02   : > { %v5293_v36 = vpack.c.bf16 %v5286_v33, %v5286_v33  ;;  %v8791_v33 = vld [vmem:[#allocation30 + $0x90] sm:$0xff]  }
 0xd03   : > { %v5288_v34 = vpop.f32.mrf.mxu1 }
 0xd04   : > { %v5294_v35 = vpack.c.bf16 %v5288_v34, %v5288_v34  ;;  %v8792_v34 = vld [vmem:[#allocation30 + $0x88] sm:$0xff]  }
 0xd05   : > { %v5290_v19 = vpop.f32.mrf.mxu1 }
 0xd06   : > { %5455 = vmatprep.mubr.bf16.mxu1 %v5294_v35  ;;  %v8793_v35 = vld [vmem:[#allocation30 + $0x80] sm:$0xff]  }
 0xd07   : > { %v5291_v60 = vpop.f32.mrf.mxu1  ;;  %5456 = vmatmul.mubr.bf16.vlgmr.msra.gmra.mxu1 %v5293_v36 }
 0xd08   : > { %7834 = vmatprep.mubr.msk.bf16.mxu1 %vm9636_vm2, %v9635_v31 }
 0xdc7   : > { %v7606_v13 = vpop.f32.mrf.mxu1 }
 0xdc9   : > { %v7607_v30 = vpop.f32.mrf.mxu1 }
 0xdca   : > { %v7608_v39 = vadd.f32 %v7607_v30, %v7606_v13 }
 0xdcb   : > { %v7609_v40 = vpop.f32.mrf.mxu1 }
 0xdcc   : > { %v5458_v41 = vadd.f32 %v7608_v39, %v3942_v23 }
 0xdcd   : > { %v7610_v42 = vpop.f32.mrf.mxu1 }
 0xdce   : > { %5463 = vst [vmem:[%s1546_s28] sm:$0xff] %v5458_v41   ;;  %v5466_v43 = vpack.c.bf16 %v5458_v41, %v5458_v41  ;;  %v7445_v41 = vld [vmem:[#allocation31] ss:$0 sm:$0xff] }
 0xdd0   : > { %v5474_v46 = vsel %vm5472_vm4, %v5466_v43, 0 }
 0xdd1   : > { %7833 = vmatpush3.bf16.msra.mxu1 %v5474_v46  ;;  %7859 = vmatpush3.bf16.msra.mxu0 %v5474_v46 }
 0xdd2   : > { %7864 = vmatprep.subr.bf16.mxu0 %v9635_v31  ;;  %7838 = vmatprep.subr.bf16.mxu1 %v9635_v31 }
 0xdd4   : > { %7835 = vmatmul.mubr.msk.bf16.vlgmr.msra.gmra.mxu1 %vm5468_vm5, %v10409_v47  ;;  %7861 = vmatmul.mubr.msk.bf16.vlgmr.msra.gmra.mxu0 %vm5468_vm5, %v10411_v3 }
 0xdd5   : > { %7865 = vmatpush3.bf16.msra.mxu0 %v5474_v46  ;;  %7866 = vmatprep.mubr.msk.bf16.mxu0 %vm9636_vm2, %v9635_v31 }
 0xdd6   : > { %7839 = vmatpush3.bf16.msra.mxu1 %v8762_v32  ;;  %7627 = vmatprep.subr.bf16.mxu0 %v8768_v48 }
 0xdd7   : > { %7840 = vmatprep.subr.bf16.mxu1 %v9635_v31  ;;  %7854 = vmatprep.mubr.msk.bf16.mxu1 %vm9636_vm2, %v9635_v31 }
 0xdda   : > { %7841 = vmatpush3.bf16.msra.mxu1 %v8763_v49 }
 0xddb   : > { %7842 = vmatprep.subr.bf16.mxu1 %v9635_v31 }
 0xddc   : > { %7867 = vmatmul.mubr.msk.bf16.vlgmr.msra.gmra.mxu0 %vm5468_vm5, %v10426_v50 }
 0xddd   : > { %5950 = vmatprep.mubr.bf16.mxu0 %v5466_v43  ;;  %7628 = vmatpush3.bf16.msra.mxu0 %v8769_v51 }
 0xdde   : > { %7843 = vmatpush3.bf16.msra.mxu1 %v8764_v1  ;;  %7629 = vmatprep.subr.bf16.mxu0 %v8771_v52  ;;  %v8794_v1 = vld [vmem:[#allocation33 + $0x78] sm:$0xff]  }
 0xddf   : > { %7844 = vmatprep.subr.bf16.mxu1 %v9635_v31 }
 0xde1   : > { %7630 = vmatpush3.bf16.msra.mxu0 %v8772_v53 }
 0xde2   : > { %7845 = vmatpush3.bf16.msra.mxu1 %v8765_v54  ;;  %7631 = vmatprep.subr.bf16.mxu0 %v8774_v59  ;;  %v8795_v54 = vld [vmem:[#allocation33 + $0x38] sm:$0xff]   ;;  %v8801_v59 = vld [vmem:[#allocation33 + $0xb0] sm:$0xff]  }
 0xde3   : > { %7846 = vmatprep.subr.bf16.mxu1 %v9635_v31 }
 0xde5   : > { %7632 = vmatpush3.bf16.msra.mxu0 %v8775_v6  ;;  %v8800_v6 = vld [vmem:[#allocation33 + $0x28] sm:$0xff]  }
 0xde6   : > { %7847 = vmatpush3.bf16.msra.mxu1 %v8766_v55  ;;  %7633 = vmatprep.subr.bf16.mxu0 %v8777_v62  ;;  %v8796_v55 = vld [vmem:[#allocation33 + $0x70] sm:$0xff]   ;;  %v8804_v62 = vld [vmem:[#allocation33 + $0xa8] sm:$0xff]  }
 0xde7   : > { %7848 = vmatprep.subr.bf16.mxu1 %v9635_v31 }
 0xde9   : > { %7634 = vmatpush3.bf16.msra.mxu0 %v8778_v63  ;;  %v8805_v63 = vld [vmem:[#allocation33 + $0x58] sm:$0xff]  }
 0xdea   : > { %7849 = vmatpush3.bf16.msra.mxu1 %v8767_v56  ;;  %7635 = vmatprep.subr.bf16.mxu0 %v8780_v0  ;;  %v8798_v56 = vld [vmem:[#allocation33 + $0xb8] sm:$0xff]   ;;  %v8807_v0 = vld [vmem:[#allocation33 + $0xa0] sm:$0xff]  }
 0xdeb   : > { %7850 = vmatprep.subr.bf16.mxu1 %v9635_v31 }
 0xded   : > { %7636 = vmatpush3.bf16.msra.mxu0 %v8781_v2  ;;  %v8806_v2 = vld [vmem:[#allocation33 + $0x18] sm:$0xff]  }
 0xdee   : > { %7851 = vmatpush3.bf16.msra.mxu1 %v8770_v57  ;;  %7637 = vmatprep.subr.bf16.mxu0 %v8783_v45  ;;  %v8797_v57 = vld [vmem:[#allocation33 + $0x30] sm:$0xff]  }
 0xdef   : > { %7852 = vmatprep.subr.bf16.mxu1 %v9635_v31  ;;  %v8808_v45 = vld [vmem:[#allocation33 + $0x50] sm:$0xff]  }
 0xdf1   : > { %7638 = vmatpush3.bf16.msra.mxu0 %v8784_v4  ;;  %v8810_v4 = vld [vmem:[#allocation33 + $0x98] sm:$0xff]  }
 0xdf2   : > { %7853 = vmatpush3.bf16.msra.mxu1 %v8773_v58  ;;  %7639 = vmatprep.subr.bf16.mxu0 %v8786_v5  ;;  %v8799_v58 = vld [vmem:[#allocation33 + $0x68] sm:$0xff]   ;;  %v8809_v5 = vld [vmem:[#allocation33 + $0x10] sm:$0xff]  }
 0xdf3   : > { %7870 = vmatprep.subr.bf16.mxu1 %v9635_v31 }
 0xdf5   : > { %7640 = vmatpush3.bf16.msra.mxu0 %v8787_v44  ;;  %v8811_v44 = vld [vmem:[#allocation33 + $0x48] sm:$0xff]  }
 0xdf6   : > { %7641 = vmatprep.subr.bf16.mxu0 %v8789_v7  ;;  %v8813_v7 = vld [vmem:[#allocation33 + $0x90] sm:$0xff]  }
 0xdf9   : > { %7642 = vmatpush3.bf16.msra.mxu0 %v8790_v8  ;;  %v8812_v8 = vld [vmem:[#allocation33 + $0x8] sm:$0xff]  }
 0xdfa   : > { %7890 = vmatprep.subr.bf16.mxu0 %v9635_v31 }
 0xe94   : > { %v5510_v9 = vpop.f32.mrf.mxu1  ;;  %v5667_v11 = vpop.f32.mrf.mxu0 }
 0xe95   : > { %v5516_v61 = vpack.c.bf16 %v5510_v9, %v5510_v9  ;;  %v5673_v21 = vpack.c.bf16 %v5667_v11, %v5667_v11  ;;  %v8814_v9 = vld [vmem:[#allocation33 + $0x40] sm:$0xff]  }
 0xe96   : > { %v7836_v14 = vpop.f32.mrf.mxu1  ;;  %v7862_v15 = vpop.f32.mrf.mxu0  ;;  %v8815_v11 = vld [vmem:[#allocation33] sm:$0xff]  }
 0xe97   : > { %7855 = vmatmul.mubr.bf16.vlgmr.msra.gmra.mxu1 %v5516_v61  ;;  %5951 = vmatmul.mubr.bf16.vlgmr.msra.gmra.mxu0 %v5673_v21  ;;  %v8817_v61 = vld [vmem:[#allocation33 + $0x80] sm:$0xff]  }
 0xe98   : > { %7871 = vmatpush3.bf16.msra.mxu1 %v8776_v10  ;;  %v5513_v16 = vpop.f32.mrf.mxu1  ;;  %v5670_v18 = vpop.f32.mrf.mxu0  ;;  %7886 = vmatprep.mubr.msk.bf16.mxu1 %vm9636_vm2, %v9635_v31  ;;  %v8816_v10 = vld [vmem:[#allocation33 + $0x88] sm:$0xff]  }
 0xe99   : > { %7872 = vmatprep.subr.bf16.mxu1 %v9635_v31  ;;  %7892 = vmatprep.mubr.msk.bf16.mxu0 %vm9636_vm2, %v9635_v31 }
 0xe9a   : > { %v7837_v20 = vpop.f32.mrf.mxu1  ;;  %v7863_v22 = vpop.f32.mrf.mxu0 }
 0xe9c   : > { %7873 = vmatpush3.bf16.msra.mxu1 %v8779_v17  ;;  %v5712_v25 = vpop.f32.mrf.mxu0 }
 0xe9d   : > { %7874 = vmatprep.subr.bf16.mxu1 %v9635_v31  ;;  %v5718_v36 = vpack.c.bf16 %v5712_v25, %v5712_v25 }
 0xe9e   : > { %v7868_v26 = vpop.f32.mrf.mxu0 }
 0xe9f   : > { %v8818_v26 = vld [vmem:[%s10603_s11 + $0x38] sm:$0xff]  }
 0xea0   : > { %7875 = vmatpush3.bf16.msra.mxu1 %v8782_v24  ;;  %v5715_v28 = vpop.f32.mrf.mxu0 }
 0xea1   : > { %7876 = vmatprep.subr.bf16.mxu1 %v9635_v31  ;;  %v8820_v28 = vld [vmem:[%s10603_s11 + $0x28] sm:$0xff]  }
 0xea2   : > { %v7869_v29 = vpop.f32.mrf.mxu0 }
 0xea3   : > { %v8821_v29 = vld [vmem:[%s10603_s11 + $0x20] sm:$0xff]  }
 0xea4   : > { %7877 = vmatpush3.bf16.msra.mxu1 %v8785_v12  ;;  %v8819_v12 = vld [vmem:[%s10603_s11 + $0x30] sm:$0xff]  }
 0xea5   : > { %7878 = vmatprep.subr.bf16.mxu1 %v9635_v31 }
 0xea8   : > { %7879 = vmatpush3.bf16.msra.mxu1 %v8788_v27  ;;  %v8822_v27 = vld [vmem:[%s10603_s11 + $0x18] sm:$0xff]  }
 0xea9   : > { %7880 = vmatprep.subr.bf16.mxu1 %v9635_v31 }
 0xeac   : > { %7881 = vmatpush3.bf16.msra.mxu1 %v8791_v33  ;;  %v8823_v33 = vld [vmem:[%s10603_s11 + $0x10] sm:$0xff]  }
 0xead   : > { %7882 = vmatprep.subr.bf16.mxu1 %v9635_v31 }
 0xeb0   : > { %7883 = vmatpush3.bf16.msra.mxu1 %v8792_v34  ;;  %v8824_v34 = vld [vmem:[%s10603_s11 + $0x8] sm:$0xff]  }
 0xeb1   : > { %7884 = vmatprep.subr.bf16.mxu1 %v9635_v31 }
 0xeb4   : > { %7885 = vmatpush3.bf16.msra.mxu1 %v8793_v35 }
 0xeb5   : > { %7896 = vmatprep.subr.bf16.mxu1 %v9635_v31 }
 0xeb7   : > { %7887 = vmatmul.mubr.bf16.vlgmr.msra.gmra.mxu1 %v5718_v36 }
 0xeb8   : > { %7898 = vmatprep.mubr.msk.bf16.mxu1 %vm9636_vm2, %v9635_v31 }
 0xf57   : > { %v10458_v19 = vpop.f32.mrf.mxu1  ;;  %v7643_v60 = vpop.f32.mrf.mxu0 }
 0xf59   : > { %v7856_v37 = vpop.f32.mrf.mxu1  ;;  %v7644_v38 = vpop.f32.mrf.mxu0 }
 0xf5a   : > { %v7645_v40 = vadd.f32 %v7644_v38, %v7643_v60  ;;  %v7472_v37 = vld [vmem:[#allocation34] ss:$0 sm:$0xff] }
 0xf5b   : > { %v5625_v13 = vpop.f32.mrf.mxu1  ;;  %v7646_v30 = vpop.f32.mrf.mxu0 }
 0xf5c   : > { %v5953_v42 = vadd.f32 %v7645_v40, %v7445_v41 }
 0xf5d   : > { %v7857_v23 = vpop.f32.mrf.mxu1  ;;  %v7647_v39 = vpop.f32.mrf.mxu0 }
 0xf77   : > { %v5992_v43 = vpop.f32.mrf.mxu1 }
 0xf78   : > { %v5993_v46 = vadd.f32 %v5992_v43, %v5953_v42 }
 0xf79   : > { %v7888_v32 = vpop.f32.mrf.mxu1 }
 0xf7a   : > { %v5998_v48 = vmax.f32 %v5993_v46, 0.0 }
 0xf7b   : > { %v5995_v49 = vpop.f32.mrf.mxu1 }
 0xf7c   : > { %v5999_v51 = vpack.c.bf16 %v5998_v48, %v5998_v48 }
 0xf7d   : > { %v7889_v52 = vpop.f32.mrf.mxu1 }
 0xf7e   : > { %v6001_v53 = vsel %vm5472_vm4, %v5999_v51, 0 }
 0xf7f   : > { %7891 = vmatpush3.bf16.msra.mxu0 %v6001_v53  ;;  %7897 = vmatpush3.bf16.msra.mxu1 %v6001_v53  ;;  %v7434_v53 = vld [vmem:[#allocation36] ss:$0 sm:$0xff] }
 0xf80   : > { %7662 = vmatprep.subr.bf16.mxu0 %v8794_v1  ;;  %7902 = vmatprep.subr.bf16.mxu1 %v9635_v31 }
 0xf82   : > { %7893 = vmatmul.mubr.msk.bf16.vlgmr.msra.gmra.mxu0 %vm5468_vm5, %v10411_v3  ;;  %7899 = vmatmul.mubr.msk.bf16.vlgmr.msra.gmra.mxu1 %vm5468_vm5, %v10426_v50  ;;  %v8802_v3 = vld [vmem:[#allocation33 + $0x60] sm:$0xff]  }
 0xf83   : > { %6316 = vmatprep.mubr.bf16.mxu0 %v5999_v51  ;;  %7663 = vmatpush3.bf16.msra.mxu0 %v8795_v54  ;;  %v8803_v50 = vld [vmem:[#allocation33 + $0x20] sm:$0xff]   ;;  %v5623_v54 = vadd.f32 %v7434_v53, %v10458_v19 }
 0xf84   : > { %7664 = vmatprep.subr.bf16.mxu0 %v8796_v55  ;;  %7903 = vmatpush3.bf16.msra.mxu1 %v8798_v56 }
 0xf85   : > { %7904 = vmatprep.subr.bf16.mxu1 %v9635_v31  ;;  %7918 = vmatprep.mubr.msk.bf16.mxu1 %vm9636_vm2, %v9635_v31  ;;  %v5628_v55 = vmax.f32 %v5623_v54, 0.0 }
 0xf87   : > { %7665 = vmatpush3.bf16.msra.mxu0 %v8797_v57 }
 0xf88   : > { %7666 = vmatprep.subr.bf16.mxu0 %v8799_v58  ;;  %7905 = vmatpush3.bf16.msra.mxu1 %v8801_v59 }
 0xf89   : > { %7906 = vmatprep.subr.bf16.mxu1 %v9635_v31 }
 0xf8b   : > { %7667 = vmatpush3.bf16.msra.mxu0 %v8800_v6 }
 0xf8c   : > { %7668 = vmatprep.subr.bf16.mxu0 %v8802_v3  ;;  %7907 = vmatpush3.bf16.msra.mxu1 %v8804_v62 }
 0xf8d   : > { %7908 = vmatprep.subr.bf16.mxu1 %v9635_v31 }
 0xf8f   : > { %7669 = vmatpush3.bf16.msra.mxu0 %v8803_v50 }
 0xf90   : > { %7670 = vmatprep.subr.bf16.mxu0 %v8805_v63  ;;  %7909 = vmatpush3.bf16.msra.mxu1 %v8807_v0 }
 0xf91   : > { %7910 = vmatprep.subr.bf16.mxu1 %v9635_v31 }
 0xf93   : > { %7671 = vmatpush3.bf16.msra.mxu0 %v8806_v2 }
 0xf94   : > { %7672 = vmatprep.subr.bf16.mxu0 %v8808_v45  ;;  %7911 = vmatpush3.bf16.msra.mxu1 %v8810_v4 }
 0xf95   : > { %7912 = vmatprep.subr.bf16.mxu1 %v9635_v31 }
 0xf97   : > { %7673 = vmatpush3.bf16.msra.mxu0 %v8809_v5 }
 0xf98   : > { %7674 = vmatprep.subr.bf16.mxu0 %v8811_v44  ;;  %7913 = vmatpush3.bf16.msra.mxu1 %v8813_v7 }
 0xf99   : > { %7914 = vmatprep.subr.bf16.mxu1 %v9635_v31 }
 0xf9b   : > { %7675 = vmatpush3.bf16.msra.mxu0 %v8812_v8 }
 0xf9c   : > { %7676 = vmatprep.subr.bf16.mxu0 %v8814_v9  ;;  %7915 = vmatpush3.bf16.msra.mxu1 %v8816_v10 }
 0xf9d   : > { %7916 = vmatprep.subr.bf16.mxu1 %v9635_v31 }
 0xf9f   : > { %7677 = vmatpush3.bf16.msra.mxu0 %v8815_v11 }
 0xfa0   : > { %7917 = vmatpush3.bf16.msra.mxu1 %v8817_v61  ;;  %7922 = vmatprep.subr.bf16.mxu0 %v9635_v31 }
 0xfa1   : > { %7928 = vmatprep.subr.bf16.mxu1 %v9635_v31 }
0x1042   : > { %v6037_v21 = vpop.f32.mrf.mxu0  ;;  %v6078_v14 = vpop.f32.mrf.mxu1 }
0x1043   : > { %v6043_v15 = vpack.c.bf16 %v6037_v21, %v6037_v21  ;;  %v6084_v16 = vpack.c.bf16 %v6078_v14, %v6078_v14 }
0x1044   : > { %v7894_v17 = vpop.f32.mrf.mxu0  ;;  %v7900_v18 = vpop.f32.mrf.mxu1 }
0x1045   : > { %6317 = vmatmul.mubr.bf16.vlgmr.msra.gmra.mxu0 %v6043_v15  ;;  %7919 = vmatmul.mubr.bf16.vlgmr.msra.gmra.mxu1 %v6084_v16 }
0x1046   : > { %v6040_v20 = vpop.f32.mrf.mxu0  ;;  %v6081_v22 = vpop.f32.mrf.mxu1  ;;  %7924 = vmatprep.mubr.msk.bf16.mxu0 %vm9636_vm2, %v9635_v31  ;;  %7944 = vmatprep.mubr.msk.bf16.mxu1 %vm9636_vm2, %v9635_v31 }
0x1047   : > { %7929 = vmatpush3.bf16.msra.mxu1 %v8818_v26 }
0x1048   : > { %v7895_v24 = vpop.f32.mrf.mxu0  ;;  %v7901_v25 = vpop.f32.mrf.mxu1  ;;  %7930 = vmatprep.subr.bf16.mxu1 %v9635_v31 }
0x104b   : > { %7931 = vmatpush3.bf16.msra.mxu1 %v8819_v12 }
0x104c   : > { %7932 = vmatprep.subr.bf16.mxu1 %v9635_v31 }
0x104f   : > { %7933 = vmatpush3.bf16.msra.mxu1 %v8820_v28 }
0x1050   : > { %7934 = vmatprep.subr.bf16.mxu1 %v9635_v31 }
0x1053   : > { %7935 = vmatpush3.bf16.msra.mxu1 %v8821_v29 }
0x1054   : > { %7936 = vmatprep.subr.bf16.mxu1 %v9635_v31 }
0x1057   : > { %7937 = vmatpush3.bf16.msra.mxu1 %v8822_v27 }
0x1058   : > { %7938 = vmatprep.subr.bf16.mxu1 %v9635_v31 }
0x105b   : > { %7939 = vmatpush3.bf16.msra.mxu1 %v8823_v33 }
0x105c   : > { %7940 = vmatprep.subr.bf16.mxu1 %v9635_v31 }
0x105f   : > { %7941 = vmatpush3.bf16.msra.mxu1 %v8824_v34 }
0x1060   : > { %7942 = vmatprep.subr.bf16.mxu1 %v9635_v31  ;;  %v8825_v31 = vld [vmem:[%s10603_s11] sm:$0xff]  }
0x1063   : > { %7943 = vmatpush3.bf16.msra.mxu1 %v8825_v31 }
0x1105   : > { %v7678_v35 = vpop.f32.mrf.mxu0  ;;  %v6358_v36 = vpop.f32.mrf.mxu1 }
0x1107   : > { %v7679_v60 = vpop.f32.mrf.mxu0  ;;  %v7920_v38 = vpop.f32.mrf.mxu1 }
0x1108   : > { %v7680_v13 = vadd.f32 %v7679_v60, %v7678_v35 }
0x1109   : > { %v7681_v30 = vpop.f32.mrf.mxu0  ;;  %v6361_v23 = vpop.f32.mrf.mxu1 }
0x110a   : > { %v6319_v39 = vadd.f32 %v7680_v13, %v7472_v37 }
0x110b   : > { %v7682_v40 = vpop.f32.mrf.mxu0  ;;  %v7921_v41 = vpop.f32.mrf.mxu1 }
0x110c   : > { %v6359_v42 = vadd.f32 %v6358_v36, %v6319_v39 }
0x110e   : > { %v6364_v43 = vmax.f32 %v6359_v42, 0.0 }
0x1110   : > { %v6365_v46 = vpack.c.bf16 %v6364_v43, %v6364_v43 }
0x1112   : > { %v6367_v32 = vsel %vm5472_vm4, %v6365_v46, 0 }
0x1113   : > { %7923 = vmatpush3.bf16.msra.mxu0 %v6367_v32 }
0x1116   : > { %7925 = vmatmul.mubr.msk.bf16.vlgmr.msra.gmra.mxu0 %vm5468_vm5, %v10409_v47 }
0x11d6   : > { %v6403_v48 = vpop.f32.mrf.mxu0 }
0x11d7   : > { %v6409_v49 = vpack.c.bf16 %v6403_v48, %v6403_v48 }
0x11d8   : > { %v7926_v51 = vpop.f32.mrf.mxu0 }
0x11d9   : > { %7945 = vmatmul.mubr.bf16.vlgmr.msra.gmra.mxu1 %v6409_v49 }
0x11da   : > { %v6406_v1 = vpop.f32.mrf.mxu0 }
0x11dc   : > { %v7927_v52 = vpop.f32.mrf.mxu0 }
0x1299   : > { %v6508_v56 = vpop.f32.mrf.mxu1 }
0x129a   : > { %v6509_v57 = vadd.f32 %v6508_v56, %v5628_v55 }
0x129b   : > { %v7946_v58 = vpop.f32.mrf.mxu1 }
0x129c   : > { %6515 = vst.msk [vmem:[%s1552_s7] sm:$0x3] %vm6514_vm6, %v6509_v57 }
0x129d   : > { %7506 = vst.msk [vmem:[%s1552_s7] sm:$0xc] %vm6517_vm7, %v6509_v57  ;;  %v6511_v47 = vpop.f32.mrf.mxu1 }
0x129f   : > { %v7947_v59 = vpop.f32.mrf.mxu1 }
0x12a0 PF: > { %s102_s15 = sadd.s32 1, %s9565_s15  }
0x12a1   : > { %p99_p6 = scmp.ge.s32.totalorder %s102_s15, 4  }
0x12a3   :  { %101 = sbr.rel (!%p99_p6) target bundleno = 80 (0x50), region = 373 }
0x12a8   :  { %6594 = vsyncpa [#allocation3], 1 }
0x12a9   :  { %6596 = vsyncpa [#allocation3 + $0x1], 1 }
0x12aa   :  { %6597 = vsyncpa [#allocation5], 1 }
0x12ab   :  { %6598 = vsyncpa [#allocation8], 1 }
0x12ac   :  { %6599 = vsyncpa [#allocation11], 1 }
0x12ad   :  { %6600 = vsyncpa [#allocation14], 1 }
0x12ae   :  { %6601 = vsyncpa [#allocation17], 1 }
0x12af   :  { %6602 = vsyncpa [#allocation20], 1 }
0x12b0   :  { %6603 = vsyncpa [#allocation23], 1 }
0x12b1   :  { %6604 = vsyncpa [#allocation26], 1 }
0x12b2   :  { %6605 = vsyncpa [#allocation29], 1 }
0x12b3   :  { %6606 = vsyncpa [#allocation32], 1 }
0x12b4   :  { %6607 = vsyncpa [#allocation35], 1 }
0x12b5   :  { %6608 = vsyncpa [#allocation38], 1 }
0x12b6   :  { %6609 = vsyncpa [#allocation41], 1 }

</bundles_post_ra>
